<compile_context>
chip_gen: v7x
topology: tpu7x:2x2x1
jax: 0.10.0
libtpu: 0.0.40
codegen_flags: <defaults>
</compile_context>

<pallas_src>
import jax
import jax.numpy as jnp
from jax.experimental import pallas as pl
from jax.experimental.pallas import tpu as pltpu

_BN_EPS = 1e-3


# ---------------------------------------------------------------------------
# In-kernel helpers
# ---------------------------------------------------------------------------

def _fill_imbuf(buf_ref, act4):
    """Write activation (B,H,W,Cin) into an 'im2col over dy' scratch buffer.

    buf_ref has shape (B, H, W+2, 3*Cin):
        buf[b, h, q, dy*Cin + c] = zero-padded-input[b, h + dy, q, c]
    (q is the column-padded index; q==0 and q==W+1 are the dx halo).
    Only the halo / out-of-range strips are zeroed; everything else is data.
    """
    B, H, W, cin = act4.shape
    dt = buf_ref.dtype

    # dx halo columns (all rows, all three dy groups).
    z_col = jnp.zeros((B, H, 1, 3 * cin), dt)
    buf_ref[:, :, 0:1, :] = z_col
    buf_ref[:, :, W + 1:W + 2, :] = z_col

    z_row = jnp.zeros((B, 1, W, cin), dt)
    # dy = 0 group reads input row h-1: shift down, top output row is zero.
    buf_ref[:, 0:1, 1:W + 1, 0:cin] = z_row
    buf_ref[:, 1:H, 1:W + 1, 0:cin] = act4[:, 0:H - 1]
    # dy = 1 group (center row).
    buf_ref[:, 0:H, 1:W + 1, cin:2 * cin] = act4
    # dy = 2 group reads input row h+1: shift up, bottom output row is zero.
    buf_ref[:, 0:H - 1, 1:W + 1, 2 * cin:3 * cin] = act4[:, 1:H]
    buf_ref[:, H - 1:H, 1:W + 1, 2 * cin:3 * cin] = z_row


def _dx_grouped_conv(buf_ref, w_ref, s_ref, b_ref, m):
    """3x3 conv as 3 long-K matmuls (one per dx shift), then BN + ReLU (f32).

    buf_ref: (B, H, W+2, 3*Cin) im2col-over-dy scratch (see _fill_imbuf).
    w_ref:   (3, 3*Cin, Cout)   weights, [dx, dy-major K, Cout].
    """
    _, _, wp, k3 = buf_ref.shape
    w = wp - 2
    acc = None
    for dx in range(3):
        # Ref-sliced tap group: never materialize the whole padded buffer.
        lhs = buf_ref[:, :, dx:dx + w, :].reshape(m, k3).astype(jnp.bfloat16)
        d = jnp.dot(lhs, w_ref[dx], preferred_element_type=jnp.float32)
        acc = d if acc is None else acc + d
    return jnp.maximum(acc * s_ref[...] + b_ref[...], 0.0)


# ---------------------------------------------------------------------------
# Fused Block35 kernel (one batch tile per grid step)
# ---------------------------------------------------------------------------

def _block35_kernel(x_ref, w_head_ref, s_head_ref, b_head_ref,
                    w_mid_ref, s_mid_ref, b_mid_ref,
                    w_2c_ref, s_2c_ref, b_2c_ref,
                    w_f_ref, b_f_ref,
                    o_ref, im1_ref, im2_ref):
    B, H, W, C = x_ref.shape
    M = B * H * W

    # ---- merged branch-head 1x1 convs (320 -> 96 = [b1a | b2a | b0]) ----
    x_bf = x_ref[...].reshape(M, C).astype(jnp.bfloat16)
    heads = jnp.dot(x_bf, w_head_ref[...], preferred_element_type=jnp.float32)
    heads = jnp.maximum(heads * s_head_ref[...] + b_head_ref[...], 0.0)
    b0 = heads[:, 64:96]                                   # branch0 out [M,32]

    # ---- first 3x3 layer: block-diagonal 64 -> 80 (3 matmuls, K=192) ----
    _fill_imbuf(im1_ref, heads[:, 0:64].reshape(B, H, W, 64))
    mid = _dx_grouped_conv(im1_ref, w_mid_ref, s_mid_ref, b_mid_ref, M)
    b1 = mid[:, 0:32]                                      # branch1 out [M,32]

    # ---- branch2 second 3x3: 48 -> 64 (3 matmuls, K=144) ----
    _fill_imbuf(im2_ref, mid[:, 32:80].reshape(B, H, W, 48))
    b2 = _dx_grouped_conv(im2_ref, w_2c_ref, s_2c_ref, b_2c_ref, M)  # [M,64]

    # ---- final 1x1 conv (single K=128 dot, scale folded into weights),
    #      residual add (x re-read from VMEM ref), ReLU ----
    cat = jnp.concatenate([b0, b1, b2], axis=-1).astype(jnp.bfloat16)  # [M,128]
    out = jnp.dot(cat, w_f_ref[...], preferred_element_type=jnp.float32)
    out = out + b_f_ref[...]
    out = out + x_ref[...].reshape(M, C)
    out = jnp.maximum(out, 0.0)
    o_ref[...] = out.reshape(B, H, W, C).astype(o_ref.dtype)


# ---------------------------------------------------------------------------
# Wrapper
# ---------------------------------------------------------------------------

def _pick_batch_tile(n, h, w, c=320, target_m=512, vmem_budget=40 * 1024 * 1024):
    """Largest batch tile with M = bt*h*w <= target_m that fits the VMEM
    budget; for larger batches prefer leaving an even grid length (v7x 2 TCs)
    when that does not cost more than half of M."""
    def bytes_needed(b):
        blk = b * h * w * c * 4                       # one f32 block
        scratch = b * h * (w + 2) * (3 * 64 + 3 * 48) * 4
        return 4 * blk + scratch                      # dbl-buffered in + out
    cands = [d for d in range(1, n + 1)
             if n % d == 0 and d * h * w <= max(target_m, h * w)
             and bytes_needed(d) <= vmem_budget]
    if not cands:
        cands = [1]
    bt = max(cands)
    if n // bt == 1 and n >= 4:
        even = [d for d in cands if (n // d) % 2 == 0]
        if even and max(even) * h * w * 2 >= bt * h * w:
            bt = max(even)
    return bt


def block35_forward_nhwc(x, params, batch_tile=None):
    """Fused Block35 forward on an NHWC activation (preferred entry point)."""
    N, H, W, C = x.shape
    assert C == 320, "Block35 expects 320 input channels"
    assert H >= 2 and W >= 1
    bt = batch_tile if batch_tile is not None else _pick_batch_tile(N, H, W)
    assert N % bt == 0

    # Explicit VMEM budget (review item): blocks + scratch + weights, padded.
    blk = bt * H * W * C * 4
    scratch = bt * H * (W + 2) * (3 * 64 + 3 * 48) * 4
    weights = (C * 96 + 3 * 192 * 80 + 3 * 144 * 64 + 128 * C) * 2
    vmem_limit = int(min(64 * 1024 * 1024,
                         max(32 * 1024 * 1024,
                             4 * blk + scratch + 4 * weights + (4 << 20))))

    return pl.pallas_call(
        _block35_kernel,
        out_shape=jax.ShapeDtypeStruct((N, H, W, C), x.dtype),
        grid=(N // bt,),
        in_specs=[
            pl.BlockSpec((bt, H, W, C), lambda n: (n, 0, 0, 0)),     # x
            pl.BlockSpec((C, 96), lambda n: (0, 0)),                 # w_head
            pl.BlockSpec((1, 96), lambda n: (0, 0)),                 # s_head
            pl.BlockSpec((1, 96), lambda n: (0, 0)),                 # b_head
            pl.BlockSpec((3, 192, 80), lambda n: (0, 0, 0)),         # w_mid
            pl.BlockSpec((1, 80), lambda n: (0, 0)),                 # s_mid
            pl.BlockSpec((1, 80), lambda n: (0, 0)),                 # b_mid
            pl.BlockSpec((3, 144, 64), lambda n: (0, 0, 0)),         # w_2c
            pl.BlockSpec((1, 64), lambda n: (0, 0)),                 # s_2c
            pl.BlockSpec((1, 64), lambda n: (0, 0)),                 # b_2c
            pl.BlockSpec((128, C), lambda n: (0, 0)),                # w_f
            pl.BlockSpec((1, C), lambda n: (0, 0)),                  # b_f
        ],
        out_specs=pl.BlockSpec((bt, H, W, C), lambda n: (n, 0, 0, 0)),
        scratch_shapes=[
            pltpu.VMEM((bt, H, W + 2, 3 * 64), jnp.float32),  # im2col, layer 1
            pltpu.VMEM((bt, H, W + 2, 3 * 48), jnp.float32),  # im2col, layer 2
        ],
        compiler_params=pltpu.CompilerParams(
            dimension_semantics=("parallel",),
            vmem_limit_bytes=vmem_limit),
    )(x, params["w_head"], params["s_head"], params["b_head"],
      params["w_mid"], params["s_mid"], params["b_mid"],
      params["w_2c"], params["s_2c"], params["b_2c"],
      params["w_f"], params["b_f"])


def block35_forward(x_nchw, params, batch_tile=None):
    """NCHW interface matching the PyTorch module.  For a stack of Block35
    blocks keep activations NHWC and call block35_forward_nhwc directly to
    avoid these HBM round-trip transposes (review item)."""
    x = jnp.transpose(x_nchw, (0, 2, 3, 1))
    out = block35_forward_nhwc(x, params, batch_tile=batch_tile)
    return jnp.transpose(out, (0, 3, 1, 2))


# ---------------------------------------------------------------------------
# Parameter construction (deterministic, synthetic; BN folded for inference)
# ---------------------------------------------------------------------------

def _make_bn_fold(key, c):
    k1, k2, k3, k4 = jax.random.split(key, 4)
    gamma = 1.0 + 0.1 * jax.random.normal(k1, (c,), jnp.float32)
    beta = 0.1 * jax.random.normal(k2, (c,), jnp.float32)
    running_mean = 0.1 * jax.random.normal(k3, (c,), jnp.float32)
    running_var = jax.random.uniform(k4, (c,), jnp.float32, 0.5, 1.5)
    s = gamma / jnp.sqrt(running_var + _BN_EPS)
    b = beta - running_mean * s
    return s, b


def _regroup_taps(w9):
    """(9, Cin, Cout) with tap t = dy*3+dx -> (3 [dx], 3*Cin [dy-major], Cout)."""
    _, cin, cout = w9.shape
    w = w9.reshape(3, 3, cin, cout)          # [dy, dx, Cin, Cout]
    w = jnp.transpose(w, (1, 0, 2, 3))       # [dx, dy, Cin, Cout]
    return w.reshape(3, 3 * cin, cout)


def init_block35_params(key, scale=1.0):
    keys = jax.random.split(key, 16)

    def rnd(k, shape):
        return 0.05 * jax.random.normal(k, shape, jnp.float32)

    b0_w = rnd(keys[0], (320, 32));   b0_s, b0_b = _make_bn_fold(keys[1], 32)
    b1a_w = rnd(keys[2], (320, 32));  b1a_s, b1a_b = _make_bn_fold(keys[3], 32)
    b1b_w = rnd(keys[4], (9, 32, 32)); b1b_s, b1b_b = _make_bn_fold(keys[5], 32)
    b2a_w = rnd(keys[6], (320, 32));  b2a_s, b2a_b = _make_bn_fold(keys[7], 32)
    b2b_w = rnd(keys[8], (9, 32, 48)); b2b_s, b2b_b = _make_bn_fold(keys[9], 48)
    b2c_w = rnd(keys[10], (9, 48, 64)); b2c_s, b2c_b = _make_bn_fold(keys[11], 64)
    conv_w = rnd(keys[12], (128, 320))
    conv_b = rnd(keys[13], (320,))

    p = {}
    # Merged branch-head 1x1 weight; output channel order [b1a | b2a | b0].
    p["w_head"] = jnp.concatenate([b1a_w, b2a_w, b0_w], axis=1).astype(jnp.bfloat16)
    p["s_head"] = jnp.concatenate([b1a_s, b2a_s, b0_s]).reshape(1, 96)
    p["b_head"] = jnp.concatenate([b1a_b, b2a_b, b0_b]).reshape(1, 96)

    # Block-diagonal combined first 3x3 layer: 64 -> [b1 (32) | b2b (48)].
    w_mid = jnp.zeros((9, 64, 80), jnp.float32)
    w_mid = w_mid.at[:, :32, :32].set(b1b_w)
    w_mid = w_mid.at[:, 32:, 32:].set(b2b_w)
    p["w_mid"] = _regroup_taps(w_mid).astype(jnp.bfloat16)      # (3, 192, 80)
    p["s_mid"] = jnp.concatenate([b1b_s, b2b_s]).reshape(1, 80)
    p["b_mid"] = jnp.concatenate([b1b_b, b2b_b]).reshape(1, 80)

    # Branch2 second 3x3 (48 -> 64).
    p["w_2c"] = _regroup_taps(b2c_w).astype(jnp.bfloat16)       # (3, 144, 64)
    p["s_2c"] = b2c_s.reshape(1, 64)
    p["b_2c"] = b2c_b.reshape(1, 64)

    # Final 1x1 conv (bias); rows ordered [b0 | b1 | b2] = torch.cat order.
    # Residual scale is folded here, multiplied in f32 before the bf16 cast.
    p["w_f"] = (conv_w * scale).astype(jnp.bfloat16)
    p["b_f"] = (conv_b * scale).reshape(1, 320)
    return p


# ---------------------------------------------------------------------------
# Main
# ---------------------------------------------------------------------------

if __name__ == "__main__":
    key = jax.random.PRNGKey(0)
    k_params, k_x = jax.random.split(key)

    # scale folded into the final conv weights (review item).
    params = init_block35_params(k_params, scale=0.17)
    # Small spatial extent; channel count (320) is fixed by the module.
    x = jax.random.normal(k_x, (2, 320, 8, 8), jnp.float32)

    fwd = jax.jit(block35_forward)
    out = jax.block_until_ready(fwd(x, params))

    assert out.shape == (2, 320, 8, 8)
    assert bool(jnp.all(out >= 0.0))          # ReLU output
    assert bool(jnp.all(jnp.isfinite(out)))
    print("KERNEL_OK")
</pallas_src>

<mosaic_0001>
module attributes {stable_mosaic.version = 11 : i64} {
  func.func @_block35_kernel(%arg0: i32, %arg1: memref<2x8x8x320xf32, #tpu.memory_space<vmem>>, %arg2: memref<320x96xbf16, #tpu.memory_space<vmem>>, %arg3: memref<1x96xf32, #tpu.memory_space<vmem>>, %arg4: memref<1x96xf32, #tpu.memory_space<vmem>>, %arg5: memref<3x192x80xbf16, #tpu.memory_space<vmem>>, %arg6: memref<1x80xf32, #tpu.memory_space<vmem>>, %arg7: memref<1x80xf32, #tpu.memory_space<vmem>>, %arg8: memref<3x144x64xbf16, #tpu.memory_space<vmem>>, %arg9: memref<1x64xf32, #tpu.memory_space<vmem>>, %arg10: memref<1x64xf32, #tpu.memory_space<vmem>>, %arg11: memref<128x320xbf16, #tpu.memory_space<vmem>>, %arg12: memref<1x320xf32, #tpu.memory_space<vmem>>, %arg13: memref<2x8x8x320xf32, #tpu.memory_space<vmem>>, %arg14: memref<2x8x10x192xf32, #tpu.memory_space<vmem>>, %arg15: memref<2x8x10x144xf32, #tpu.memory_space<vmem>>) attributes {dimension_semantics = [#tpu.dimension_semantics<parallel>], iteration_bounds = array<i64: 1>, scalar_prefetch = 0 : i64, scratch_operands = 2 : i64, tpu.core_type = #tpu.core_type<tc>, window_params = [{transform_indices = @transform_0, window_bounds = array<i64: 2, 8, 8, 320>}, {pipeline_mode = #tpu.pipeline_mode<synchronous>, transform_indices = @transform_1, window_bounds = array<i64: 320, 96>}, {pipeline_mode = #tpu.pipeline_mode<synchronous>, transform_indices = @transform_2, window_bounds = array<i64: 1, 96>}, {pipeline_mode = #tpu.pipeline_mode<synchronous>, transform_indices = @transform_3, window_bounds = array<i64: 1, 96>}, {pipeline_mode = #tpu.pipeline_mode<synchronous>, transform_indices = @transform_4, window_bounds = array<i64: 3, 192, 80>}, {pipeline_mode = #tpu.pipeline_mode<synchronous>, transform_indices = @transform_5, window_bounds = array<i64: 1, 80>}, {pipeline_mode = #tpu.pipeline_mode<synchronous>, transform_indices = @transform_6, window_bounds = array<i64: 1, 80>}, {pipeline_mode = #tpu.pipeline_mode<synchronous>, transform_indices = @transform_7, window_bounds = array<i64: 3, 144, 64>}, {pipeline_mode = #tpu.pipeline_mode<synchronous>, transform_indices = @transform_8, window_bounds = array<i64: 1, 64>}, {pipeline_mode = #tpu.pipeline_mode<synchronous>, transform_indices = @transform_9, window_bounds = array<i64: 1, 64>}, {pipeline_mode = #tpu.pipeline_mode<synchronous>, transform_indices = @transform_10, window_bounds = array<i64: 128, 320>}, {pipeline_mode = #tpu.pipeline_mode<synchronous>, transform_indices = @transform_11, window_bounds = array<i64: 1, 320>}, {transform_indices = @transform_12, window_bounds = array<i64: 2, 8, 8, 320>}]} {
    %c0 = arith.constant 0 : index
    %c0_0 = arith.constant 0 : index
    %c0_1 = arith.constant 0 : index
    %c0_2 = arith.constant 0 : index
    %0 = vector.load %arg1[%c0, %c0_0, %c0_1, %c0_2] : memref<2x8x8x320xf32, #tpu.memory_space<vmem>>, vector<2x8x8x320xf32>
    %1 = vector.shape_cast %0 : vector<2x8x8x320xf32> to vector<128x320xf32>
    %2 = arith.truncf %1 : vector<128x320xf32> to vector<128x320xbf16>
    %c0_3 = arith.constant 0 : index
    %c0_4 = arith.constant 0 : index
    %3 = vector.load %arg2[%c0_3, %c0_4] : memref<320x96xbf16, #tpu.memory_space<vmem>>, vector<320x96xbf16>
    %cst = arith.constant dense<0.000000e+00> : vector<128x96xf32>
    %4 = tpu.matmul %2, %3, %cst {dimension_numbers = #tpu.dot_dimension_numbers<[1], [0], [0], [1], [0, 0, 1, 1], [], []>} : vector<128x320xbf16>, vector<320x96xbf16>, vector<128x96xf32> -> vector<128x96xf32>
    %c0_5 = arith.constant 0 : index
    %c0_6 = arith.constant 0 : index
    %5 = vector.load %arg3[%c0_5, %c0_6] : memref<1x96xf32, #tpu.memory_space<vmem>>, vector<1x96xf32>
    %6 = vector.broadcast %5 : vector<1x96xf32> to vector<128x96xf32>
    %7 = arith.mulf %4, %6 : vector<128x96xf32>
    %c0_7 = arith.constant 0 : index
    %c0_8 = arith.constant 0 : index
    %8 = vector.load %arg4[%c0_7, %c0_8] : memref<1x96xf32, #tpu.memory_space<vmem>>, vector<1x96xf32>
    %9 = vector.broadcast %8 : vector<1x96xf32> to vector<128x96xf32>
    %10 = arith.addf %7, %9 : vector<128x96xf32>
    %cst_9 = arith.constant 0.000000e+00 : f32
    %11 = vector.broadcast %cst_9 : f32 to vector<128x96xf32>
    %12 = arith.maximumf %10, %11 : vector<128x96xf32>
    %13 = vector.extract_strided_slice %12 {offsets = [0, 64], sizes = [128, 32], strides = [1, 1]} : vector<128x96xf32> to vector<128x32xf32>
    %14 = vector.extract_strided_slice %12 {offsets = [0, 0], sizes = [128, 64], strides = [1, 1]} : vector<128x96xf32> to vector<128x64xf32>
    %15 = vector.shape_cast %14 : vector<128x64xf32> to vector<2x8x8x64xf32>
    %cst_10 = arith.constant 0.000000e+00 : f32
    %16 = vector.broadcast %cst_10 : f32 to vector<2x8x1x192xf32>
    %c0_11 = arith.constant 0 : index
    %c0_12 = arith.constant 0 : index
    %c0_13 = arith.constant 0 : index
    %c0_14 = arith.constant 0 : index
    %17 = vector.load %arg14[%c0_11, %c0_12, %c0_13, %c0_14] : memref<2x8x10x192xf32, #tpu.memory_space<vmem>>, vector<2x8x1x192xf32>
    tpu.vector_store %arg14[%c0_11, %c0_12, %c0_13, %c0_14], %16 {strides = array<i32>} : memref<2x8x10x192xf32, #tpu.memory_space<vmem>>, vector<2x8x1x192xf32>,
    %c0_15 = arith.constant 0 : index
    %c0_16 = arith.constant 0 : index
    %c9 = arith.constant 9 : index
    %c0_17 = arith.constant 0 : index
    %18 = vector.load %arg14[%c0_15, %c0_16, %c9, %c0_17] : memref<2x8x10x192xf32, #tpu.memory_space<vmem>>, vector<2x8x1x192xf32>
    tpu.vector_store %arg14[%c0_15, %c0_16, %c9, %c0_17], %16 {strides = array<i32>} : memref<2x8x10x192xf32, #tpu.memory_space<vmem>>, vector<2x8x1x192xf32>,
    %cst_18 = arith.constant 0.000000e+00 : f32
    %19 = vector.broadcast %cst_18 : f32 to vector<2x1x8x64xf32>
    %c0_19 = arith.constant 0 : index
    %c0_20 = arith.constant 0 : index
    %c1 = arith.constant 1 : index
    %c0_21 = arith.constant 0 : index
    %20 = vector.load %arg14[%c0_19, %c0_20, %c1, %c0_21] : memref<2x8x10x192xf32, #tpu.memory_space<vmem>>, vector<2x1x8x64xf32>
    tpu.vector_store %arg14[%c0_19, %c0_20, %c1, %c0_21], %19 {strides = array<i32>} : memref<2x8x10x192xf32, #tpu.memory_space<vmem>>, vector<2x1x8x64xf32>,
    %21 = vector.extract_strided_slice %15 {offsets = [0, 0, 0, 0], sizes = [2, 7, 8, 64], strides = [1, 1, 1, 1]} : vector<2x8x8x64xf32> to vector<2x7x8x64xf32>
    %c0_22 = arith.constant 0 : index
    %c1_23 = arith.constant 1 : index
    %c1_24 = arith.constant 1 : index
    %c0_25 = arith.constant 0 : index
    %22 = vector.load %arg14[%c0_22, %c1_23, %c1_24, %c0_25] : memref<2x8x10x192xf32, #tpu.memory_space<vmem>>, vector<2x7x8x64xf32>
    tpu.vector_store %arg14[%c0_22, %c1_23, %c1_24, %c0_25], %21 {strides = array<i32>} : memref<2x8x10x192xf32, #tpu.memory_space<vmem>>, vector<2x7x8x64xf32>,
    %c0_26 = arith.constant 0 : index
    %c0_27 = arith.constant 0 : index
    %c1_28 = arith.constant 1 : index
    %c64 = arith.constant 64 : index
    %23 = vector.load %arg14[%c0_26, %c0_27, %c1_28, %c64] : memref<2x8x10x192xf32, #tpu.memory_space<vmem>>, vector<2x8x8x64xf32>
    tpu.vector_store %arg14[%c0_26, %c0_27, %c1_28, %c64], %15 {strides = array<i32>} : memref<2x8x10x192xf32, #tpu.memory_space<vmem>>, vector<2x8x8x64xf32>,
    %24 = vector.extract_strided_slice %15 {offsets = [0, 1, 0, 0], sizes = [2, 7, 8, 64], strides = [1, 1, 1, 1]} : vector<2x8x8x64xf32> to vector<2x7x8x64xf32>
    %c0_29 = arith.constant 0 : index
    %c0_30 = arith.constant 0 : index
    %c1_31 = arith.constant 1 : index
    %c128 = arith.constant 128 : index
    %25 = vector.load %arg14[%c0_29, %c0_30, %c1_31, %c128] : memref<2x8x10x192xf32, #tpu.memory_space<vmem>>, vector<2x7x8x64xf32>
    tpu.vector_store %arg14[%c0_29, %c0_30, %c1_31, %c128], %24 {strides = array<i32>} : memref<2x8x10x192xf32, #tpu.memory_space<vmem>>, vector<2x7x8x64xf32>,
    %c0_32 = arith.constant 0 : index
    %c7 = arith.constant 7 : index
    %c1_33 = arith.constant 1 : index
    %c128_34 = arith.constant 128 : index
    %26 = vector.load %arg14[%c0_32, %c7, %c1_33, %c128_34] : memref<2x8x10x192xf32, #tpu.memory_space<vmem>>, vector<2x1x8x64xf32>
    tpu.vector_store %arg14[%c0_32, %c7, %c1_33, %c128_34], %19 {strides = array<i32>} : memref<2x8x10x192xf32, #tpu.memory_space<vmem>>, vector<2x1x8x64xf32>,
    %c0_35 = arith.constant 0 : index
    %c0_36 = arith.constant 0 : index
    %c0_37 = arith.constant 0 : index
    %c0_38 = arith.constant 0 : index
    %27 = vector.load %arg14[%c0_35, %c0_36, %c0_37, %c0_38] : memref<2x8x10x192xf32, #tpu.memory_space<vmem>>, vector<2x8x8x192xf32>
    %28 = vector.shape_cast %27 : vector<2x8x8x192xf32> to vector<128x192xf32>
    %29 = arith.truncf %28 : vector<128x192xf32> to vector<128x192xbf16>
    %c0_39 = arith.constant 0 : index
    %c0_40 = arith.constant 0 : index
    %c0_41 = arith.constant 0 : index
    %30 = vector.load %arg5[%c0_39, %c0_40, %c0_41] : memref<3x192x80xbf16, #tpu.memory_space<vmem>>, vector<1x192x80xbf16>
    %31 = vector.shape_cast %30 : vector<1x192x80xbf16> to vector<192x80xbf16>
    %cst_42 = arith.constant dense<0.000000e+00> : vector<128x80xf32>
    %32 = tpu.matmul %29, %31, %cst_42 {dimension_numbers = #tpu.dot_dimension_numbers<[1], [0], [0], [1], [0, 0, 1, 1], [], []>} : vector<128x192xbf16>, vector<192x80xbf16>, vector<128x80xf32> -> vector<128x80xf32>
    %c0_43 = arith.constant 0 : index
    %c0_44 = arith.constant 0 : index
    %c1_45 = arith.constant 1 : index
    %c0_46 = arith.constant 0 : index
    %33 = vector.load %arg14[%c0_43, %c0_44, %c1_45, %c0_46] : memref<2x8x10x192xf32, #tpu.memory_space<vmem>>, vector<2x8x8x192xf32>
    %34 = vector.shape_cast %33 : vector<2x8x8x192xf32> to vector<128x192xf32>
    %35 = arith.truncf %34 : vector<128x192xf32> to vector<128x192xbf16>
    %c1_47 = arith.constant 1 : index
    %c0_48 = arith.constant 0 : index
    %c0_49 = arith.constant 0 : index
    %36 = vector.load %arg5[%c1_47, %c0_48, %c0_49] : memref<3x192x80xbf16, #tpu.memory_space<vmem>>, vector<1x192x80xbf16>
    %37 = vector.shape_cast %36 : vector<1x192x80xbf16> to vector<192x80xbf16>
    %cst_50 = arith.constant dense<0.000000e+00> : vector<128x80xf32>
    %38 = tpu.matmul %35, %37, %cst_50 {dimension_numbers = #tpu.dot_dimension_numbers<[1], [0], [0], [1], [0, 0, 1, 1], [], []>} : vector<128x192xbf16>, vector<192x80xbf16>, vector<128x80xf32> -> vector<128x80xf32>
    %39 = arith.addf %32, %38 : vector<128x80xf32>
    %c0_51 = arith.constant 0 : index
    %c0_52 = arith.constant 0 : index
    %c2 = arith.constant 2 : index
    %c0_53 = arith.constant 0 : index
    %40 = vector.load %arg14[%c0_51, %c0_52, %c2, %c0_53] : memref<2x8x10x192xf32, #tpu.memory_space<vmem>>, vector<2x8x8x192xf32>
    %41 = vector.shape_cast %40 : vector<2x8x8x192xf32> to vector<128x192xf32>
    %42 = arith.truncf %41 : vector<128x192xf32> to vector<128x192xbf16>
    %c2_54 = arith.constant 2 : index
    %c0_55 = arith.constant 0 : index
    %c0_56 = arith.constant 0 : index
    %43 = vector.load %arg5[%c2_54, %c0_55, %c0_56] : memref<3x192x80xbf16, #tpu.memory_space<vmem>>, vector<1x192x80xbf16>
    %44 = vector.shape_cast %43 : vector<1x192x80xbf16> to vector<192x80xbf16>
    %cst_57 = arith.constant dense<0.000000e+00> : vector<128x80xf32>
    %45 = tpu.matmul %42, %44, %cst_57 {dimension_numbers = #tpu.dot_dimension_numbers<[1], [0], [0], [1], [0, 0, 1, 1], [], []>} : vector<128x192xbf16>, vector<192x80xbf16>, vector<128x80xf32> -> vector<128x80xf32>
    %46 = arith.addf %39, %45 : vector<128x80xf32>
    %c0_58 = arith.constant 0 : index
    %c0_59 = arith.constant 0 : index
    %47 = vector.load %arg6[%c0_58, %c0_59] : memref<1x80xf32, #tpu.memory_space<vmem>>, vector<1x80xf32>
    %48 = vector.broadcast %47 : vector<1x80xf32> to vector<128x80xf32>
    %49 = arith.mulf %46, %48 : vector<128x80xf32>
    %c0_60 = arith.constant 0 : index
    %c0_61 = arith.constant 0 : index
    %50 = vector.load %arg7[%c0_60, %c0_61] : memref<1x80xf32, #tpu.memory_space<vmem>>, vector<1x80xf32>
    %51 = vector.broadcast %50 : vector<1x80xf32> to vector<128x80xf32>
    %52 = arith.addf %49, %51 : vector<128x80xf32>
    %cst_62 = arith.constant 0.000000e+00 : f32
    %53 = vector.broadcast %cst_62 : f32 to vector<128x80xf32>
    %54 = arith.maximumf %52, %53 : vector<128x80xf32>
    %55 = vector.extract_strided_slice %54 {offsets = [0, 0], sizes = [128, 32], strides = [1, 1]} : vector<128x80xf32> to vector<128x32xf32>
    %56 = vector.extract_strided_slice %54 {offsets = [0, 32], sizes = [128, 48], strides = [1, 1]} : vector<128x80xf32> to vector<128x48xf32>
    %57 = vector.shape_cast %56 : vector<128x48xf32> to vector<2x8x8x48xf32>
    %cst_63 = arith.constant 0.000000e+00 : f32
    %58 = vector.broadcast %cst_63 : f32 to vector<2x8x1x144xf32>
    %c0_64 = arith.constant 0 : index
    %c0_65 = arith.constant 0 : index
    %c0_66 = arith.constant 0 : index
    %c0_67 = arith.constant 0 : index
    %59 = vector.load %arg15[%c0_64, %c0_65, %c0_66, %c0_67] : memref<2x8x10x144xf32, #tpu.memory_space<vmem>>, vector<2x8x1x144xf32>
    tpu.vector_store %arg15[%c0_64, %c0_65, %c0_66, %c0_67], %58 {strides = array<i32>} : memref<2x8x10x144xf32, #tpu.memory_space<vmem>>, vector<2x8x1x144xf32>,
    %c0_68 = arith.constant 0 : index
    %c0_69 = arith.constant 0 : index
    %c9_70 = arith.constant 9 : index
    %c0_71 = arith.constant 0 : index
    %60 = vector.load %arg15[%c0_68, %c0_69, %c9_70, %c0_71] : memref<2x8x10x144xf32, #tpu.memory_space<vmem>>, vector<2x8x1x144xf32>
    tpu.vector_store %arg15[%c0_68, %c0_69, %c9_70, %c0_71], %58 {strides = array<i32>} : memref<2x8x10x144xf32, #tpu.memory_space<vmem>>, vector<2x8x1x144xf32>,
    %cst_72 = arith.constant 0.000000e+00 : f32
    %61 = vector.broadcast %cst_72 : f32 to vector<2x1x8x48xf32>
    %c0_73 = arith.constant 0 : index
    %c0_74 = arith.constant 0 : index
    %c1_75 = arith.constant 1 : index
    %c0_76 = arith.constant 0 : index
    %62 = vector.load %arg15[%c0_73, %c0_74, %c1_75, %c0_76] : memref<2x8x10x144xf32, #tpu.memory_space<vmem>>, vector<2x1x8x48xf32>
    tpu.vector_store %arg15[%c0_73, %c0_74, %c1_75, %c0_76], %61 {strides = array<i32>} : memref<2x8x10x144xf32, #tpu.memory_space<vmem>>, vector<2x1x8x48xf32>,
    %63 = vector.extract_strided_slice %57 {offsets = [0, 0, 0, 0], sizes = [2, 7, 8, 48], strides = [1, 1, 1, 1]} : vector<2x8x8x48xf32> to vector<2x7x8x48xf32>
    %c0_77 = arith.constant 0 : index
    %c1_78 = arith.constant 1 : index
    %c1_79 = arith.constant 1 : index
    %c0_80 = arith.constant 0 : index
    %64 = vector.load %arg15[%c0_77, %c1_78, %c1_79, %c0_80] : memref<2x8x10x144xf32, #tpu.memory_space<vmem>>, vector<2x7x8x48xf32>
    tpu.vector_store %arg15[%c0_77, %c1_78, %c1_79, %c0_80], %63 {strides = array<i32>} : memref<2x8x10x144xf32, #tpu.memory_space<vmem>>, vector<2x7x8x48xf32>,
    %c0_81 = arith.constant 0 : index
    %c0_82 = arith.constant 0 : index
    %c1_83 = arith.constant 1 : index
    %c48 = arith.constant 48 : index
    %65 = vector.load %arg15[%c0_81, %c0_82, %c1_83, %c48] : memref<2x8x10x144xf32, #tpu.memory_space<vmem>>, vector<2x8x8x48xf32>
    tpu.vector_store %arg15[%c0_81, %c0_82, %c1_83, %c48], %57 {strides = array<i32>} : memref<2x8x10x144xf32, #tpu.memory_space<vmem>>, vector<2x8x8x48xf32>,
    %66 = vector.extract_strided_slice %57 {offsets = [0, 1, 0, 0], sizes = [2, 7, 8, 48], strides = [1, 1, 1, 1]} : vector<2x8x8x48xf32> to vector<2x7x8x48xf32>
    %c0_84 = arith.constant 0 : index
    %c0_85 = arith.constant 0 : index
    %c1_86 = arith.constant 1 : index
    %c96 = arith.constant 96 : index
    %67 = vector.load %arg15[%c0_84, %c0_85, %c1_86, %c96] : memref<2x8x10x144xf32, #tpu.memory_space<vmem>>, vector<2x7x8x48xf32>
    tpu.vector_store %arg15[%c0_84, %c0_85, %c1_86, %c96], %66 {strides = array<i32>} : memref<2x8x10x144xf32, #tpu.memory_space<vmem>>, vector<2x7x8x48xf32>,
    %c0_87 = arith.constant 0 : index
    %c7_88 = arith.constant 7 : index
    %c1_89 = arith.constant 1 : index
    %c96_90 = arith.constant 96 : index
    %68 = vector.load %arg15[%c0_87, %c7_88, %c1_89, %c96_90] : memref<2x8x10x144xf32, #tpu.memory_space<vmem>>, vector<2x1x8x48xf32>
    tpu.vector_store %arg15[%c0_87, %c7_88, %c1_89, %c96_90], %61 {strides = array<i32>} : memref<2x8x10x144xf32, #tpu.memory_space<vmem>>, vector<2x1x8x48xf32>,
    %c0_91 = arith.constant 0 : index
    %c0_92 = arith.constant 0 : index
    %c0_93 = arith.constant 0 : index
    %c0_94 = arith.constant 0 : index
    %69 = vector.load %arg15[%c0_91, %c0_92, %c0_93, %c0_94] : memref<2x8x10x144xf32, #tpu.memory_space<vmem>>, vector<2x8x8x144xf32>
    %70 = vector.shape_cast %69 : vector<2x8x8x144xf32> to vector<128x144xf32>
    %71 = arith.truncf %70 : vector<128x144xf32> to vector<128x144xbf16>
    %c0_95 = arith.constant 0 : index
    %c0_96 = arith.constant 0 : index
    %c0_97 = arith.constant 0 : index
    %72 = vector.load %arg8[%c0_95, %c0_96, %c0_97] : memref<3x144x64xbf16, #tpu.memory_space<vmem>>, vector<1x144x64xbf16>
    %73 = vector.shape_cast %72 : vector<1x144x64xbf16> to vector<144x64xbf16>
    %cst_98 = arith.constant dense<0.000000e+00> : vector<128x64xf32>
    %74 = tpu.matmul %71, %73, %cst_98 {dimension_numbers = #tpu.dot_dimension_numbers<[1], [0], [0], [1], [0, 0, 1, 1], [], []>} : vector<128x144xbf16>, vector<144x64xbf16>, vector<128x64xf32> -> vector<128x64xf32>
    %c0_99 = arith.constant 0 : index
    %c0_100 = arith.constant 0 : index
    %c1_101 = arith.constant 1 : index
    %c0_102 = arith.constant 0 : index
    %75 = vector.load %arg15[%c0_99, %c0_100, %c1_101, %c0_102] : memref<2x8x10x144xf32, #tpu.memory_space<vmem>>, vector<2x8x8x144xf32>
    %76 = vector.shape_cast %75 : vector<2x8x8x144xf32> to vector<128x144xf32>
    %77 = arith.truncf %76 : vector<128x144xf32> to vector<128x144xbf16>
    %c1_103 = arith.constant 1 : index
    %c0_104 = arith.constant 0 : index
    %c0_105 = arith.constant 0 : index
    %78 = vector.load %arg8[%c1_103, %c0_104, %c0_105] : memref<3x144x64xbf16, #tpu.memory_space<vmem>>, vector<1x144x64xbf16>
    %79 = vector.shape_cast %78 : vector<1x144x64xbf16> to vector<144x64xbf16>
    %cst_106 = arith.constant dense<0.000000e+00> : vector<128x64xf32>
    %80 = tpu.matmul %77, %79, %cst_106 {dimension_numbers = #tpu.dot_dimension_numbers<[1], [0], [0], [1], [0, 0, 1, 1], [], []>} : vector<128x144xbf16>, vector<144x64xbf16>, vector<128x64xf32> -> vector<128x64xf32>
    %81 = arith.addf %74, %80 : vector<128x64xf32>
    %c0_107 = arith.constant 0 : index
    %c0_108 = arith.constant 0 : index
    %c2_109 = arith.constant 2 : index
    %c0_110 = arith.constant 0 : index
    %82 = vector.load %arg15[%c0_107, %c0_108, %c2_109, %c0_110] : memref<2x8x10x144xf32, #tpu.memory_space<vmem>>, vector<2x8x8x144xf32>
    %83 = vector.shape_cast %82 : vector<2x8x8x144xf32> to vector<128x144xf32>
    %84 = arith.truncf %83 : vector<128x144xf32> to vector<128x144xbf16>
    %c2_111 = arith.constant 2 : index
    %c0_112 = arith.constant 0 : index
    %c0_113 = arith.constant 0 : index
    %85 = vector.load %arg8[%c2_111, %c0_112, %c0_113] : memref<3x144x64xbf16, #tpu.memory_space<vmem>>, vector<1x144x64xbf16>
    %86 = vector.shape_cast %85 : vector<1x144x64xbf16> to vector<144x64xbf16>
    %cst_114 = arith.constant dense<0.000000e+00> : vector<128x64xf32>
    %87 = tpu.matmul %84, %86, %cst_114 {dimension_numbers = #tpu.dot_dimension_numbers<[1], [0], [0], [1], [0, 0, 1, 1], [], []>} : vector<128x144xbf16>, vector<144x64xbf16>, vector<128x64xf32> -> vector<128x64xf32>
    %88 = arith.addf %81, %87 : vector<128x64xf32>
    %c0_115 = arith.constant 0 : index
    %c0_116 = arith.constant 0 : index
    %89 = vector.load %arg9[%c0_115, %c0_116] : memref<1x64xf32, #tpu.memory_space<vmem>>, vector<1x64xf32>
    %90 = vector.broadcast %89 : vector<1x64xf32> to vector<128x64xf32>
    %91 = arith.mulf %88, %90 : vector<128x64xf32>
    %c0_117 = arith.constant 0 : index
    %c0_118 = arith.constant 0 : index
    %92 = vector.load %arg10[%c0_117, %c0_118] : memref<1x64xf32, #tpu.memory_space<vmem>>, vector<1x64xf32>
    %93 = vector.broadcast %92 : vector<1x64xf32> to vector<128x64xf32>
    %94 = arith.addf %91, %93 : vector<128x64xf32>
    %cst_119 = arith.constant 0.000000e+00 : f32
    %95 = vector.broadcast %cst_119 : f32 to vector<128x64xf32>
    %96 = arith.maximumf %94, %95 : vector<128x64xf32>
    %97 = tpu.concatenate %13, %55, %96 in 1 : vector<128x32xf32>, vector<128x32xf32>, vector<128x64xf32> -> vector<128x128xf32>
    %98 = arith.truncf %97 : vector<128x128xf32> to vector<128x128xbf16>
    %c0_120 = arith.constant 0 : index
    %c0_121 = arith.constant 0 : index
    %99 = vector.load %arg11[%c0_120, %c0_121] : memref<128x320xbf16, #tpu.memory_space<vmem>>, vector<128x320xbf16>
    %cst_122 = arith.constant dense<0.000000e+00> : vector<128x320xf32>
    %100 = tpu.matmul %98, %99, %cst_122 {dimension_numbers = #tpu.dot_dimension_numbers<[1], [0], [0], [1], [0, 0, 1, 1], [], []>} : vector<128x128xbf16>, vector<128x320xbf16>, vector<128x320xf32> -> vector<128x320xf32>
    %c0_123 = arith.constant 0 : index
    %c0_124 = arith.constant 0 : index
    %101 = vector.load %arg12[%c0_123, %c0_124] : memref<1x320xf32, #tpu.memory_space<vmem>>, vector<1x320xf32>
    %102 = vector.broadcast %101 : vector<1x320xf32> to vector<128x320xf32>
    %103 = arith.addf %100, %102 : vector<128x320xf32>
    %c0_125 = arith.constant 0 : index
    %c0_126 = arith.constant 0 : index
    %c0_127 = arith.constant 0 : index
    %c0_128 = arith.constant 0 : index
    %104 = vector.load %arg1[%c0_125, %c0_126, %c0_127, %c0_128] : memref<2x8x8x320xf32, #tpu.memory_space<vmem>>, vector<2x8x8x320xf32>
    %105 = vector.shape_cast %104 : vector<2x8x8x320xf32> to vector<128x320xf32>
    %106 = arith.addf %103, %105 : vector<128x320xf32>
    %cst_129 = arith.constant 0.000000e+00 : f32
    %107 = vector.broadcast %cst_129 : f32 to vector<128x320xf32>
    %108 = arith.maximumf %106, %107 : vector<128x320xf32>
    %109 = vector.shape_cast %108 : vector<128x320xf32> to vector<2x8x8x320xf32>
    %c0_130 = arith.constant 0 : index
    %c0_131 = arith.constant 0 : index
    %c0_132 = arith.constant 0 : index
    %c0_133 = arith.constant 0 : index
    %110 = vector.load %arg13[%c0_130, %c0_131, %c0_132, %c0_133] : memref<2x8x8x320xf32, #tpu.memory_space<vmem>>, vector<2x8x8x320xf32>
    tpu.vector_store %arg13[%c0_130, %c0_131, %c0_132, %c0_133], %109 {strides = array<i32>} : memref<2x8x8x320xf32, #tpu.memory_space<vmem>>, vector<2x8x8x320xf32>,
    return
  }
  func.func @transform_0(%arg0: i32) -> (i32, i32, i32, i32) {
    %c0_i32 = arith.constant 0 : i32
    %c0_i32_0 = arith.constant 0 : i32
    %c0_i32_1 = arith.constant 0 : i32
    %c0_i32_2 = arith.constant 0 : i32
    return %arg0, %c0_i32, %c0_i32_0, %c0_i32_1 : i32, i32, i32, i32
  }
  func.func @transform_1(%arg0: i32) -> (i32, i32) {
    %c0_i32 = arith.constant 0 : i32
    %c0_i32_0 = arith.constant 0 : i32
    %c0_i32_1 = arith.constant 0 : i32
    return %c0_i32, %c0_i32_0 : i32, i32
  }
  func.func @transform_2(%arg0: i32) -> (i32, i32) {
    %c0_i32 = arith.constant 0 : i32
    %c0_i32_0 = arith.constant 0 : i32
    %c0_i32_1 = arith.constant 0 : i32
    return %c0_i32, %c0_i32_0 : i32, i32
  }
  func.func @transform_3(%arg0: i32) -> (i32, i32) {
    %c0_i32 = arith.constant 0 : i32
    %c0_i32_0 = arith.constant 0 : i32
    %c0_i32_1 = arith.constant 0 : i32
    return %c0_i32, %c0_i32_0 : i32, i32
  }
  func.func @transform_4(%arg0: i32) -> (i32, i32, i32) {
    %c0_i32 = arith.constant 0 : i32
    %c0_i32_0 = arith.constant 0 : i32
    %c0_i32_1 = arith.constant 0 : i32
    %c0_i32_2 = arith.constant 0 : i32
    return %c0_i32, %c0_i32_0, %c0_i32_1 : i32, i32, i32
  }
  func.func @transform_5(%arg0: i32) -> (i32, i32) {
    %c0_i32 = arith.constant 0 : i32
    %c0_i32_0 = arith.constant 0 : i32
    %c0_i32_1 = arith.constant 0 : i32
    return %c0_i32, %c0_i32_0 : i32, i32
  }
  func.func @transform_6(%arg0: i32) -> (i32, i32) {
    %c0_i32 = arith.constant 0 : i32
    %c0_i32_0 = arith.constant 0 : i32
    %c0_i32_1 = arith.constant 0 : i32
    return %c0_i32, %c0_i32_0 : i32, i32
  }
  func.func @transform_7(%arg0: i32) -> (i32, i32, i32) {
    %c0_i32 = arith.constant 0 : i32
    %c0_i32_0 = arith.constant 0 : i32
    %c0_i32_1 = arith.constant 0 : i32
    %c0_i32_2 = arith.constant 0 : i32
    return %c0_i32, %c0_i32_0, %c0_i32_1 : i32, i32, i32
  }
  func.func @transform_8(%arg0: i32) -> (i32, i32) {
    %c0_i32 = arith.constant 0 : i32
    %c0_i32_0 = arith.constant 0 : i32
    %c0_i32_1 = arith.constant 0 : i32
    return %c0_i32, %c0_i32_0 : i32, i32
  }
  func.func @transform_9(%arg0: i32) -> (i32, i32) {
    %c0_i32 = arith.constant 0 : i32
    %c0_i32_0 = arith.constant 0 : i32
    %c0_i32_1 = arith.constant 0 : i32
    return %c0_i32, %c0_i32_0 : i32, i32
  }
  func.func @transform_10(%arg0: i32) -> (i32, i32) {
    %c0_i32 = arith.constant 0 : i32
    %c0_i32_0 = arith.constant 0 : i32
    %c0_i32_1 = arith.constant 0 : i32
    return %c0_i32, %c0_i32_0 : i32, i32
  }
  func.func @transform_11(%arg0: i32) -> (i32, i32) {
    %c0_i32 = arith.constant 0 : i32
    %c0_i32_0 = arith.constant 0 : i32
    %c0_i32_1 = arith.constant 0 : i32
    return %c0_i32, %c0_i32_0 : i32, i32
  }
  func.func @transform_12(%arg0: i32) -> (i32, i32, i32, i32) {
    %c0_i32 = arith.constant 0 : i32
    %c0_i32_0 = arith.constant 0 : i32
    %c0_i32_1 = arith.constant 0 : i32
    %c0_i32_2 = arith.constant 0 : i32
    return %arg0, %c0_i32, %c0_i32_0, %c0_i32_1 : i32, i32, i32, i32
  }
}

</mosaic_0001>

<bundles_post_ra>
// kernel: block35_forward.1
= control target key start
LH: loop header
LB: loop body
LE: loop exit
PB: predicated region body
PF: predicated region fallthrough
CT: control target
= control target key end

     0   :  { %vm275_vm0 = vcmask 523264   ;;  %s7218_s0 = inlined_call_operand.vmem [shape: f32[2,8,8,320], index: 0, kind: input, shape index: {}]   ;;  %s7219_s1 = inlined_call_operand.vmem [shape: bf16[320,96], index: 1, kind: input, shape index: {}]   ;;  %s7220_s2 = inlined_call_operand.vmem [shape: f32[1,96], index: 2, kind: input, shape index: {}]   ;;  %s7221_s3 = inlined_call_operand.vmem [shape: f32[1,96], index: 3, kind: input, shape index: {}]   ;;  %s7222_s4 = inlined_call_operand.vmem [shape: bf16[3,192,80], index: 4, kind: input, shape index: {}]   ;;  %s7223_s5 = inlined_call_operand.vmem [shape: f32[1,80], index: 5, kind: input, shape index: {}]   ;;  %s7224_s6 = inlined_call_operand.vmem [shape: f32[1,80], index: 6, kind: input, shape index: {}]   ;;  %s7225_s7 = inlined_call_operand.vmem [shape: bf16[3,144,64], index: 7, kind: input, shape index: {}]   ;;  %s7226_s8 = inlined_call_operand.vmem [shape: f32[1,64], index: 8, kind: input, shape index: {}]   ;;  %s7227_s9 = inlined_call_operand.vmem [shape: f32[1,64], index: 9, kind: input, shape index: {}]   ;;  %s7228_s10 = inlined_call_operand.vmem [shape: bf16[128,320], index: 10, kind: input, shape index: {}]   ;;  %s7229_s11 = inlined_call_operand.vmem [shape: f32[1,320], index: 11, kind: input, shape index: {}]   ;;  %s7230_s12 = inlined_call_operand.hbm [shape: f32[2,8,8,320], index: 12, kind: output, shape index: {}]  }
   0x1   :  { %v5283_v0 = vld [vmem:[%s7219_s1 + $0x40] sm:$0xff]   ;;  %v5285_v2 = vld [vmem:[%s7219_s1 + $0x48] sm:$0xff]   ;;  %v5287_v4 = vld [vmem:[%s7219_s1 + $0x50] sm:$0xff]  }
   0x2   :  { %v5284_v1 = vld [vmem:[%s7219_s1] sm:$0xff]   ;;  %4878 = vmatprep.subr.bf16.mxu0 %v5283_v0  ;;  %v5286_v3 = vld [vmem:[%s7219_s1 + $0x8] sm:$0xff]   ;;  %v5288_v5 = vld [vmem:[%s7219_s1 + $0x10] sm:$0xff]  }
   0x3   :  { %4879 = vmatpush3.bf16.msra.mxu0 %v5284_v1  ;;  %v5289_v6 = vld [vmem:[%s7219_s1 + $0x58] sm:$0xff]   ;;  %v5291_v7 = vld [vmem:[%s7219_s1 + $0x80] sm:$0xff]   ;;  %v5294_v9 = vld [vmem:[%s7219_s1 + $0x88] sm:$0xff]  }
   0x4   :  { %4880 = vmatprep.subr.bf16.mxu0 %v5285_v2  ;;  %v5290_v8 = vld [vmem:[%s7219_s1 + $0x18] sm:$0xff]   ;;  %4970 = vmatprep.subr.bf16.mxu1 %v5291_v7  ;;  %v5292_v10 = vld [vmem:[%s7219_s1 + $0x60] sm:$0xff]   ;;  %v5297_v11 = vld [vmem:[%s7219_s1 + $0x90] sm:$0xff]  }
   0x5   :  { %4971 = vmatpush3.bf16.msra.mxu1 %v5291_v7  ;;  %v5293_v12 = vld [vmem:[%s7219_s1 + $0x20] sm:$0xff]   ;;  %v5295_v13 = vld [vmem:[%s7219_s1 + $0x68] sm:$0xff]   ;;  %v5300_v14 = vld [vmem:[%s7219_s1 + $0x98] sm:$0xff]  }
   0x6   :  { %4972 = vmatprep.subr.bf16.mxu1 %v5294_v9  ;;  %v5296_v15 = vld [vmem:[%s7219_s1 + $0x28] sm:$0xff]   ;;  %v5298_v16 = vld [vmem:[%s7219_s1 + $0x70] sm:$0xff]   ;;  %v47_v21 = vld [vmem:[%s7218_s0 + $0x20] sm:$0xff] }
   0x7   :  { %4881 = vmatpush3.bf16.msra.mxu0 %v5286_v3  ;;  %v45_v17 = vld [vmem:[%s7218_s0 + $0x10] sm:$0xff]  ;;  %v48_v18 = vld [vmem:[%s7218_s0 + $0x28] sm:$0xff]  ;;  %v51_v22 = vld [vmem:[%s7218_s0 + $0x40] sm:$0xff] }
   0x8   :  { %4882 = vmatprep.subr.bf16.mxu0 %v5287_v4  ;;  %v44_v19 = vld [vmem:[%s7218_s0 + $0x8] sm:$0xff]  ;;  %v93_v20 = vpack.c.bf16 %v48_v18, %v45_v17  ;;  %v54_v23 = vld [vmem:[%s7218_s0 + $0x58] sm:$0xff]  ;;  %v5299_v26 = vld [vmem:[%s7219_s1 + $0x30] sm:$0xff]  }
   0x9   :  { %4973 = vmatpush3.bf16.msra.mxu1 %v5294_v9  ;;  %v92_v24 = vpack.c.bf16 %v47_v21, %v44_v19  ;;  %v96_v25 = vpack.c.bf16 %v54_v23, %v51_v22  ;;  %v5301_v27 = vld [vmem:[%s7219_s1 + $0x78] sm:$0xff]   ;;  %v57_v28 = vld [vmem:[%s7218_s0 + $0x70] sm:$0xff]  ;;  %v60_v29 = vld [vmem:[%s7218_s0 + $0x88] sm:$0xff] }
   0xa   :  { %4974 = vmatprep.subr.bf16.mxu1 %v5297_v11  ;;  %4978 = vmatprep.mubr.msk.bf16.mxu1 %vm275_vm0, %v93_v20  ;;  %v5302_v30 = vld [vmem:[%s7219_s1 + $0x38] sm:$0xff]   ;;  %v43_v31 = vld [vmem:[%s7218_s0] sm:$0xff]  ;;  %v99_v32 = vpack.c.bf16 %v60_v29, %v57_v28  ;;  %v53_v37 = vld [vmem:[%s7218_s0 + $0x50] sm:$0xff] }
   0xb   :  { %4883 = vmatpush3.bf16.msra.mxu0 %v5288_v5  ;;  %332 = vmatprep.mubr.bf16.mxu0 %v92_v24  ;;  %v46_v33 = vld [vmem:[%s7218_s0 + $0x18] sm:$0xff]  ;;  %v63_v34 = vld [vmem:[%s7218_s0 + $0xa0] sm:$0xff]  ;;  %v69_v38 = vld [vmem:[%s7218_s0 + $0xd0] sm:$0xff] }
   0xc   :  { %4884 = vmatprep.subr.bf16.mxu0 %v5289_v6  ;;  %v66_v35 = vld [vmem:[%s7218_s0 + $0xb8] sm:$0xff]  ;;  %v72_v39 = vld [vmem:[%s7218_s0 + $0xe8] sm:$0xff]  ;;  %v91_v40 = vpack.c.bf16 %v46_v33, %v43_v31  ;;  %v49_v44 = vld [vmem:[%s7218_s0 + $0x30] sm:$0xff] }
   0xd   :  { %4975 = vmatpush3.bf16.msra.mxu1 %v5297_v11  ;;  %v50_v36 = vld [vmem:[%s7218_s0 + $0x38] sm:$0xff]  ;;  %v102_v41 = vpack.c.bf16 %v66_v35, %v63_v34  ;;  %v105_v43 = vpack.c.bf16 %v72_v39, %v69_v38  ;;  %v52_v45 = vld [vmem:[%s7218_s0 + $0x48] sm:$0xff]  ;;  %v59_v47 = vld [vmem:[%s7218_s0 + $0x80] sm:$0xff] }
   0xe   :  { %4976 = vmatprep.subr.bf16.mxu1 %v5300_v14  ;;  %v95_v42 = vpack.c.bf16 %v53_v37, %v50_v36  ;;  %v56_v46 = vld [vmem:[%s7218_s0 + $0x68] sm:$0xff]  ;;  %v75_v48 = vld [vmem:[%s7218_s0 + $0x100] sm:$0xff]  ;;  %v78_v49 = vld [vmem:[%s7218_s0 + $0x118] sm:$0xff]  ;;  %v94_v52 = vpack.c.bf16 %v52_v45, %v49_v44 }
   0xf   :  { %4885 = vmatpush3.bf16.msra.mxu0 %v5290_v8  ;;  %v81_v50 = vld [vmem:[%s7218_s0 + $0x130] sm:$0xff]  ;;  %v84_v51 = vld [vmem:[%s7218_s0 + $0x148] sm:$0xff]  ;;  %v108_v53 = vpack.c.bf16 %v78_v49, %v75_v48  ;;  %v98_v54 = vpack.c.bf16 %v59_v47, %v56_v46  ;;  %v55_v56 = vld [vmem:[%s7218_s0 + $0x60] sm:$0xff] }
  0x10   :  { %4886 = vmatprep.subr.bf16.mxu0 %v5292_v10  ;;  %v111_v55 = vpack.c.bf16 %v84_v51, %v81_v50  ;;  %v58_v57 = vld [vmem:[%s7218_s0 + $0x78] sm:$0xff]  ;;  %v87_v58 = vld [vmem:[%s7218_s0 + $0x160] sm:$0xff]  ;;  %v65_v61 = vld [vmem:[%s7218_s0 + $0xb0] sm:$0xff] }
  0x11   :  { %4977 = vmatpush3.bf16.msra.mxu1 %v5300_v14  ;;  %v90_v59 = vld [vmem:[%s7218_s0 + $0x178] sm:$0xff]  ;;  %v97_v62 = vpack.c.bf16 %v58_v57, %v55_v56  ;;  %v61_v1 = vld [vmem:[%s7218_s0 + $0x90] sm:$0xff]  ;;  %v64_v2 = vld [vmem:[%s7218_s0 + $0xa8] sm:$0xff] }
  0x12   :  { %v62_v60 = vld [vmem:[%s7218_s0 + $0x98] sm:$0xff]  ;;  %v114_v63 = vpack.c.bf16 %v90_v59, %v87_v58  ;;  %v68_v3 = vld [vmem:[%s7218_s0 + $0xc8] sm:$0xff]  ;;  %v71_v4 = vld [vmem:[%s7218_s0 + $0xe0] sm:$0xff]  ;;  %v100_v5 = vpack.c.bf16 %v64_v2, %v61_v1 }
  0x13   :  { %4887 = vmatpush3.bf16.msra.mxu0 %v5293_v12  ;;  %v101_v0 = vpack.c.bf16 %v65_v61, %v62_v60  ;;  %v104_v6 = vpack.c.bf16 %v71_v4, %v68_v3  ;;  %v67_v7 = vld [vmem:[%s7218_s0 + $0xc0] sm:$0xff]  ;;  %v70_v8 = vld [vmem:[%s7218_s0 + $0xd8] sm:$0xff]  ;;  %v77_v10 = vld [vmem:[%s7218_s0 + $0x110] sm:$0xff] }
  0x14   :  { %4888 = vmatprep.subr.bf16.mxu0 %v5295_v13  ;;  %4979 = vmatmul.mubr.msk.bf16.vlgmr.msra.gmra.mrb[0].mxu1 %vm275_vm0, %v96_v25  ;;  %v74_v9 = vld [vmem:[%s7218_s0 + $0xf8] sm:$0xff]  ;;  %v103_v11 = vpack.c.bf16 %v70_v8, %v67_v7  ;;  %v73_v13 = vld [vmem:[%s7218_s0 + $0xf0] sm:$0xff]  ;;  %v76_v14 = vld [vmem:[%s7218_s0 + $0x108] sm:$0xff] }
  0x15   :  { %4982 = vmatprep.mubr.msk.bf16.mxu1 %vm275_vm0, %v99_v32  ;;  %v107_v12 = vpack.c.bf16 %v77_v10, %v74_v9  ;;  %v106_v17 = vpack.c.bf16 %v76_v14, %v73_v13  ;;  %v79_v19 = vld [vmem:[%s7218_s0 + $0x120] sm:$0xff]  ;;  %v82_v20 = vld [vmem:[%s7218_s0 + $0x138] sm:$0xff]  ;;  %v89_v22 = vld [vmem:[%s7218_s0 + $0x170] sm:$0xff] }
  0x16   :  { %v86_v21 = vld [vmem:[%s7218_s0 + $0x158] sm:$0xff]  ;;  %v109_v23 = vpack.c.bf16 %v82_v20, %v79_v19  ;;  %v85_v25 = vld [vmem:[%s7218_s0 + $0x150] sm:$0xff] }
  0x17   :  { %4889 = vmatpush3.bf16.msra.mxu0 %v5296_v15  ;;  %v80_v15 = vld [vmem:[%s7218_s0 + $0x128] sm:$0xff]  ;;  %v113_v24 = vpack.c.bf16 %v89_v22, %v86_v21 }
  0x18   :  { %4890 = vmatprep.subr.bf16.mxu0 %v5298_v16  ;;  %v83_v16 = vld [vmem:[%s7218_s0 + $0x140] sm:$0xff] }
  0x19   :  { %v110_v18 = vpack.c.bf16 %v83_v16, %v80_v15 }
  0x1b   :  { %4891 = vmatpush3.bf16.msra.mxu0 %v5299_v26  ;;  %v88_v26 = vld [vmem:[%s7218_s0 + $0x168] sm:$0xff] }
  0x1c   :  { %4892 = vmatprep.subr.bf16.mxu0 %v5301_v27  ;;  %4983 = vmatmul.mubr.msk.bf16.gmra.mrb[4].mxu1 %vm275_vm0, %v102_v41  ;;  %v112_v27 = vpack.c.bf16 %v88_v26, %v85_v25 }
  0x1d   :  { %4986 = vmatprep.mubr.msk.bf16.mxu1 %vm275_vm0, %v105_v43 }
  0x1f   :  { %4893 = vmatpush3.bf16.msra.mxu0 %v5302_v30 }
  0x22   :  { %333 = vmatmul.mubr.bf16.vlgmr.msra.gmra.mrb[0].mxu0 %v91_v40 }
  0x23   :  { %340 = vmatprep.mubr.bf16.mxu0 %v95_v42 }
  0x24   :  { %4987 = vmatmul.mubr.msk.bf16.gmra.mrb[8].mxu1 %vm275_vm0, %v108_v53 }
  0x25   :  { %4990 = vmatprep.mubr.msk.bf16.mxu1 %vm275_vm0, %v111_v55 }
  0x2a   :  { %341 = vmatmul.mubr.bf16.gmra.mrb[4].mxu0 %v94_v52 }
  0x2b   :  { %348 = vmatprep.mubr.bf16.mxu0 %v98_v54 }
  0x2c   :  { %4991 = vmatmul.mubr.msk.bf16.gmra.mrb[12].mxu1 %vm275_vm0, %v114_v63 }
  0x32   :  { %349 = vmatmul.mubr.bf16.gmra.mrb[8].mxu0 %v97_v62 }
  0x33   :  { %356 = vmatprep.mubr.bf16.mxu0 %v101_v0 }
  0x3a   :  { %357 = vmatmul.mubr.bf16.gmra.mrb[12].mxu0 %v100_v5 }
  0x3b   :  { %364 = vmatprep.mubr.bf16.mxu0 %v104_v6 }
  0x42   :  { %365 = vmatmul.mubr.bf16.gmra.mrb[16].mxu0 %v103_v11 }
  0x43   :  { %372 = vmatprep.mubr.bf16.mxu0 %v107_v12 }
  0x4a   :  { %373 = vmatmul.mubr.bf16.gmra.mrb[20].mxu0 %v106_v17 }
  0x4b   :  { %380 = vmatprep.mubr.bf16.mxu0 %v110_v18 }
  0x52   :  { %381 = vmatmul.mubr.bf16.gmra.mrb[24].mxu0 %v109_v23 }
  0x53   :  { %388 = vmatprep.mubr.bf16.mxu0 %v113_v24 }
  0x54   :  { %17 = vsyncpa [#allocation5], 0  ;;  %v556_v28 = vlaneseq  ;;  %vm655_vm1 = vcmask 523265   ;;  %vm657_vm2 = vcmask 516096   ;;  %v5422_v29 = vmov 0.0   ;;  %v5303_v31 = vld [vmem:[%s7222_s4 + $0x60] sm:$0xff]  }
  0x55   :  { %656 = vst.msk [vmem:[#allocation2] sm:$0xfe] %vm655_vm1, %v5422_v29  ;;  %659 = vst.msk [vmem:[#allocation2 + $0x100] sm:$0xfe] %vm655_vm1, %v5422_v29  ;;  %v5423_v32 = vmov 0   ;;  %v5304_v33 = vld [vmem:[%s7222_s4 + $0x68] sm:$0xff]  }
  0x56   :  { %658 = vst.msk [vmem:[#allocation2 + $0x10] sm:$0x1] %vm657_vm2, %v5422_v29  ;;  %660 = vst.msk [vmem:[#allocation2 + $0x110] sm:$0x1] %vm657_vm2, %v5422_v29  ;;  %vm5725_vm3 = vcmp.lt.s32.totalorder %v556_v28, 192  ;;  %1319 = vmatprep.subr.bf16.mxu1 %v5423_v32  ;;  %3013 = vmatprep.subr.bf16.mxu0 %v5423_v32  ;;  %v5305_v34 = vld [vmem:[%s7222_s4 + $0x70] sm:$0xff]  }
  0x57   :  { %849 = vst.msk [vmem:[#allocation2 + $0xe8] sm:$0xfe] %vm655_vm1, %v5422_v29  ;;  %851 = vst.msk [vmem:[#allocation2 + $0x1e8] sm:$0xfe] %vm655_vm1, %v5422_v29  ;;  %1320 = vmatpush1.bf16.msra.mxu1 %v5303_v31  ;;  %v5306_v35 = vld [vmem:[%s7222_s4 + $0x78] sm:$0xff]   ;;  %v5307_v36 = vld [vmem:[%s7222_s4 + $0x80] sm:$0xff]  }
  0x58   :  { %850 = vst.msk [vmem:[#allocation2 + $0xf8] sm:$0x1] %vm657_vm2, %v5422_v29  ;;  %852 = vst.msk [vmem:[#allocation2 + $0x1f8] sm:$0x1] %vm657_vm2, %v5422_v29  ;;  %1321 = vmatprep.subr.bf16.mxu1 %v5423_v32  ;;  %v5308_v37 = vld [vmem:[%s7222_s4 + $0x88] sm:$0xff]   ;;  %v5309_v38 = vld [vmem:[%s7222_s4 + $0x90] sm:$0xff]  }
  0x59   :  { %560 = vst.msk [vmem:[#allocation2] ss:$8 sm:$0x3] %vm5725_vm3, %v5422_v29  ;;  %563 = vst.msk [vmem:[#allocation2 + $0x20] ss:$8 sm:$0x3] %vm5725_vm3, %v5422_v29 }
  0x5a   :  { %389 = vmatmul.mubr.bf16.gmra.mrb[28].mxu0 %v112_v27  ;;  %566 = vst.msk [vmem:[#allocation2 + $0x40] ss:$8 sm:$0x3] %vm5725_vm3, %v5422_v29  ;;  %569 = vst.msk [vmem:[#allocation2 + $0x60] ss:$8 sm:$0x3] %vm5725_vm3, %v5422_v29 }
  0x5b   :  { %572 = vst.msk [vmem:[#allocation2 + $0x80] ss:$8 sm:$0x3] %vm5725_vm3, %v5422_v29  ;;  %575 = vst.msk [vmem:[#allocation2 + $0xa0] ss:$8 sm:$0x3] %vm5725_vm3, %v5422_v29  ;;  %1322 = vmatpush1.bf16.msra.mxu1 %v5304_v33 }
  0x5c   :  { %578 = vst.msk [vmem:[#allocation2 + $0xc0] ss:$8 sm:$0x3] %vm5725_vm3, %v5422_v29  ;;  %581 = vst.msk [vmem:[#allocation2 + $0xe0] ss:$8 sm:$0x3] %vm5725_vm3, %v5422_v29  ;;  %1323 = vmatprep.subr.bf16.mxu1 %v5423_v32 }
  0x5d   :  { %584 = vst.msk [vmem:[#allocation2 + $0x100] ss:$8 sm:$0x3] %vm5725_vm3, %v5422_v29  ;;  %587 = vst.msk [vmem:[#allocation2 + $0x120] ss:$8 sm:$0x3] %vm5725_vm3, %v5422_v29 }
  0x5e   :  { %590 = vst.msk [vmem:[#allocation2 + $0x140] ss:$8 sm:$0x3] %vm5725_vm3, %v5422_v29  ;;  %593 = vst.msk [vmem:[#allocation2 + $0x160] ss:$8 sm:$0x3] %vm5725_vm3, %v5422_v29 }
  0x5f   :  { %596 = vst.msk [vmem:[#allocation2 + $0x180] ss:$8 sm:$0x3] %vm5725_vm3, %v5422_v29  ;;  %599 = vst.msk [vmem:[#allocation2 + $0x1a0] ss:$8 sm:$0x3] %vm5725_vm3, %v5422_v29  ;;  %1324 = vmatpush1.bf16.msra.mxu1 %v5305_v34 }
  0x60   :  { %602 = vst.msk [vmem:[#allocation2 + $0x1c0] ss:$8 sm:$0x3] %vm5725_vm3, %v5422_v29  ;;  %605 = vst.msk [vmem:[#allocation2 + $0x1e0] ss:$8 sm:$0x3] %vm5725_vm3, %v5422_v29  ;;  %1325 = vmatprep.subr.bf16.mxu1 %v5423_v32 }
  0x61   :  { %608 = vst.msk [vmem:[#allocation2 + $0x11] ss:$8 sm:$0x3] %vm5725_vm3, %v5422_v29  ;;  %611 = vst.msk [vmem:[#allocation2 + $0x31] ss:$8 sm:$0x3] %vm5725_vm3, %v5422_v29 }
  0x62   :  { %614 = vst.msk [vmem:[#allocation2 + $0x51] ss:$8 sm:$0x3] %vm5725_vm3, %v5422_v29  ;;  %617 = vst.msk [vmem:[#allocation2 + $0x71] ss:$8 sm:$0x3] %vm5725_vm3, %v5422_v29 }
  0x63   :  { %620 = vst.msk [vmem:[#allocation2 + $0x91] ss:$8 sm:$0x3] %vm5725_vm3, %v5422_v29  ;;  %623 = vst.msk [vmem:[#allocation2 + $0xb1] ss:$8 sm:$0x3] %vm5725_vm3, %v5422_v29  ;;  %1326 = vmatpush1.bf16.msra.mxu1 %v5306_v35 }
  0x64   :  { %626 = vst.msk [vmem:[#allocation2 + $0xd1] ss:$8 sm:$0x3] %vm5725_vm3, %v5422_v29  ;;  %629 = vst.msk [vmem:[#allocation2 + $0xf1] ss:$8 sm:$0x3] %vm5725_vm3, %v5422_v29  ;;  %1327 = vmatprep.subr.bf16.mxu1 %v5423_v32 }
  0x65   :  { %632 = vst.msk [vmem:[#allocation2 + $0x111] ss:$8 sm:$0x3] %vm5725_vm3, %v5422_v29  ;;  %635 = vst.msk [vmem:[#allocation2 + $0x131] ss:$8 sm:$0x3] %vm5725_vm3, %v5422_v29 }
  0x66   :  { %638 = vst.msk [vmem:[#allocation2 + $0x151] ss:$8 sm:$0x3] %vm5725_vm3, %v5422_v29  ;;  %641 = vst.msk [vmem:[#allocation2 + $0x171] ss:$8 sm:$0x3] %vm5725_vm3, %v5422_v29 }
  0x67   :  { %644 = vst.msk [vmem:[#allocation2 + $0x191] ss:$8 sm:$0x3] %vm5725_vm3, %v5422_v29  ;;  %647 = vst.msk [vmem:[#allocation2 + $0x1b1] ss:$8 sm:$0x3] %vm5725_vm3, %v5422_v29  ;;  %1328 = vmatpush1.bf16.msra.mxu1 %v5307_v36 }
  0x68   :  { %650 = vst.msk [vmem:[#allocation2 + $0x1d1] ss:$8 sm:$0x3] %vm5725_vm3, %v5422_v29  ;;  %653 = vst.msk [vmem:[#allocation2 + $0x1f1] ss:$8 sm:$0x3] %vm5725_vm3, %v5422_v29  ;;  %1329 = vmatprep.subr.bf16.mxu1 %v5423_v32 }
  0x69   :  { %v5310_v39 = vld [vmem:[%s7222_s4 + $0x98] sm:$0xff]   ;;  %v5311_v48 = vld [vmem:[%s7222_s4 + $0xa0] sm:$0xff]   ;;  %v5312_v58 = vld [vmem:[%s7222_s4 + $0xa8] sm:$0xff]   ;;  %s5424_s15 = smov 64   ;;  %vm1053_vm4 = vcmask 1046528   ;;  %vm784_vm5 = vcmask 1048065  }
  0x6a   :  { %v5871_v52 = vld [vmem:[%s7220_s2] ss:$0 sm:$0xff]  ;;  %v5313_v3 = vld [vmem:[%s7222_s4 + $0xb0] sm:$0xff]   ;;  %v5314_v15 = vld [vmem:[%s7222_s4 + $0xb8] sm:$0xff]   ;;  %vm786_vm6 = vcmask 1040896   ;;  %vm1737_vm7 = vcmask 1045504  }
  0x6b   :  { %1330 = vmatpush1.bf16.msra.mxu1 %v5308_v37  ;;  %v5879_v57 = vld [vmem:[%s7221_s3] ss:$0 sm:$0xff]  ;;  %vm2275_vm8 = vcmask 392193   ;;  %vm2277_vm9 = vcmask 385024   ;;  %vm2510_vm10 = vcmask 130049   ;;  %vm2514_vm11 = vcmask 122880  }
  0x6c   :  { %1331 = vmatprep.subr.bf16.mxu1 %v5423_v32  ;;  %2276 = vst.msk [vmem:[#allocation3] sm:$0xfe] %vm2275_vm8, %v5422_v29  ;;  %2279 = vst.msk [vmem:[#allocation3 + $0x100] sm:$0xfe] %vm2275_vm8, %v5422_v29  ;;  %vm6311_vm12 = vcmp.lt.s32.totalorder %v556_v28, 144  ;;  %s5425_s21 = smov 16  }
  0x6d   :  { %2278 = vst.msk [vmem:[#allocation3 + $0x10] sm:$0x1] %vm2277_vm9, %v5422_v29  ;;  %2280 = vst.msk [vmem:[#allocation3 + $0x110] sm:$0x1] %vm2277_vm9, %v5422_v29  ;;  %s5426_s22 = smov 96   ;;  %s5427_s24 = smov 32  }
  0x6e   :  { %2570 = vst.msk [vmem:[#allocation3 + $0xe8] sm:$0xfe] %vm2510_vm10, %v5422_v29  ;;  %2574 = vst.msk [vmem:[#allocation3 + $0x1e8] sm:$0xfe] %vm2510_vm10, %v5422_v29  ;;  %vm2432_vm13 = vcmask 785793   ;;  %vm2434_vm14 = vcmask 778624  }
  0x6f   :  { %1332 = vmatpush1.bf16.msra.mxu1 %v5309_v38  ;;  %2572 = vst.msk [vmem:[#allocation3 + $0xf8] sm:$0x1] %vm2514_vm11, %v5422_v29  ;;  %2576 = vst.msk [vmem:[#allocation3 + $0x1f8] sm:$0x1] %vm2514_vm11, %v5422_v29  ;;  %vm2508_vm15 = vcmask 1048321   ;;  %vm3989_vm3 = vcmask 261120  }
  0x70   :  { %1333 = vmatprep.subr.bf16.mxu1 %v5423_v32  ;;  %2180 = vst.msk [vmem:[#allocation3] ss:$8 sm:$0x3] %vm6311_vm12, %v5422_v29  ;;  %2183 = vst.msk [vmem:[#allocation3 + $0x20] ss:$8 sm:$0x3] %vm6311_vm12, %v5422_v29 }
  0x71   :  { %2186 = vst.msk [vmem:[#allocation3 + $0x40] ss:$8 sm:$0x3] %vm6311_vm12, %v5422_v29  ;;  %2189 = vst.msk [vmem:[#allocation3 + $0x60] ss:$8 sm:$0x3] %vm6311_vm12, %v5422_v29 }
  0x72   :  { %2192 = vst.msk [vmem:[#allocation3 + $0x80] ss:$8 sm:$0x3] %vm6311_vm12, %v5422_v29  ;;  %2195 = vst.msk [vmem:[#allocation3 + $0xa0] ss:$8 sm:$0x3] %vm6311_vm12, %v5422_v29 }
  0x73   :  { %1334 = vmatpush1.bf16.msra.mxu1 %v5310_v39  ;;  %2198 = vst.msk [vmem:[#allocation3 + $0xc0] ss:$8 sm:$0x3] %vm6311_vm12, %v5422_v29  ;;  %2201 = vst.msk [vmem:[#allocation3 + $0xe0] ss:$8 sm:$0x3] %vm6311_vm12, %v5422_v29 }
  0x74   :  { %1335 = vmatprep.subr.bf16.mxu1 %v5423_v32  ;;  %2204 = vst.msk [vmem:[#allocation3 + $0x100] ss:$8 sm:$0x3] %vm6311_vm12, %v5422_v29  ;;  %2207 = vst.msk [vmem:[#allocation3 + $0x120] ss:$8 sm:$0x3] %vm6311_vm12, %v5422_v29 }
  0x75   :  { %2210 = vst.msk [vmem:[#allocation3 + $0x140] ss:$8 sm:$0x3] %vm6311_vm12, %v5422_v29  ;;  %2213 = vst.msk [vmem:[#allocation3 + $0x160] ss:$8 sm:$0x3] %vm6311_vm12, %v5422_v29 }
  0x76   :  { %2216 = vst.msk [vmem:[#allocation3 + $0x180] ss:$8 sm:$0x3] %vm6311_vm12, %v5422_v29  ;;  %2219 = vst.msk [vmem:[#allocation3 + $0x1a0] ss:$8 sm:$0x3] %vm6311_vm12, %v5422_v29 }
  0x77   :  { %1336 = vmatpush1.bf16.msra.mxu1 %v5311_v48  ;;  %2222 = vst.msk [vmem:[#allocation3 + $0x1c0] ss:$8 sm:$0x3] %vm6311_vm12, %v5422_v29  ;;  %2225 = vst.msk [vmem:[#allocation3 + $0x1e0] ss:$8 sm:$0x3] %vm6311_vm12, %v5422_v29 }
  0x78   :  { %1337 = vmatprep.subr.bf16.mxu1 %v5423_v32  ;;  %2228 = vst.msk [vmem:[#allocation3 + $0x11] ss:$8 sm:$0x3] %vm6311_vm12, %v5422_v29  ;;  %2231 = vst.msk [vmem:[#allocation3 + $0x31] ss:$8 sm:$0x3] %vm6311_vm12, %v5422_v29 }
  0x79   :  { %2234 = vst.msk [vmem:[#allocation3 + $0x51] ss:$8 sm:$0x3] %vm6311_vm12, %v5422_v29  ;;  %2237 = vst.msk [vmem:[#allocation3 + $0x71] ss:$8 sm:$0x3] %vm6311_vm12, %v5422_v29 }
  0x7a   :  { %2240 = vst.msk [vmem:[#allocation3 + $0x91] ss:$8 sm:$0x3] %vm6311_vm12, %v5422_v29  ;;  %2243 = vst.msk [vmem:[#allocation3 + $0xb1] ss:$8 sm:$0x3] %vm6311_vm12, %v5422_v29 }
  0x7b   :  { %1338 = vmatpush1.bf16.msra.mxu1 %v5312_v58  ;;  %2246 = vst.msk [vmem:[#allocation3 + $0xd1] ss:$8 sm:$0x3] %vm6311_vm12, %v5422_v29  ;;  %2249 = vst.msk [vmem:[#allocation3 + $0xf1] ss:$8 sm:$0x3] %vm6311_vm12, %v5422_v29 }
  0x7c   :  { %1339 = vmatprep.subr.bf16.mxu1 %v5423_v32  ;;  %2252 = vst.msk [vmem:[#allocation3 + $0x111] ss:$8 sm:$0x3] %vm6311_vm12, %v5422_v29  ;;  %2255 = vst.msk [vmem:[#allocation3 + $0x131] ss:$8 sm:$0x3] %vm6311_vm12, %v5422_v29 }
  0x7d   :  { %2258 = vst.msk [vmem:[#allocation3 + $0x151] ss:$8 sm:$0x3] %vm6311_vm12, %v5422_v29  ;;  %2261 = vst.msk [vmem:[#allocation3 + $0x171] ss:$8 sm:$0x3] %vm6311_vm12, %v5422_v29 }
  0x7e   :  { %2264 = vst.msk [vmem:[#allocation3 + $0x191] ss:$8 sm:$0x3] %vm6311_vm12, %v5422_v29  ;;  %2267 = vst.msk [vmem:[#allocation3 + $0x1b1] ss:$8 sm:$0x3] %vm6311_vm12, %v5422_v29 }
  0x7f   :  { %1340 = vmatpush1.bf16.msra.mxu1 %v5313_v3  ;;  %2270 = vst.msk [vmem:[#allocation3 + $0x1d1] ss:$8 sm:$0x3] %vm6311_vm12, %v5422_v29  ;;  %2273 = vst.msk [vmem:[#allocation3 + $0x1f1] ss:$8 sm:$0x3] %vm6311_vm12, %v5422_v29 }
  0x80   :  { %1341 = vmatprep.subr.bf16.mxu1 %v5423_v32  ;;  %s5428_s27 = smov [#allocation4]  }
  0x81   :  { %s4614_s28 = sshll.u32 %s5428_s27, 4  ;;  %s4615_s28 = int_to_ptr.vmem [resolvable:$true] %s4614_s28 }
  0x82   :  { %p5403_p1 = scmp.lt.s32.totalorder %s4615_s28, %s4615_s28 }
  0x83   :  { %1342 = vmatpush1.bf16.msra.mxu1 %v5314_v15 }
  0x84   :  { %1512 = vmatprep.subr.bf16.mxu1 %v5423_v32 }
  0xe7   :  { %v4980_v40 = vpop.f32.mrb[0].mxu1 }
  0xe8   :  { %v431_v41 = vpop.f32.mrb[1].mxu1 }
  0xe9   :  { %v4981_v42 = vpop.f32.mrb[2].mxu1 }
  0xea   :  { %v434_v43 = vpop.f32.mrb[3].mxu1 }
  0xef   :  { %v5859_v45 = vpop.f32.mrb[4].mxu1 }
  0xf0   :  { %v5861_v47 = vpop.f32.mrb[5].mxu1 }
  0xf1   :  { %v5866_v51 = vpop.f32.mrb[6].mxu1 }
  0xf2   :  { %v5873_v54 = vpop.f32.mrb[7].mxu1 }
  0xf5   :  { %v4894_v44 = vpop.f32.mrb[0].mxu0 }
  0xf6   :  { %v4895_v46 = vpop.f32.mrb[1].mxu0 }
  0xf7   :  { %v4896_v49 = vadd.f32 %v4895_v46, %v4894_v44  ;;  %v4897_v50 = vpop.f32.mrb[2].mxu0  ;;  %v5887_v0 = vpop.f32.mrb[8].mxu1 }
  0xf8   :  { %v4898_v53 = vpop.f32.mrb[3].mxu0  ;;  %v5890_v2 = vpop.f32.mrb[9].mxu1 }
  0xf9   :  { %v432_v55 = vadd.f32 %v4896_v49, %v431_v41  ;;  %v4899_v56 = vadd.f32 %v4898_v53, %v4897_v50  ;;  %v5896_v8 = vpop.f32.mrb[10].mxu1 }
  0xfa   :  { %v5898_v10 = vpop.f32.mrb[11].mxu1 }
  0xfb   :  { %v501_v59 = vmul.f32 %v5871_v52, %v432_v55  ;;  %v435_v60 = vadd.f32 %v4899_v56, %v434_v43 }
  0xfd   :  { %v502_v61 = vmul.f32 %v5871_v52, %v435_v60  ;;  %v4900_v62 = vpop.f32.mrb[4].mxu0  ;;  %v524_v63 = vadd.f32 %v5879_v57, %v501_v59 }
  0xfe   :  { %v4901_v1 = vpop.f32.mrb[5].mxu0 }
  0xff   :  { %v525_v4 = vadd.f32 %v5879_v57, %v502_v61  ;;  %v4902_v5 = vadd.f32 %v4901_v1, %v4900_v62  ;;  %v4903_v6 = vpop.f32.mrb[6].mxu0  ;;  %v540_v7 = vmax.f32 %v524_v63, 0.0  ;;  %v5916_v23 = vpop.f32.mrb[12].mxu1 }
 0x100   :  { %v4904_v9 = vpop.f32.mrb[7].mxu0  ;;  %v5919_v25 = vpop.f32.mrb[13].mxu1 }
 0x101   :  { %v541_v11 = vmax.f32 %v525_v4, 0.0  ;;  %v440_v12 = vadd.f32 %v4980_v40, %v4902_v5  ;;  %v4905_v13 = vadd.f32 %v4904_v9, %v4903_v6  ;;  %v675_v14 = vrot.slane %v540_v7, 7  ;;  %v5923_v33 = vpop.f32.mrb[14].mxu1 }
 0x102   :  { %v5925_v35 = vpop.f32.mrb[15].mxu1 }
 0x103   :  { %v676_v16 = vrot.slane %v541_v11, 7  ;;  %v503_v17 = vmul.f32 %v5871_v52, %v440_v12  ;;  %v443_v18 = vadd.f32 %v4981_v42, %v4905_v13  ;;  %736 = vrot.lane.b32.xlu0 %v675_v14, %s5424_s15  ;;  %704 = vst.msk [vmem:[#allocation2 + $0x20] sm:$0xfe] %vm655_vm1, %v675_v14  ;;  %v5908_v19 = vpack.i.bf16 %v541_v11, %v540_v7 }
 0x104   :  { %705 = vst.msk [vmem:[#allocation2 + $0x30] sm:$0x1] %vm657_vm2, %v675_v14 }
 0x105   :  { %820 = vst.msk [vmem:[#allocation2 + $0x8] sm:$0xfe] %vm655_vm1, %v676_v16  ;;  %706 = vst.msk [vmem:[#allocation2 + $0x40] sm:$0xfe] %vm655_vm1, %v676_v16  ;;  %v526_v20 = vadd.f32 %v5879_v57, %v503_v17  ;;  %v504_v21 = vmul.f32 %v5871_v52, %v443_v18  ;;  %v4906_v22 = vpop.f32.mrb[8].mxu0 }
 0x106   :  { %821 = vst.msk [vmem:[#allocation2 + $0x18] sm:$0x1] %vm657_vm2, %v676_v16  ;;  %707 = vst.msk [vmem:[#allocation2 + $0x50] sm:$0x1] %vm657_vm2, %v676_v16  ;;  %v4907_v24 = vpop.f32.mrb[9].mxu0 }
 0x107   :  { %v542_v26 = vmax.f32 %v526_v20, 0.0  ;;  %v527_v27 = vadd.f32 %v5879_v57, %v504_v21  ;;  %v4908_v30 = vadd.f32 %v4907_v24, %v4906_v22  ;;  %v4909_v31 = vpop.f32.mrb[10].mxu0  ;;  %738 = vrot.lane.b32.xlu0 %v676_v16, %s5424_s15 }
 0x108   :  { %v4910_v34 = vpop.f32.mrb[11].mxu0 }
 0x109   :  { %v677_v36 = vrot.slane %v542_v26, 7  ;;  %v543_v37 = vmax.f32 %v527_v27, 0.0  ;;  %v448_v38 = vadd.f32 %v4908_v30, %v5861_v47  ;;  %v4911_v39 = vadd.f32 %v4910_v34, %v4909_v31 }
 0x10b   :  { %822 = vst.msk [vmem:[#allocation2 + $0x28] sm:$0xfe] %vm655_vm1, %v677_v36  ;;  %708 = vst.msk [vmem:[#allocation2 + $0x60] sm:$0xfe] %vm655_vm1, %v677_v36  ;;  %v678_v40 = vrot.slane %v543_v37, 7  ;;  %v505_v41 = vmul.f32 %v5871_v52, %v448_v38  ;;  %v451_v42 = vadd.f32 %v4911_v39, %v5873_v54  ;;  %740 = vrot.lane.b32.xlu1 %v677_v36, %s5424_s15 }
 0x10c   :  { %823 = vst.msk [vmem:[#allocation2 + $0x38] sm:$0x1] %vm657_vm2, %v677_v36  ;;  %709 = vst.msk [vmem:[#allocation2 + $0x70] sm:$0x1] %vm657_vm2, %v677_v36  ;;  %v5935_v43 = vpack.i.bf16 %v543_v37, %v542_v26  ;;  %v926_v55 = vld [vmem:[#allocation2 + $0x8] sm:$0xfe] }
 0x10d   :  { %824 = vst.msk [vmem:[#allocation2 + $0x48] sm:$0xfe] %vm655_vm1, %v678_v40  ;;  %710 = vst.msk [vmem:[#allocation2 + $0x80] sm:$0xfe] %vm655_vm1, %v678_v40  ;;  %v528_v44 = vadd.f32 %v5879_v57, %v505_v41  ;;  %v506_v46 = vmul.f32 %v5871_v52, %v451_v42  ;;  %v4912_v47 = vpop.f32.mrb[12].mxu0  ;;  %v1057_v3 = vrot.slane %v926_v55, 1 }
 0x10e   :  { %825 = vst.msk [vmem:[#allocation2 + $0x58] sm:$0x1] %vm657_vm2, %v678_v40  ;;  %711 = vst.msk [vmem:[#allocation2 + $0x90] sm:$0x1] %vm657_vm2, %v678_v40  ;;  %v4913_v48 = vpop.f32.mrb[13].mxu0 }
 0x10f   :  { %v544_v49 = vmax.f32 %v528_v44, 0.0  ;;  %v529_v50 = vadd.f32 %v5879_v57, %v506_v46  ;;  %v4914_v53 = vadd.f32 %v4913_v48, %v4912_v47  ;;  %v4915_v54 = vpop.f32.mrb[14].mxu0  ;;  %742 = vrot.lane.b32.xlu1 %v678_v40, %s5424_s15  ;;  %v928_v56 = vld [vmem:[#allocation2 + $0x18] sm:$0x1] }
 0x110   :  { %v4916_v58 = vpop.f32.mrb[15].mxu0  ;;  %v1058_v4 = vrot.slane %v928_v56, 1 }
 0x111   :  { %v679_v59 = vrot.slane %v544_v49, 7  ;;  %v545_v60 = vmax.f32 %v529_v50, 0.0  ;;  %v456_v61 = vadd.f32 %v5859_v45, %v4914_v53  ;;  %v4917_v62 = vadd.f32 %v4916_v58, %v4915_v54 }
 0x112   :  { %v930_v63 = vld [vmem:[#allocation2 + $0x28] sm:$0xfe]  ;;  %v1059_v15 = vsel %vm1053_vm4, %v1057_v3, %v1058_v4 }
 0x113   :  { %v932_v1 = vld [vmem:[#allocation2 + $0x38] sm:$0x1]  ;;  %826 = vst.msk [vmem:[#allocation2 + $0x68] sm:$0xfe] %vm655_vm1, %v679_v59  ;;  %712 = vst.msk [vmem:[#allocation2 + $0xa0] sm:$0xfe] %vm655_vm1, %v679_v59  ;;  %v507_v6 = vmul.f32 %v5871_v52, %v456_v61  ;;  %v459_v7 = vadd.f32 %v5866_v51, %v4917_v62  ;;  %744 = vrot.lane.b32.xlu0 %v679_v59, %s5424_s15  ;;  %v5953_v11 = vpack.i.bf16 %v545_v60, %v544_v49 }
 0x114   :  { %827 = vst.msk [vmem:[#allocation2 + $0x78] sm:$0x1] %vm657_vm2, %v679_v59  ;;  %713 = vst.msk [vmem:[#allocation2 + $0xb0] sm:$0x1] %vm657_vm2, %v679_v59  ;;  %v680_v5 = vrot.slane %v545_v60, 7  ;;  %v1063_v45 = vrot.slane %v930_v63, 1 }
 0x115   :  { %v1064_v9 = vrot.slane %v932_v1, 1  ;;  %v530_v12 = vadd.f32 %v5879_v57, %v507_v6  ;;  %v508_v13 = vmul.f32 %v5871_v52, %v459_v7  ;;  %v4918_v14 = vpop.f32.mrb[16].mxu0 }
 0x116   :  { %828 = vst.msk [vmem:[#allocation2 + $0x88] sm:$0xfe] %vm655_vm1, %v680_v5  ;;  %714 = vst.msk [vmem:[#allocation2 + $0xc0] sm:$0xfe] %vm655_vm1, %v680_v5  ;;  %746 = vrot.lane.b32.xlu1 %v680_v5, %s5424_s15  ;;  %v4919_v51 = vpop.f32.mrb[17].mxu0 }
 0x117   :  { %829 = vst.msk [vmem:[#allocation2 + $0x98] sm:$0x1] %vm657_vm2, %v680_v5  ;;  %715 = vst.msk [vmem:[#allocation2 + $0xd0] sm:$0x1] %vm657_vm2, %v680_v5  ;;  %v1065_v16 = vsel %vm1053_vm4, %v1063_v45, %v1064_v9  ;;  %v546_v17 = vmax.f32 %v530_v12, 0.0  ;;  %v4920_v18 = vadd.f32 %v4919_v51, %v4918_v14  ;;  %v4921_v20 = vpop.f32.mrb[18].mxu0  ;;  %v531_v22 = vadd.f32 %v5879_v57, %v508_v13 }
 0x118   :  { %v1183_v21 = vpack.c.bf16 %v1065_v16, %v1059_v15  ;;  %v4922_v24 = vpop.f32.mrb[19].mxu0 }
 0x119   :  { %v681_v26 = vrot.slane %v546_v17, 7  ;;  %v464_v27 = vadd.f32 %v4920_v18, %v5890_v2  ;;  %v4923_v30 = vadd.f32 %v4922_v24, %v4921_v20  ;;  %v547_v31 = vmax.f32 %v531_v22, 0.0 }
 0x11a   :  { %4691 = vmatprep.mubr.msk.bf16.mxu1 %vm275_vm0, %v1183_v21 }
 0x11b   :  { %830 = vst.msk [vmem:[#allocation2 + $0xa8] sm:$0xfe] %vm655_vm1, %v681_v26  ;;  %716 = vst.msk [vmem:[#allocation2 + $0xe0] sm:$0xfe] %vm655_vm1, %v681_v26  ;;  %v509_v34 = vmul.f32 %v5871_v52, %v464_v27  ;;  %v467_v36 = vadd.f32 %v4923_v30, %v5898_v10  ;;  %748 = vrot.lane.b32.xlu0 %v681_v26, %s5424_s15  ;;  %v734_v37 = vrot.slane %v547_v31, 7 }
 0x11c   :  { %831 = vst.msk [vmem:[#allocation2 + $0xb8] sm:$0x1] %vm657_vm2, %v681_v26  ;;  %717 = vst.msk [vmem:[#allocation2 + $0xf0] sm:$0x1] %vm657_vm2, %v681_v26  ;;  %v5974_v2 = vpack.i.bf16 %v547_v31, %v546_v17 }
 0x11d   :  { %v532_v38 = vadd.f32 %v5879_v57, %v509_v34  ;;  %v510_v39 = vmul.f32 %v5871_v52, %v467_v36  ;;  %v4924_v40 = vpop.f32.mrb[20].mxu0  ;;  %832 = vst.msk [vmem:[#allocation2 + $0xc8] sm:$0xfe] %vm655_vm1, %v734_v37  ;;  %750 = vrot.lane.b32.xlu1 %v734_v37, %s5424_s15 }
 0x11e   :  { %833 = vst.msk [vmem:[#allocation2 + $0xd8] sm:$0x1] %vm657_vm2, %v734_v37  ;;  %v4925_v41 = vpop.f32.mrb[21].mxu0 }
 0x11f   :  { %v548_v42 = vmax.f32 %v532_v38, 0.0  ;;  %v533_v10 = vadd.f32 %v5879_v57, %v510_v39  ;;  %v4926_v44 = vadd.f32 %v4925_v41, %v4924_v40  ;;  %v4927_v46 = vpop.f32.mrb[22].mxu0 }
 0x120   :  { %v4928_v47 = vpop.f32.mrb[23].mxu0 }
 0x121   :  { %v549_v48 = vmax.f32 %v533_v10, 0.0  ;;  %v472_v49 = vadd.f32 %v5887_v0, %v4926_v44  ;;  %v4929_v50 = vadd.f32 %v4928_v47, %v4927_v46  ;;  %v682_v53 = vrot.slane %v548_v42, 7  ;;  %v940_v10 = vld [vmem:[#allocation2 + $0x78] sm:$0x1] }
 0x123   :  { %v683_v54 = vrot.slane %v549_v48, 7  ;;  %v511_v55 = vmul.f32 %v5871_v52, %v472_v49  ;;  %v475_v56 = vadd.f32 %v5896_v8, %v4929_v50  ;;  %752 = vrot.lane.b32.xlu0 %v682_v53, %s5424_s15  ;;  %718 = vst.msk [vmem:[#allocation2 + $0x120] sm:$0xfe] %vm655_vm1, %v682_v53  ;;  %v5988_v58 = vpack.i.bf16 %v549_v48, %v548_v42  ;;  %v938_v42 = vld [vmem:[#allocation2 + $0x68] sm:$0xfe] }
 0x124   :  { %719 = vst.msk [vmem:[#allocation2 + $0x130] sm:$0x1] %vm657_vm2, %v682_v53  ;;  %v934_v48 = vld [vmem:[#allocation2 + $0x48] sm:$0xfe]  ;;  %v936_v49 = vld [vmem:[#allocation2 + $0x58] sm:$0x1] }
 0x125   :  { %834 = vst.msk [vmem:[#allocation2 + $0x108] sm:$0xfe] %vm655_vm1, %v683_v54  ;;  %720 = vst.msk [vmem:[#allocation2 + $0x140] sm:$0xfe] %vm655_vm1, %v683_v54  ;;  %v534_v0 = vadd.f32 %v5879_v57, %v511_v55  ;;  %v512_v8 = vmul.f32 %v5871_v52, %v475_v56  ;;  %v4930_v59 = vpop.f32.mrb[24].mxu0  ;;  %754 = vrot.lane.b32.xlu1 %v683_v54, %s5424_s15  ;;  %v1075_v50 = vrot.slane %v938_v42, 1 }
 0x126   :  { %835 = vst.msk [vmem:[#allocation2 + $0x118] sm:$0x1] %vm657_vm2, %v683_v54  ;;  %721 = vst.msk [vmem:[#allocation2 + $0x150] sm:$0x1] %vm657_vm2, %v683_v54  ;;  %v4931_v60 = vpop.f32.mrb[25].mxu0  ;;  %v1076_v53 = vrot.slane %v940_v10, 1 }
 0x127   :  { %v550_v61 = vmax.f32 %v534_v0, 0.0  ;;  %v535_v62 = vadd.f32 %v5879_v57, %v512_v8  ;;  %v4932_v63 = vadd.f32 %v4931_v60, %v4930_v59  ;;  %v4933_v1 = vpop.f32.mrb[26].mxu0  ;;  %v1069_v59 = vrot.slane %v934_v48, 1 }
 0x128   :  { %v4934_v3 = vpop.f32.mrb[27].mxu0  ;;  %v1070_v60 = vrot.slane %v936_v49, 1 }
 0x129   :  { %v684_v4 = vrot.slane %v550_v61, 7  ;;  %v551_v5 = vmax.f32 %v535_v62, 0.0  ;;  %v480_v6 = vadd.f32 %v4932_v63, %v5919_v25  ;;  %v4935_v7 = vadd.f32 %v4934_v3, %v4933_v1 }
 0x12a   :  { %v1077_v63 = vsel %vm1053_vm4, %v1075_v50, %v1076_v53 }
 0x12b   :  { %836 = vst.msk [vmem:[#allocation2 + $0x128] sm:$0xfe] %vm655_vm1, %v684_v4  ;;  %722 = vst.msk [vmem:[#allocation2 + $0x160] sm:$0xfe] %vm655_vm1, %v684_v4  ;;  %v685_v45 = vrot.slane %v551_v5, 7  ;;  %v513_v9 = vmul.f32 %v5871_v52, %v480_v6  ;;  %v483_v12 = vadd.f32 %v4935_v7, %v5925_v35  ;;  %756 = vrot.lane.b32.xlu0 %v684_v4, %s5424_s15 }
 0x12c   :  { %837 = vst.msk [vmem:[#allocation2 + $0x138] sm:$0x1] %vm657_vm2, %v684_v4  ;;  %723 = vst.msk [vmem:[#allocation2 + $0x170] sm:$0x1] %vm657_vm2, %v684_v4  ;;  %v6006_v13 = vpack.i.bf16 %v551_v5, %v550_v61  ;;  %v5315_v4 = vld [vmem:[%s7222_s4] sm:$0xff]  }
 0x12d   :  { %838 = vst.msk [vmem:[#allocation2 + $0x148] sm:$0xfe] %vm655_vm1, %v685_v45  ;;  %724 = vst.msk [vmem:[#allocation2 + $0x180] sm:$0xfe] %vm655_vm1, %v685_v45  ;;  %v536_v25 = vadd.f32 %v5879_v57, %v513_v9  ;;  %v514_v14 = vmul.f32 %v5871_v52, %v483_v12  ;;  %v4936_v51 = vpop.f32.mrb[28].mxu0  ;;  %758 = vrot.lane.b32.xlu1 %v685_v45, %s5424_s15  ;;  %v1071_v9 = vsel %vm1053_vm4, %v1069_v59, %v1070_v60 }
 0x12e   :  { %839 = vst.msk [vmem:[#allocation2 + $0x158] sm:$0x1] %vm657_vm2, %v685_v45  ;;  %725 = vst.msk [vmem:[#allocation2 + $0x190] sm:$0x1] %vm657_vm2, %v685_v45  ;;  %v4937_v35 = vpop.f32.mrb[29].mxu0 }
 0x12f   :  { %v552_v15 = vmax.f32 %v536_v25, 0.0  ;;  %v537_v16 = vadd.f32 %v5879_v57, %v514_v14  ;;  %v4938_v17 = vadd.f32 %v4937_v35, %v4936_v51  ;;  %v4939_v18 = vpop.f32.mrb[30].mxu0  ;;  %v946_v5 = vld [vmem:[#allocation2 + $0xa8] sm:$0xfe]  ;;  %v948_v6 = vld [vmem:[#allocation2 + $0xb8] sm:$0x1]  ;;  %v1185_v14 = vpack.c.bf16 %v1077_v63, %v1071_v9 }
 0x130   :  { %v4940_v20 = vpop.f32.mrb[31].mxu0  ;;  %v942_v51 = vld [vmem:[#allocation2 + $0x88] sm:$0xfe]  ;;  %v944_v35 = vld [vmem:[#allocation2 + $0x98] sm:$0x1] }
 0x131   :  { %v686_v21 = vrot.slane %v552_v15, 7  ;;  %v553_v22 = vmax.f32 %v537_v16, 0.0  ;;  %v488_v24 = vadd.f32 %v5916_v23, %v4938_v17  ;;  %v4941_v26 = vadd.f32 %v4940_v20, %v4939_v18  ;;  %v5316_v18 = vld [vmem:[%s7222_s4 + $0x8] sm:$0xff]  }
 0x132   :  { %v1087_v16 = vrot.slane %v946_v5, 1  ;;  %v1088_v17 = vrot.slane %v948_v6, 1  ;;  %v962_v5 = vld [vmem:[#allocation2 + $0x128] sm:$0xfe] }
 0x133   :  { %840 = vst.msk [vmem:[#allocation2 + $0x168] sm:$0xfe] %vm655_vm1, %v686_v21  ;;  %726 = vst.msk [vmem:[#allocation2 + $0x1a0] sm:$0xfe] %vm655_vm1, %v686_v21  ;;  %v687_v27 = vrot.slane %v553_v22, 7  ;;  %v515_v30 = vmul.f32 %v5871_v52, %v488_v24  ;;  %v491_v31 = vadd.f32 %v5923_v33, %v4941_v26  ;;  %760 = vrot.lane.b32.xlu0 %v686_v21, %s5424_s15  ;;  %v1081_v26 = vrot.slane %v942_v51, 1 }
 0x134   :  { %841 = vst.msk [vmem:[#allocation2 + $0x178] sm:$0x1] %vm657_vm2, %v686_v21  ;;  %727 = vst.msk [vmem:[#allocation2 + $0x1b0] sm:$0x1] %vm657_vm2, %v686_v21  ;;  %v6024_v34 = vpack.i.bf16 %v553_v22, %v552_v15  ;;  %v964_v6 = vld [vmem:[#allocation2 + $0x138] sm:$0x1] }
 0x135   :  { %842 = vst.msk [vmem:[#allocation2 + $0x188] sm:$0xfe] %vm655_vm1, %v687_v27  ;;  %728 = vst.msk [vmem:[#allocation2 + $0x1c0] sm:$0xfe] %vm655_vm1, %v687_v27  ;;  %v538_v23 = vadd.f32 %v5879_v57, %v515_v30  ;;  %v516_v36 = vmul.f32 %v5871_v52, %v491_v31  ;;  %762 = vrot.lane.b32.xlu1 %v687_v27, %s5424_s15  ;;  %v960_v51 = vld [vmem:[#allocation2 + $0x118] sm:$0x1] }
 0x136   :  { %843 = vst.msk [vmem:[#allocation2 + $0x198] sm:$0x1] %vm657_vm2, %v687_v27  ;;  %729 = vst.msk [vmem:[#allocation2 + $0x1d0] sm:$0x1] %vm657_vm2, %v687_v27  ;;  %v1082_v27 = vrot.slane %v944_v35, 1 }
 0x137   :  { %v554_v37 = vmax.f32 %v538_v23, 0.0  ;;  %v539_v33 = vadd.f32 %v5879_v57, %v516_v36  ;;  %v954_v23 = vld [vmem:[#allocation2 + $0xe8] sm:$0xfe]  ;;  %v1089_v36 = vsel %vm1053_vm4, %v1087_v16, %v1088_v17  ;;  %v1111_v17 = vrot.slane %v962_v5, 1 }
 0x138   :  { %v1083_v10 = vsel %vm1053_vm4, %v1081_v26, %v1082_v27  ;;  %v5320_v26 = vld [vmem:[%s7222_s4 + $0x28] sm:$0xff]  }
 0x139   :  { %v688_v38 = vrot.slane %v554_v37, 7  ;;  %v555_v39 = vmax.f32 %v539_v33, 0.0  ;;  %v1187_v48 = vpack.c.bf16 %v1089_v36, %v1083_v10 }
 0x13b   :  { %844 = vst.msk [vmem:[#allocation2 + $0x1a8] sm:$0xfe] %vm655_vm1, %v688_v38  ;;  %730 = vst.msk [vmem:[#allocation2 + $0x1e0] sm:$0xfe] %vm655_vm1, %v688_v38  ;;  %764 = vrot.lane.b32.xlu0 %v688_v38, %s5424_s15  ;;  %v735_v40 = vrot.slane %v555_v39, 7  ;;  %v6039_v41 = vpack.i.bf16 %v555_v39, %v554_v37  ;;  %v5317_v39 = vld [vmem:[%s7222_s4 + $0x10] sm:$0xff]  }
 0x13c   :  { %845 = vst.msk [vmem:[#allocation2 + $0x1b8] sm:$0x1] %vm657_vm2, %v688_v38  ;;  %731 = vst.msk [vmem:[#allocation2 + $0x1f0] sm:$0x1] %vm657_vm2, %v688_v38  ;;  %v956_v37 = vld [vmem:[#allocation2 + $0xf8] sm:$0x1] }
 0x13d   :  { %846 = vst.msk [vmem:[#allocation2 + $0x1c8] sm:$0xfe] %vm655_vm1, %v735_v40  ;;  %766 = vrot.lane.b32.xlu1 %v735_v40, %s5424_s15  ;;  %v1100_v53 = vrot.slane %v956_v37, 1  ;;  %v5321_v37 = vld [vmem:[%s7222_s4 + $0x30] sm:$0xff]   ;;  %vm2512_vm1 = vcmask 1041152  }
 0x13e   :  { %847 = vst.msk [vmem:[#allocation2 + $0x1d8] sm:$0x1] %vm657_vm2, %v735_v40  ;;  %v950_v40 = vld [vmem:[#allocation2 + $0xc8] sm:$0xfe]  ;;  %vm2988_vm2 = vcmask 130048  }
 0x175   :  { %v737_v52 = vpop.permute.xlu0 %736 }
 0x176   :  { %785 = vst.msk [vmem:[#allocation2] sm:$0xfe] %vm784_vm5, %v737_v52 }
 0x177   :  { %787 = vst.msk [vmem:[#allocation2 + $0x10] sm:$0x1] %vm786_vm6, %v737_v52  ;;  %v952_v52 = vld [vmem:[#allocation2 + $0xd8] sm:$0x1] }
 0x179   :  { %v739_v57 = vpop.permute.xlu0 %738 }
 0x17a   :  { %788 = vst.msk [vmem:[#allocation2 + $0x20] sm:$0xfe] %vm784_vm5, %v739_v57 }
 0x17b   :  { %789 = vst.msk [vmem:[#allocation2 + $0x30] sm:$0x1] %vm786_vm6, %v739_v57 }
 0x17d   :  { %v741_v44 = vpop.permute.xlu1 %740  ;;  %v925_v46 = vld [vmem:[#allocation2] sm:$0xfe] }
 0x17e   :  { %v927_v47 = vld [vmem:[#allocation2 + $0x10] sm:$0x1]  ;;  %790 = vst.msk [vmem:[#allocation2 + $0x40] sm:$0xfe] %vm784_vm5, %v741_v44  ;;  %v1054_v54 = vrot.slane %v925_v46, 1 }
 0x17f   :  { %791 = vst.msk [vmem:[#allocation2 + $0x50] sm:$0x1] %vm786_vm6, %v741_v44  ;;  %v1055_v55 = vrot.slane %v927_v47, 1  ;;  %v1099_v47 = vrot.slane %v954_v23, 1 }
 0x181   :  { %v743_v56 = vpop.permute.xlu1 %742  ;;  %v929_v0 = vld [vmem:[#allocation2 + $0x20] sm:$0xfe]  ;;  %v1056_v1 = vsel %vm1053_vm4, %v1054_v54, %v1055_v55 }
 0x182   :  { %v931_v8 = vld [vmem:[#allocation2 + $0x30] sm:$0x1]  ;;  %792 = vst.msk [vmem:[#allocation2 + $0x60] sm:$0xfe] %vm784_vm5, %v743_v56  ;;  %v1060_v61 = vrot.slane %v929_v0, 1  ;;  %v1093_v0 = vrot.slane %v950_v40, 1 }
 0x183   :  { %793 = vst.msk [vmem:[#allocation2 + $0x70] sm:$0x1] %vm786_vm6, %v743_v56  ;;  %v1061_v62 = vrot.slane %v931_v8, 1  ;;  %v1094_v8 = vrot.slane %v952_v52, 1 }
 0x185   :  { %v1062_v3 = vsel %vm1053_vm4, %v1060_v61, %v1061_v62  ;;  %v745_v7 = vpop.permute.xlu0 %744  ;;  %v933_v12 = vld [vmem:[#allocation2 + $0x40] sm:$0xfe]  ;;  %v5318_v61 = vld [vmem:[%s7222_s4 + $0x18] sm:$0xff]  }
 0x186   :  { %v1182_v45 = vpack.c.bf16 %v1062_v3, %v1056_v1  ;;  %v935_v25 = vld [vmem:[#allocation2 + $0x50] sm:$0x1]  ;;  %794 = vst.msk [vmem:[#allocation2 + $0x80] sm:$0xfe] %vm784_vm5, %v745_v7  ;;  %v1066_v20 = vrot.slane %v933_v12, 1  ;;  %v1095_v1 = vsel %vm1053_vm4, %v1093_v0, %v1094_v8  ;;  %v1101_v3 = vsel %vm1053_vm4, %v1099_v47, %v1100_v53  ;;  %v5322_v8 = vld [vmem:[%s7222_s4 + $0x38] sm:$0xff]  }
 0x187   :  { %795 = vst.msk [vmem:[#allocation2 + $0x90] sm:$0x1] %vm786_vm6, %v745_v7  ;;  %v1067_v21 = vrot.slane %v935_v25, 1  ;;  %v1189_v25 = vpack.c.bf16 %v1101_v3, %v1095_v1  ;;  %v966_v47 = vld [vmem:[#allocation2 + $0x148] sm:$0xfe] }
 0x188   :  { %v747_v15 = vpop.permute.xlu1 %746  ;;  %1352 = vmatmul.mubr.bf16.vlgmr.msra.gmra.mrb[16].mxu1 %v1182_v45  ;;  %v978_v1 = vld [vmem:[#allocation2 + $0x1a8] sm:$0xfe]  ;;  %v980_v3 = vld [vmem:[#allocation2 + $0x1b8] sm:$0x1] }
 0x189   :  { %796 = vst.msk [vmem:[#allocation2 + $0xa0] sm:$0xfe] %vm784_vm5, %v747_v15  ;;  %1513 = vmatpush1.bf16.msra.mxu1 %v5315_v4  ;;  %4692 = vmatprep.mubr.msk.bf16.mxu1 %vm275_vm0, %v1185_v14  ;;  %v937_v22 = vld [vmem:[#allocation2 + $0x60] sm:$0xfe]  ;;  %v1068_v33 = vsel %vm1053_vm4, %v1066_v20, %v1067_v21  ;;  %v958_v14 = vld [vmem:[#allocation2 + $0x108] sm:$0xfe] }
 0x18a   :  { %797 = vst.msk [vmem:[#allocation2 + $0xb0] sm:$0x1] %vm786_vm6, %v747_v15  ;;  %1514 = vmatprep.subr.bf16.mxu1 %v5423_v32  ;;  %v939_v24 = vld [vmem:[#allocation2 + $0x70] sm:$0x1]  ;;  %v1072_v30 = vrot.slane %v937_v22, 1  ;;  %v5319_v4 = vld [vmem:[%s7222_s4 + $0x20] sm:$0xff]  }
 0x18b   :  { %v1073_v31 = vrot.slane %v939_v24, 1  ;;  %v1105_v27 = vrot.slane %v958_v14, 1  ;;  %v976_v14 = vld [vmem:[#allocation2 + $0x198] sm:$0x1] }
 0x18d   :  { %1515 = vmatpush1.bf16.msra.mxu1 %v5316_v18  ;;  %v1074_v38 = vsel %vm1053_vm4, %v1072_v30, %v1073_v31  ;;  %v749_v57 = vpop.permute.xlu0 %748  ;;  %v941_v44 = vld [vmem:[#allocation2 + $0x80] sm:$0xfe]  ;;  %v1112_v18 = vrot.slane %v964_v6, 1  ;;  %v1106_v30 = vrot.slane %v960_v51, 1 }
 0x18e   :  { %v1184_v42 = vpack.c.bf16 %v1074_v38, %v1068_v33  ;;  %1516 = vmatprep.subr.bf16.mxu1 %v5423_v32  ;;  %v943_v46 = vld [vmem:[#allocation2 + $0x90] sm:$0x1]  ;;  %798 = vst.msk [vmem:[#allocation2 + $0xc0] sm:$0xfe] %vm784_vm5, %v749_v57  ;;  %v1078_v49 = vrot.slane %v941_v44, 1 }
 0x18f   :  { %799 = vst.msk [vmem:[#allocation2 + $0xd0] sm:$0x1] %vm786_vm6, %v749_v57  ;;  %v1079_v50 = vrot.slane %v943_v46, 1  ;;  %v751_v54 = vpop.permute.xlu1 %750  ;;  %v1113_v23 = vsel %vm1053_vm4, %v1111_v17, %v1112_v18  ;;  %v970_v33 = vld [vmem:[#allocation2 + $0x168] sm:$0xfe]  ;;  %v1107_v52 = vsel %vm1053_vm4, %v1105_v27, %v1106_v30  ;;  %v1136_v17 = vrot.slane %v980_v3, 1 }
 0x190   :  { %1360 = vmatmul.mubr.bf16.gmra.mrb[20].mxu1 %v1184_v42  ;;  %v945_v55 = vld [vmem:[#allocation2 + $0xa0] sm:$0xfe]  ;;  %800 = vst.msk [vmem:[#allocation2 + $0xe0] sm:$0xfe] %vm784_vm5, %v751_v54  ;;  %v972_v38 = vld [vmem:[#allocation2 + $0x178] sm:$0x1]  ;;  %v1191_v10 = vpack.c.bf16 %v1113_v23, %v1107_v52 }
 0x191   :  { %v947_v56 = vld [vmem:[#allocation2 + $0xb0] sm:$0x1]  ;;  %801 = vst.msk [vmem:[#allocation2 + $0xf0] sm:$0x1] %vm786_vm6, %v751_v54  ;;  %4693 = vmatprep.mubr.msk.bf16.mxu1 %vm275_vm0, %v1187_v48  ;;  %1517 = vmatpush1.bf16.msra.mxu1 %v5317_v39  ;;  %v1084_v59 = vrot.slane %v945_v55, 1  ;;  %v1080_v62 = vsel %vm1053_vm4, %v1078_v49, %v1079_v50  ;;  %v1123_v54 = vrot.slane %v970_v33, 1 }
 0x192   :  { %v1085_v60 = vrot.slane %v947_v56, 1  ;;  %1518 = vmatprep.subr.bf16.mxu1 %v5423_v32  ;;  %v968_v48 = vld [vmem:[#allocation2 + $0x158] sm:$0x1]  ;;  %v1124_v55 = vrot.slane %v972_v38, 1  ;;  %v1130_v27 = vrot.slane %v976_v14, 1 }
 0x193   :  { %v982_v33 = vld [vmem:[#allocation2 + $0x1c8] sm:$0xfe]  ;;  %v984_v38 = vld [vmem:[#allocation2 + $0x1d8] sm:$0x1] }
 0x194   :  { %v1086_v63 = vsel %vm1053_vm4, %v1084_v59, %v1085_v60  ;;  %v1117_v59 = vrot.slane %v966_v47, 1  ;;  %v1118_v60 = vrot.slane %v968_v48, 1 }
 0x195   :  { %1519 = vmatpush1.bf16.msra.mxu1 %v5318_v61  ;;  %v753_v7 = vpop.permute.xlu0 %752  ;;  %v1186_v45 = vpack.c.bf16 %v1086_v63, %v1080_v62  ;;  %v949_v9 = vld [vmem:[#allocation2 + $0xc0] sm:$0xfe]  ;;  %v1125_v63 = vsel %vm1053_vm4, %v1123_v54, %v1124_v55  ;;  %v1141_v55 = vrot.slane %v982_v33, 1 }
 0x196   :  { %1520 = vmatprep.subr.bf16.mxu1 %v5423_v32  ;;  %v951_v12 = vld [vmem:[#allocation2 + $0xd0] sm:$0x1]  ;;  %802 = vst.msk [vmem:[#allocation2 + $0x100] sm:$0xfe] %vm784_vm5, %v753_v7  ;;  %v1090_v20 = vrot.slane %v949_v9, 1 }
 0x197   :  { %803 = vst.msk [vmem:[#allocation2 + $0x110] sm:$0x1] %vm786_vm6, %v753_v7  ;;  %v755_v35 = vpop.permute.xlu1 %754  ;;  %v953_v15 = vld [vmem:[#allocation2 + $0xe0] sm:$0xfe]  ;;  %v1091_v21 = vrot.slane %v951_v12, 1  ;;  %v1119_v7 = vsel %vm1053_vm4, %v1117_v59, %v1118_v60  ;;  %v5326_v59 = vld [vmem:[%s7222_s4 + $0x58] sm:$0xff]  }
 0x198   :  { %1368 = vmatmul.mubr.bf16.gmra.mrb[24].mxu1 %v1186_v45  ;;  %v955_v16 = vld [vmem:[#allocation2 + $0xf0] sm:$0x1]  ;;  %804 = vst.msk [vmem:[#allocation2 + $0x120] sm:$0xfe] %vm784_vm5, %v755_v35  ;;  %v1096_v22 = vrot.slane %v953_v15, 1  ;;  %v1193_v12 = vpack.c.bf16 %v1125_v63, %v1119_v7 }
 0x199   :  { %805 = vst.msk [vmem:[#allocation2 + $0x130] sm:$0x1] %vm786_vm6, %v755_v35  ;;  %4694 = vmatprep.mubr.msk.bf16.mxu1 %vm275_vm0, %v1189_v25  ;;  %1521 = vmatpush1.bf16.msra.mxu1 %v5319_v4  ;;  %v1097_v24 = vrot.slane %v955_v16, 1  ;;  %v1092_v36 = vsel %vm1053_vm4, %v1090_v20, %v1091_v21  ;;  %v5323_v4 = vld [vmem:[%s7222_s4 + $0x40] sm:$0xff]   ;;  %v974_v25 = vld [vmem:[#allocation2 + $0x188] sm:$0xfe] }
 0x19a   :  { %1522 = vmatprep.subr.bf16.mxu1 %v5423_v32  ;;  %v1135_v16 = vrot.slane %v978_v1, 1 }
 0x19b   :  { %v1098_v31 = vsel %vm1053_vm4, %v1096_v22, %v1097_v24  ;;  %v5324_v24 = vld [vmem:[%s7222_s4 + $0x48] sm:$0xff]  }
 0x19c   :  { %v1188_v40 = vpack.c.bf16 %v1098_v31, %v1092_v36  ;;  %v986_v31 = vld [vmem:[#allocation2 + $0x1e8] sm:$0xfe]  ;;  %v1137_v23 = vsel %vm1053_vm4, %v1135_v16, %v1136_v17  ;;  %v988_v36 = vld [vmem:[#allocation2 + $0x1f8] sm:$0x1] }
 0x19d   :  { %1523 = vmatpush1.bf16.msra.mxu1 %v5320_v26  ;;  %v757_v39 = vpop.permute.xlu0 %756  ;;  %v957_v57 = vld [vmem:[#allocation2 + $0x100] sm:$0xfe]  ;;  %v1129_v26 = vrot.slane %v974_v25, 1  ;;  %v854_v16 = vld [vmem:[#allocation2 + $0x8] sm:$0xff] }
 0x19e   :  { %1524 = vmatprep.subr.bf16.mxu1 %v5423_v32  ;;  %v959_v42 = vld [vmem:[#allocation2 + $0x110] sm:$0x1]  ;;  %806 = vst.msk [vmem:[#allocation2 + $0x140] sm:$0xfe] %vm784_vm5, %v757_v39  ;;  %v1102_v44 = vrot.slane %v957_v57, 1 }
 0x19f   :  { %807 = vst.msk [vmem:[#allocation2 + $0x150] sm:$0x1] %vm786_vm6, %v757_v39  ;;  %v1103_v46 = vrot.slane %v959_v42, 1  ;;  %v759_v49 = vpop.permute.xlu1 %758  ;;  %v961_v50 = vld [vmem:[#allocation2 + $0x120] sm:$0xfe]  ;;  %v5325_v39 = vld [vmem:[%s7222_s4 + $0x50] sm:$0xff]   ;;  %v1131_v57 = vsel %vm1053_vm4, %v1129_v26, %v1130_v27 }
 0x1a0   :  { %1376 = vmatmul.mubr.bf16.gmra.mrb[28].mxu1 %v1188_v40  ;;  %v963_v53 = vld [vmem:[#allocation2 + $0x130] sm:$0x1]  ;;  %808 = vst.msk [vmem:[#allocation2 + $0x160] sm:$0xfe] %vm784_vm5, %v759_v49  ;;  %v1108_v56 = vrot.slane %v961_v50, 1  ;;  %v858_v26 = vld [vmem:[#allocation2 + $0x48] sm:$0xff] }
 0x1a1   :  { %809 = vst.msk [vmem:[#allocation2 + $0x170] sm:$0x1] %vm786_vm6, %v759_v49  ;;  %4695 = vmatprep.mubr.msk.bf16.mxu1 %vm275_vm0, %v1191_v10  ;;  %v1109_v0 = vrot.slane %v963_v53, 1  ;;  %1525 = vmatpush1.bf16.msra.mxu1 %v5321_v37  ;;  %v1104_v61 = vsel %vm1053_vm4, %v1102_v44, %v1103_v46  ;;  %v1147_v44 = vrot.slane %v986_v31, 1  ;;  %v1195_v46 = vpack.c.bf16 %v1137_v23, %v1131_v57  ;;  %v859_v31 = vld [vmem:[#allocation2 + $0x60] sm:$0xff]  ;;  %v864_v23 = vld [vmem:[#allocation2 + $0xa8] sm:$0xff] }
 0x1a2   :  { %1526 = vmatprep.subr.bf16.mxu1 %v5423_v32  ;;  %v1148_v49 = vrot.slane %v988_v36, 1  ;;  %v857_v36 = vld [vmem:[#allocation2 + $0x40] sm:$0xff] }
 0x1a3   :  { %v1110_v62 = vsel %vm1053_vm4, %v1108_v56, %v1109_v0  ;;  %v1142_v56 = vrot.slane %v984_v38, 1  ;;  %v887_v33 = vpack.c.bf16 %v859_v31, %v857_v36  ;;  %v862_v38 = vld [vmem:[#allocation2 + $0x88] sm:$0xff]  ;;  %v863_v57 = vld [vmem:[#allocation2 + $0xa0] sm:$0xff] }
 0x1a4   :  { %v1190_v6 = vpack.c.bf16 %v1110_v62, %v1104_v61  ;;  %v1149_v63 = vsel %vm1053_vm4, %v1147_v44, %v1148_v49  ;;  %v5331_v44 = vld [vmem:[%s7222_s4 + $0xe0] sm:$0xff]  }
 0x1a5   :  { %1527 = vmatpush1.bf16.msra.mxu1 %v5322_v8  ;;  %v761_v5 = vpop.permute.xlu0 %760  ;;  %v965_v45 = vld [vmem:[#allocation2 + $0x140] sm:$0xfe]  ;;  %v1143_v62 = vsel %vm1053_vm4, %v1141_v55, %v1142_v56  ;;  %v870_v56 = vld [vmem:[#allocation2 + $0x108] sm:$0xff] }
 0x1a6   :  { %v967_v9 = vld [vmem:[#allocation2 + $0x150] sm:$0x1]  ;;  %1528 = vmatprep.subr.bf16.mxu1 %v5423_v32  ;;  %810 = vst.msk [vmem:[#allocation2 + $0x180] sm:$0xfe] %vm784_vm5, %v761_v5  ;;  %v1114_v18 = vrot.slane %v965_v45, 1  ;;  %v867_v49 = vld [vmem:[#allocation2 + $0xe0] sm:$0xff] }
 0x1a7   :  { %811 = vst.msk [vmem:[#allocation2 + $0x190] sm:$0x1] %vm786_vm6, %v761_v5  ;;  %v763_v51 = vpop.permute.xlu1 %762  ;;  %v969_v35 = vld [vmem:[#allocation2 + $0x160] sm:$0xfe]  ;;  %v1115_v20 = vrot.slane %v967_v9, 1  ;;  %v1197_v5 = vpack.c.bf16 %v1149_v63, %v1143_v62 }
 0x1a8   :  { %1384 = vmatmul.mubr.bf16.gmra.mrb[32].mxu1 %v1190_v6  ;;  %v971_v15 = vld [vmem:[#allocation2 + $0x170] sm:$0x1]  ;;  %812 = vst.msk [vmem:[#allocation2 + $0x1a0] sm:$0xfe] %vm784_vm5, %v763_v51  ;;  %v1120_v21 = vrot.slane %v969_v35, 1  ;;  %v5335_v62 = vld [vmem:[%s7222_s4 + $0x100] sm:$0xff]  }
 0x1a9   :  { %813 = vst.msk [vmem:[#allocation2 + $0x1b0] sm:$0x1] %vm786_vm6, %v763_v51  ;;  %4696 = vmatprep.mubr.msk.bf16.mxu1 %vm275_vm0, %v1193_v12  ;;  %v1121_v22 = vrot.slane %v971_v15, 1  ;;  %1529 = vmatpush1.bf16.msra.mxu1 %v5323_v4  ;;  %v1116_v37 = vsel %vm1053_vm4, %v1114_v18, %v1115_v20  ;;  %v856_v51 = vld [vmem:[#allocation2 + $0x28] sm:$0xff]  ;;  %v855_v18 = vld [vmem:[#allocation2 + $0x20] sm:$0xff] }
 0x1aa   :  { %1530 = vmatprep.subr.bf16.mxu1 %v5423_v32  ;;  %v886_v17 = vpack.c.bf16 %v856_v51, %v854_v16  ;;  %v860_v20 = vld [vmem:[#allocation2 + $0x68] sm:$0xff] }
 0x1ab   :  { %v1122_v30 = vsel %vm1053_vm4, %v1120_v21, %v1121_v22  ;;  %v853_v21 = vld [vmem:[#allocation2] sm:$0xff]  ;;  %v888_v27 = vpack.c.bf16 %v860_v20, %v858_v26  ;;  %v882_v16 = vld [vmem:[#allocation2 + $0x1c8] sm:$0xff] }
 0x1ac   :  { %v1192_v52 = vpack.c.bf16 %v1122_v30, %v1116_v37  ;;  %v5327_v22 = vld [vmem:[%s7222_s4 + $0xc0] sm:$0xff]   ;;  %v5328_v30 = vld [vmem:[%s7222_s4 + $0xc8] sm:$0xff]   ;;  %v5329_v37 = vld [vmem:[%s7222_s4 + $0xd0] sm:$0xff]  }
 0x1ad   :  { %1531 = vmatpush1.bf16.msra.mxu1 %v5324_v24  ;;  %v765_v40 = vpop.permute.xlu0 %764  ;;  %v973_v42 = vld [vmem:[#allocation2 + $0x180] sm:$0xfe]  ;;  %v885_v24 = vpack.c.bf16 %v855_v18, %v853_v21  ;;  %v1616_v18 = vld [vmem:[#allocation2 + $0x38] sm:$0x3]  ;;  %v1610_v21 = vld [vmem:[#allocation2 + $0x8] sm:$0xfc] }
 0x1ae   :  { %v975_v10 = vld [vmem:[#allocation2 + $0x190] sm:$0x1]  ;;  %1532 = vmatprep.subr.bf16.mxu1 %v5423_v32  ;;  %814 = vst.msk [vmem:[#allocation2 + $0x1c0] sm:$0xfe] %vm784_vm5, %v765_v40  ;;  %v1126_v47 = vrot.slane %v973_v42, 1  ;;  %v866_v42 = vld [vmem:[#allocation2 + $0xc8] sm:$0xff] }
 0x1af   :  { %815 = vst.msk [vmem:[#allocation2 + $0x1d0] sm:$0x1] %vm786_vm6, %v765_v40  ;;  %v1127_v48 = vrot.slane %v975_v10, 1  ;;  %v767_v50 = vpop.permute.xlu1 %766  ;;  %v977_v53 = vld [vmem:[#allocation2 + $0x1a0] sm:$0xfe]  ;;  %v5330_v40 = vld [vmem:[%s7222_s4 + $0xd8] sm:$0xff]  }
 0x1b0   :  { %1392 = vmatmul.mubr.bf16.gmra.mrb[36].mxu1 %v1192_v52  ;;  %v979_v54 = vld [vmem:[#allocation2 + $0x1b0] sm:$0x1]  ;;  %816 = vst.msk [vmem:[#allocation2 + $0x1e0] sm:$0xfe] %vm784_vm5, %v767_v50  ;;  %v1132_v0 = vrot.slane %v977_v53, 1  ;;  %v861_v52 = vld [vmem:[#allocation2 + $0x80] sm:$0xff] }
 0x1b1   :  { %817 = vst.msk [vmem:[#allocation2 + $0x1f0] sm:$0x1] %vm786_vm6, %v767_v50  ;;  %4697 = vmatprep.mubr.msk.bf16.mxu1 %vm275_vm0, %v1195_v46  ;;  %v1133_v8 = vrot.slane %v979_v54, 1  ;;  %1533 = vmatpush1.bf16.msra.mxu1 %v5325_v39  ;;  %v1128_v60 = vsel %vm1053_vm4, %v1126_v47, %v1127_v48  ;;  %v890_v39 = vpack.c.bf16 %v864_v23, %v862_v38  ;;  %v868_v10 = vld [vmem:[#allocation2 + $0xe8] sm:$0xff]  ;;  %v865_v53 = vld [vmem:[#allocation2 + $0xc0] sm:$0xff]  ;;  %v5333_v54 = vld [vmem:[%s7222_s4 + $0xf0] sm:$0xff]  }
 0x1b2   :  { %1534 = vmatprep.subr.bf16.mxu1 %v5423_v32  ;;  %v889_v46 = vpack.c.bf16 %v863_v57, %v861_v52  ;;  %v892_v47 = vpack.c.bf16 %v868_v10, %v866_v42  ;;  %v5332_v48 = vld [vmem:[%s7222_s4 + $0xe8] sm:$0xff]   ;;  %v891_v55 = vpack.c.bf16 %v867_v49, %v865_v53  ;;  %v877_v51 = vld [vmem:[#allocation2 + $0x180] sm:$0xff]  ;;  %v1615_v38 = vld [vmem:[#allocation2 + $0x30] sm:$0x3] }
 0x1b3   :  { %v1134_v61 = vsel %vm1053_vm4, %v1132_v0, %v1133_v8  ;;  %v872_v50 = vld [vmem:[#allocation2 + $0x128] sm:$0xff]  ;;  %v5334_v8 = vld [vmem:[%s7222_s4 + $0xf8] sm:$0xff]   ;;  %v1745_v49 = vrot.slane %v1615_v38, 2 }
 0x1b4   :  { %v1194_v1 = vpack.c.bf16 %v1134_v61, %v1128_v60  ;;  %v894_v0 = vpack.c.bf16 %v872_v50, %v870_v56  ;;  %v871_v60 = vld [vmem:[#allocation2 + $0x120] sm:$0xff]  ;;  %v876_v61 = vld [vmem:[#allocation2 + $0x168] sm:$0xff] }
 0x1b5   :  { %1535 = vmatpush1.bf16.msra.mxu1 %v5326_v59  ;;  %v981_v3 = vld [vmem:[#allocation2 + $0x1c0] sm:$0xfe]  ;;  %v1618_v57 = vld [vmem:[#allocation2 + $0x48] sm:$0xfc] }
 0x1b6   :  { %v983_v4 = vld [vmem:[#allocation2 + $0x1d0] sm:$0x1]  ;;  %2003 = vmatprep.subr.bf16.mxu1 %v5423_v32  ;;  %v1138_v45 = vrot.slane %v981_v3, 1  ;;  %v869_v59 = vld [vmem:[#allocation2 + $0x100] sm:$0xff]  ;;  %v1753_v56 = vrot.slane %v1618_v57, 2 }
 0x1b7   :  { %v985_v6 = vld [vmem:[#allocation2 + $0x1e0] sm:$0xfe]  ;;  %v1139_v9 = vrot.slane %v983_v4, 1  ;;  %v893_v63 = vpack.c.bf16 %v871_v60, %v869_v59  ;;  %v5336_v4 = vld [vmem:[%s7222_s4 + $0x108] sm:$0xff]  }
 0x1b8   :  { %1400 = vmatmul.mubr.bf16.gmra.mrb[40].mxu1 %v1194_v1  ;;  %v987_v7 = vld [vmem:[#allocation2 + $0x1f0] sm:$0x1]  ;;  %v1144_v12 = vrot.slane %v985_v6, 1  ;;  %v874_v1 = vld [vmem:[#allocation2 + $0x148] sm:$0xff]  ;;  %v883_v23 = vld [vmem:[#allocation2 + $0x1e0] sm:$0xff] }
 0x1b9   :  { %4698 = vmatprep.mubr.msk.bf16.mxu1 %vm275_vm0, %v1197_v5  ;;  %v1145_v25 = vrot.slane %v987_v7, 1  ;;  %v1140_v35 = vsel %vm1053_vm4, %v1138_v45, %v1139_v9  ;;  %v896_v3 = vpack.c.bf16 %v876_v61, %v874_v1  ;;  %v875_v5 = vld [vmem:[#allocation2 + $0x160] sm:$0xff]  ;;  %v880_v6 = vld [vmem:[#allocation2 + $0x1a8] sm:$0xff]  ;;  %v5337_v45 = vld [vmem:[%s7222_s4 + $0x110] sm:$0xff]  }
 0x1ba   :  { %v873_v7 = vld [vmem:[#allocation2 + $0x140] sm:$0xff]  ;;  %v1630_v60 = vld [vmem:[#allocation2 + $0xa8] sm:$0xfc] }
 0x1bb   :  { %v1146_v14 = vsel %vm1053_vm4, %v1144_v12, %v1145_v25  ;;  %v895_v9 = vpack.c.bf16 %v875_v5, %v873_v7  ;;  %v878_v12 = vld [vmem:[#allocation2 + $0x188] sm:$0xff]  ;;  %v1621_v61 = vld [vmem:[#allocation2 + $0x60] sm:$0xfc] }
 0x1bc   :  { %v1196_v15 = vpack.c.bf16 %v1146_v14, %v1140_v35  ;;  %v898_v25 = vpack.c.bf16 %v880_v6, %v878_v12  ;;  %v5338_v14 = vld [vmem:[%s7222_s4 + $0x118] sm:$0xff]   ;;  %v879_v35 = vld [vmem:[#allocation2 + $0x1a0] sm:$0xff]  ;;  %v1756_v12 = vrot.slane %v1621_v61, 2  ;;  %v1635_v61 = vld [vmem:[#allocation2 + $0xd0] sm:$0x3] }
 0x1bd   :  { %v897_v20 = vpack.c.bf16 %v879_v35, %v877_v51  ;;  %v1617_v7 = vld [vmem:[#allocation2 + $0x40] sm:$0xfc] }
 0x1be   :  { %v1750_v35 = vrot.slane %v1617_v7, 2 }
 0x1c0   :  { %1408 = vmatmul.mubr.bf16.gmra.mrb[44].mxu1 %v1196_v15  ;;  %v884_v15 = vld [vmem:[#allocation2 + $0x1e8] sm:$0xff] }
 0x1c1   :  { %4711 = vmatprep.mubr.msk.bf16.mxu1 %vm275_vm0, %v886_v17  ;;  %v1614_v17 = vld [vmem:[#allocation2 + $0x28] sm:$0xfc] }
 0x1c2   :  { %v1747_v26 = vrot.slane %v1614_v17, 2 }
 0x1c8   :  { %1545 = vmatmul.mubr.bf16.vlgmr.msra.gmra.mrb[16].mxu1 %v885_v24  ;;  %v900_v24 = vpack.c.bf16 %v884_v15, %v882_v16 }
 0x1c9   :  { %2004 = vmatpush1.bf16.msra.mxu1 %v5327_v22  ;;  %4712 = vmatprep.mubr.msk.bf16.mxu1 %vm275_vm0, %v888_v27  ;;  %v1612_v22 = vld [vmem:[#allocation2 + $0x18] sm:$0x3]  ;;  %v1748_v27 = vrot.slane %v1616_v18, 2  ;;  %v1638_v18 = vld [vmem:[#allocation2 + $0xe8] sm:$0xfc] }
 0x1ca   :  { %2005 = vmatprep.subr.bf16.mxu1 %v5423_v32  ;;  %v1742_v31 = vrot.slane %v1612_v22, 2 }
 0x1cb   :  { %v1749_v36 = vsel %vm1737_vm7, %v1747_v26, %v1748_v27  ;;  %v1634_v26 = vld [vmem:[#allocation2 + $0xc8] sm:$0xfc]  ;;  %v1636_v27 = vld [vmem:[#allocation2 + $0xd8] sm:$0x3] }
 0x1cc   :  { %v1778_v57 = vrot.slane %v1636_v27, 2 }
 0x1cd   :  { %2006 = vmatpush1.bf16.msra.mxu1 %v5328_v30  ;;  %v1741_v30 = vrot.slane %v1610_v21, 2 }
 0x1ce   :  { %2007 = vmatprep.subr.bf16.mxu1 %v5423_v32 }
 0x1cf   :  { %v1743_v52 = vsel %vm1737_vm7, %v1741_v30, %v1742_v31  ;;  %v1627_v30 = vld [vmem:[#allocation2 + $0x90] sm:$0x3]  ;;  %v1629_v31 = vld [vmem:[#allocation2 + $0xa0] sm:$0xfc] }
 0x1d0   :  { %1553 = vmatmul.mubr.bf16.gmra.mrb[20].mxu1 %v887_v33  ;;  %v1613_v33 = vld [vmem:[#allocation2 + $0x20] sm:$0xfc]  ;;  %v1867_v10 = vpack.c.bf16 %v1749_v36, %v1743_v52  ;;  %v1777_v52 = vrot.slane %v1634_v26, 2 }
 0x1d1   :  { %4713 = vmatprep.mubr.msk.bf16.mxu1 %vm275_vm0, %v890_v39  ;;  %2008 = vmatpush1.bf16.msra.mxu1 %v5329_v37  ;;  %v1622_v37 = vld [vmem:[#allocation2 + $0x68] sm:$0xfc]  ;;  %v1624_v39 = vld [vmem:[#allocation2 + $0x78] sm:$0x3] }
 0x1d2   :  { %2009 = vmatprep.subr.bf16.mxu1 %v5423_v32  ;;  %v1759_v50 = vrot.slane %v1622_v37, 2  ;;  %v1760_v53 = vrot.slane %v1624_v39, 2 }
 0x1d4   :  { %v1761_v59 = vsel %vm1737_vm7, %v1759_v50, %v1760_v53  ;;  %v1646_v53 = vld [vmem:[#allocation2 + $0x128] sm:$0xfc] }
 0x1d5   :  { %2010 = vmatpush1.bf16.msra.mxu1 %v5330_v40  ;;  %v881_v40 = vld [vmem:[#allocation2 + $0x1c0] sm:$0xff] }
 0x1d6   :  { %2011 = vmatprep.subr.bf16.mxu1 %v5423_v32  ;;  %v899_v42 = vpack.c.bf16 %v883_v23, %v881_v40  ;;  %v1631_v23 = vld [vmem:[#allocation2 + $0xb0] sm:$0x3] }
 0x1d8   :  { %1561 = vmatmul.mubr.bf16.gmra.mrb[24].mxu1 %v889_v46  ;;  %v1611_v46 = vld [vmem:[#allocation2 + $0x10] sm:$0x3] }
 0x1d9   :  { %4714 = vmatprep.mubr.msk.bf16.mxu1 %vm275_vm0, %v892_v47  ;;  %2012 = vmatpush1.bf16.msra.mxu1 %v5331_v44  ;;  %v1609_v44 = vld [vmem:[#allocation2] sm:$0xfc]  ;;  %v1620_v47 = vld [vmem:[#allocation2 + $0x58] sm:$0x3] }
 0x1da   :  { %2013 = vmatprep.subr.bf16.mxu1 %v5423_v32 }
 0x1dd   :  { %2014 = vmatpush1.bf16.msra.mxu1 %v5332_v48  ;;  %v1744_v48 = vrot.slane %v1613_v33, 2  ;;  %v1783_v33 = vrot.slane %v1638_v18, 2 }
 0x1de   :  { %2015 = vmatprep.subr.bf16.mxu1 %v5423_v32 }
 0x1e0   :  { %1569 = vmatmul.mubr.bf16.gmra.mrb[28].mxu1 %v891_v55  ;;  %v1739_v55 = vrot.slane %v1611_v46, 2  ;;  %v1769_v46 = vrot.slane %v1631_v23, 2 }
 0x1e1   :  { %4715 = vmatprep.mubr.msk.bf16.mxu1 %vm275_vm0, %v894_v0  ;;  %2016 = vmatpush1.bf16.msra.mxu1 %v5333_v54  ;;  %v1738_v54 = vrot.slane %v1609_v44, 2  ;;  %v1754_v0 = vrot.slane %v1620_v47, 2  ;;  %v1768_v44 = vrot.slane %v1629_v31, 2 }
 0x1e2   :  { %2017 = vmatprep.subr.bf16.mxu1 %v5423_v32 }
 0x1e3   :  { %v1740_v1 = vsel %vm1737_vm7, %v1738_v54, %v1739_v55  ;;  %v1637_v54 = vld [vmem:[#allocation2 + $0xe0] sm:$0xfc]  ;;  %v1639_v55 = vld [vmem:[#allocation2 + $0xf0] sm:$0x3] }
 0x1e5   :  { %2018 = vmatpush1.bf16.msra.mxu1 %v5334_v8  ;;  %v1746_v8 = vsel %vm1737_vm7, %v1744_v48, %v1745_v49  ;;  %v1770_v48 = vsel %vm1737_vm7, %v1768_v44, %v1769_v46  ;;  %v1779_v49 = vsel %vm1737_vm7, %v1777_v52, %v1778_v57  ;;  %v1662_v52 = vld [vmem:[#allocation2 + $0x1a8] sm:$0xfc]  ;;  %v1653_v57 = vld [vmem:[#allocation2 + $0x160] sm:$0xfc] }
 0x1e6   :  { %2019 = vmatprep.subr.bf16.mxu1 %v5423_v32  ;;  %v1866_v5 = vpack.c.bf16 %v1746_v8, %v1740_v1  ;;  %v1781_v1 = vrot.slane %v1639_v55, 2  ;;  %v1658_v46 = vld [vmem:[#allocation2 + $0x188] sm:$0xfc] }
 0x1e8   :  { %1577 = vmatmul.mubr.bf16.gmra.mrb[32].mxu1 %v893_v63  ;;  %v1632_v63 = vld [vmem:[#allocation2 + $0xb8] sm:$0x3] }
 0x1e9   :  { %4716 = vmatprep.mubr.msk.bf16.mxu1 %vm275_vm0, %v896_v3  ;;  %2020 = vmatpush1.bf16.msra.mxu1 %v5335_v62  ;;  %v1623_v62 = vld [vmem:[#allocation2 + $0x70] sm:$0x3]  ;;  %v1755_v3 = vsel %vm1737_vm7, %v1753_v56, %v1754_v0  ;;  %v1772_v51 = vrot.slane %v1632_v63, 2  ;;  %v1648_v56 = vld [vmem:[#allocation2 + $0x138] sm:$0x3]  ;;  %v1780_v63 = vrot.slane %v1637_v54, 2 }
 0x1ea   :  { %2021 = vmatprep.subr.bf16.mxu1 %v5423_v32  ;;  %v1869_v6 = vpack.c.bf16 %v1761_v59, %v1755_v3  ;;  %v1642_v0 = vld [vmem:[#allocation2 + $0x108] sm:$0xfc]  ;;  %v1795_v3 = vrot.slane %v1646_v53, 2  ;;  %v1660_v53 = vld [vmem:[#allocation2 + $0x198] sm:$0x3]  ;;  %v1804_v54 = vrot.slane %v1653_v57, 2 }
 0x1eb   :  { %v1789_v7 = vrot.slane %v1642_v0, 2 }
 0x1ed   :  { %2022 = vmatpush1.bf16.msra.mxu1 %v5336_v4  ;;  %v1626_v4 = vld [vmem:[#allocation2 + $0x88] sm:$0xfc] }
 0x1ee   :  { %2023 = vmatprep.subr.bf16.mxu1 %v5423_v32  ;;  %v1765_v16 = vrot.slane %v1626_v4, 2  ;;  %v1796_v4 = vrot.slane %v1648_v56, 2  ;;  %v1819_v56 = vrot.slane %v1662_v52, 2 }
 0x1f0   :  { %1585 = vmatmul.mubr.bf16.gmra.mrb[36].mxu1 %v895_v9  ;;  %v1628_v9 = vld [vmem:[#allocation2 + $0x98] sm:$0x3] }
 0x1f1   :  { %4717 = vmatprep.mubr.msk.bf16.mxu1 %vm275_vm0, %v898_v25  ;;  %2024 = vmatpush1.bf16.msra.mxu1 %v5337_v45  ;;  %v1619_v45 = vld [vmem:[#allocation2 + $0x50] sm:$0x3]  ;;  %v1757_v25 = vrot.slane %v1623_v62, 2  ;;  %v1766_v17 = vrot.slane %v1628_v9, 2  ;;  %v1644_v62 = vld [vmem:[#allocation2 + $0x118] sm:$0x3]  ;;  %v1782_v9 = vsel %vm1737_vm7, %v1780_v63, %v1781_v1 }
 0x1f2   :  { %2025 = vmatprep.subr.bf16.mxu1 %v5423_v32  ;;  %v1751_v15 = vrot.slane %v1619_v45, 2  ;;  %v1790_v45 = vrot.slane %v1644_v62, 2  ;;  %v1657_v1 = vld [vmem:[#allocation2 + $0x180] sm:$0xfc] }
 0x1f3   :  { %v1758_v21 = vsel %vm1737_vm7, %v1756_v12, %v1757_v25  ;;  %v1767_v37 = vsel %vm1737_vm7, %v1765_v16, %v1766_v17  ;;  %v1797_v12 = vsel %vm1737_vm7, %v1795_v3, %v1796_v4  ;;  %v1641_v25 = vld [vmem:[#allocation2 + $0x100] sm:$0xfc]  ;;  %v1647_v16 = vld [vmem:[#allocation2 + $0x130] sm:$0x3]  ;;  %v1670_v3 = vld [vmem:[#allocation2 + $0x1e8] sm:$0xfc] }
 0x1f4   :  { %v1752_v36 = vsel %vm1737_vm7, %v1750_v35, %v1751_v15  ;;  %v1643_v35 = vld [vmem:[#allocation2 + $0x110] sm:$0x3]  ;;  %v1645_v15 = vld [vmem:[#allocation2 + $0x120] sm:$0xfc]  ;;  %v1791_v18 = vsel %vm1737_vm7, %v1789_v7, %v1790_v45 }
 0x1f5   :  { %2026 = vmatpush1.bf16.msra.mxu1 %v5338_v14  ;;  %v1771_v14 = vrot.slane %v1630_v60, 2  ;;  %v1868_v39 = vpack.c.bf16 %v1758_v21, %v1752_v36  ;;  %v1633_v60 = vld [vmem:[#allocation2 + $0xc0] sm:$0xfc]  ;;  %v1875_v21 = vpack.c.bf16 %v1797_v12, %v1791_v18  ;;  %v1787_v31 = vrot.slane %v1643_v35, 2  ;;  %v1659_v4 = vld [vmem:[#allocation2 + $0x190] sm:$0x3] }
 0x1f6   :  { %v1792_v23 = vrot.slane %v1645_v15, 2  ;;  %v1793_v36 = vrot.slane %v1647_v16, 2  ;;  %v1668_v12 = vld [vmem:[#allocation2 + $0x1d8] sm:$0x3]  ;;  %v1810_v35 = vrot.slane %v1657_v1, 2  ;;  %v1811_v15 = vrot.slane %v1659_v4, 2 }
 0x1f7   :  { %v1773_v22 = vsel %vm1737_vm7, %v1771_v14, %v1772_v51  ;;  %v1654_v14 = vld [vmem:[#allocation2 + $0x168] sm:$0xfc]  ;;  %v1656_v51 = vld [vmem:[#allocation2 + $0x178] sm:$0x3] }
 0x1f8   :  { %1593 = vmatmul.mubr.bf16.gmra.mrb[40].mxu1 %v897_v20  ;;  %v1640_v20 = vld [vmem:[#allocation2 + $0xf8] sm:$0x3]  ;;  %v1871_v40 = vpack.c.bf16 %v1773_v22, %v1767_v37  ;;  %v1650_v22 = vld [vmem:[#allocation2 + $0x148] sm:$0xfc]  ;;  %v1807_v26 = vrot.slane %v1654_v14, 2  ;;  %v1808_v27 = vrot.slane %v1656_v51, 2 }
 0x1f9   :  { %4718 = vmatprep.mubr.msk.bf16.mxu1 %vm275_vm0, %v900_v24  ;;  %v1625_v24 = vld [vmem:[#allocation2 + $0x80] sm:$0xfc]  ;;  %v1784_v38 = vrot.slane %v1640_v20, 2  ;;  %v1801_v37 = vrot.slane %v1650_v22, 2  ;;  %v5345_v1 = vld [vmem:[%s7225_s7 + $0x78] sm:$0xff]  }
 0x1fb   :  { %v1785_v50 = vsel %vm1737_vm7, %v1783_v33, %v1784_v38 }
 0x1fc   :  { %v1873_v59 = vpack.c.bf16 %v1785_v50, %v1779_v49  ;;  %v1649_v49 = vld [vmem:[#allocation2 + $0x140] sm:$0xfc]  ;;  %v1651_v50 = vld [vmem:[#allocation2 + $0x150] sm:$0x3] }
 0x200   :  { %1601 = vmatmul.mubr.bf16.gmra.mrb[44].mxu1 %v899_v42  ;;  %v1762_v42 = vrot.slane %v1625_v24, 2  ;;  %v1652_v24 = vld [vmem:[#allocation2 + $0x158] sm:$0x3] }
 0x201   :  { %4755 = vmatprep.mubr.msk.bf16.mxu1 %vm275_vm0, %v1867_v10  ;;  %v1763_v10 = vrot.slane %v1627_v30, 2  ;;  %v1786_v30 = vrot.slane %v1641_v25, 2  ;;  %v1802_v33 = vrot.slane %v1652_v24, 2  ;;  %v1672_v25 = vld [vmem:[#allocation2 + $0x1f8] sm:$0x3]  ;;  %v1812_v24 = vsel %vm1737_vm7, %v1810_v35, %v1811_v15 }
 0x202   :  { %v1832_v22 = vrot.slane %v1672_v25, 2 }
 0x203   :  { %v1764_v47 = vsel %vm1737_vm7, %v1762_v42, %v1763_v10  ;;  %v1788_v38 = vsel %vm1737_vm7, %v1786_v30, %v1787_v31  ;;  %v1655_v42 = vld [vmem:[#allocation2 + $0x170] sm:$0x3]  ;;  %v1664_v10 = vld [vmem:[#allocation2 + $0x1b8] sm:$0x3]  ;;  %v1803_v44 = vsel %vm1737_vm7, %v1801_v37, %v1802_v33  ;;  %v1669_v31 = vld [vmem:[#allocation2 + $0x1e0] sm:$0xfc] }
 0x204   :  { %v1870_v8 = vpack.c.bf16 %v1770_v48, %v1764_v47  ;;  %v1805_v55 = vrot.slane %v1655_v42, 2  ;;  %v1820_v0 = vrot.slane %v1664_v10, 2  ;;  %v1665_v37 = vld [vmem:[#allocation2 + $0x1c0] sm:$0xfc]  ;;  %v1667_v33 = vld [vmem:[#allocation2 + $0x1d0] sm:$0x3] }
 0x205   :  { %v1822_v52 = vrot.slane %v1665_v37, 2  ;;  %v1823_v57 = vrot.slane %v1667_v33, 2 }
 0x206   :  { %v1806_v62 = vsel %vm1737_vm7, %v1804_v54, %v1805_v55  ;;  %v1821_v63 = vsel %vm1737_vm7, %v1819_v56, %v1820_v0  ;;  %v6301_v55 = vld [vmem:[%s7224_s6] ss:$0 sm:$0xff]  ;;  %v5344_v56 = vld [vmem:[%s7225_s7 + $0x70] sm:$0xff]  }
 0x207   :  { %v1824_v10 = vsel %vm1737_vm7, %v1822_v52, %v1823_v57 }
 0x208   :  { %2036 = vmatmul.mubr.bf16.vlgmr.msra.gmra.mrb[16].mxu1 %v1866_v5  ;;  %v1774_v5 = vrot.slane %v1633_v60, 2  ;;  %v1813_v60 = vrot.slane %v1658_v46, 2  ;;  %v5339_v46 = vld [vmem:[%s7225_s7 + $0x48] sm:$0xff]  }
 0x209   :  { %4756 = vmatprep.mubr.msk.bf16.mxu1 %vm275_vm0, %v1869_v6  ;;  %v1775_v6 = vrot.slane %v1635_v61, 2  ;;  %v1814_v61 = vrot.slane %v1660_v53, 2  ;;  %3014 = vmatpush1.bf16.msra.mxu0 %v5339_v46  ;;  %v6295_v53 = vld [vmem:[%s7223_s5] ss:$0 sm:$0xff] }
 0x20a   :  { %3015 = vmatprep.subr.bf16.mxu0 %v5423_v32 }
 0x20b   :  { %v1776_v17 = vsel %vm1737_vm7, %v1774_v5, %v1775_v6  ;;  %v1661_v5 = vld [vmem:[#allocation2 + $0x1a0] sm:$0xfc]  ;;  %v1663_v6 = vld [vmem:[#allocation2 + $0x1b0] sm:$0x3]  ;;  %v1815_v45 = vsel %vm1737_vm7, %v1813_v60, %v1814_v61 }
 0x20c   :  { %v1872_v20 = vpack.c.bf16 %v1782_v9, %v1776_v17  ;;  %v1666_v9 = vld [vmem:[#allocation2 + $0x1c8] sm:$0xfc]  ;;  %v1879_v51 = vpack.c.bf16 %v1821_v63, %v1815_v45  ;;  %v1816_v16 = vrot.slane %v1661_v5, 2  ;;  %v1817_v17 = vrot.slane %v1663_v6, 2  ;;  %v5346_v45 = vld [vmem:[%s7225_s7 + $0x80] sm:$0xff]  }
 0x20d   :  { %v1825_v18 = vrot.slane %v1666_v9, 2 }
 0x210   :  { %2044 = vmatmul.mubr.bf16.gmra.mrb[20].mxu1 %v1868_v39  ;;  %v1794_v39 = vsel %vm1737_vm7, %v1792_v23, %v1793_v36  ;;  %v1671_v23 = vld [vmem:[#allocation2 + $0x1f0] sm:$0x3] }
 0x211   :  { %4757 = vmatprep.mubr.msk.bf16.mxu1 %vm275_vm0, %v1871_v40  ;;  %v1809_v40 = vsel %vm1737_vm7, %v1807_v26, %v1808_v27  ;;  %v1874_v47 = vpack.c.bf16 %v1794_v39, %v1788_v38  ;;  %v1818_v26 = vsel %vm1737_vm7, %v1816_v16, %v1817_v17  ;;  %v1828_v39 = vrot.slane %v1669_v31, 2  ;;  %v5347_v17 = vld [vmem:[%s7225_s7 + $0x88] sm:$0xff]  }
 0x212   :  { %v1877_v48 = vpack.c.bf16 %v1809_v40, %v1803_v44  ;;  %v1878_v36 = vpack.c.bf16 %v1818_v26, %v1812_v24  ;;  %v1829_v40 = vrot.slane %v1671_v23, 2 }
 0x214   :  { %v1830_v42 = vsel %vm1737_vm7, %v1828_v39, %v1829_v40 }
 0x215   :  { %v1880_v44 = vpack.c.bf16 %v1830_v42, %v1824_v10 }
 0x218   :  { %2052 = vmatmul.mubr.bf16.gmra.mrb[24].mxu1 %v1870_v8  ;;  %v1798_v8 = vrot.slane %v1649_v49, 2  ;;  %v5342_v49 = vld [vmem:[%s7225_s7 + $0x60] sm:$0xff]  }
 0x219   :  { %4758 = vmatprep.mubr.msk.bf16.mxu1 %vm275_vm0, %v1873_v59  ;;  %v1799_v59 = vrot.slane %v1651_v50, 2  ;;  %v5343_v50 = vld [vmem:[%s7225_s7 + $0x68] sm:$0xff]  }
 0x21b   :  { %v1800_v7 = vsel %vm1737_vm7, %v1798_v8, %v1799_v59 }
 0x21c   :  { %v1876_v14 = vpack.c.bf16 %v1806_v62, %v1800_v7 }
 0x220   :  { %2060 = vmatmul.mubr.bf16.gmra.mrb[28].mxu1 %v1872_v20  ;;  %v1826_v20 = vrot.slane %v1668_v12, 2 }
 0x221   :  { %4759 = vmatprep.mubr.msk.bf16.mxu1 %vm275_vm0, %v1875_v21  ;;  %v1831_v21 = vrot.slane %v1670_v3, 2 }
 0x222   :  { %v1827_v27 = vsel %vm1737_vm7, %v1825_v18, %v1826_v20 }
 0x223   :  { %v1833_v30 = vsel %vm1737_vm7, %v1831_v21, %v1832_v22 }
 0x224   :  { %v1881_v38 = vpack.c.bf16 %v1833_v30, %v1827_v27 }
 0x228   :  { %2068 = vmatmul.mubr.bf16.gmra.mrb[32].mxu1 %v1874_v47  ;;  %v5340_v47 = vld [vmem:[%s7225_s7 + $0x50] sm:$0xff]  }
 0x229   :  { %4760 = vmatprep.mubr.msk.bf16.mxu1 %vm275_vm0, %v1877_v48  ;;  %3016 = vmatpush1.bf16.msra.mxu0 %v5340_v47  ;;  %v5341_v48 = vld [vmem:[%s7225_s7 + $0x58] sm:$0xff]  }
 0x22a   :  { %3017 = vmatprep.subr.bf16.mxu0 %v5423_v32 }
 0x22d   :  { %3018 = vmatpush1.bf16.msra.mxu0 %v5341_v48 }
 0x22e   :  { %3019 = vmatprep.subr.bf16.mxu0 %v5423_v32 }
 0x230   :  { %2076 = vmatmul.mubr.bf16.gmra.mrb[36].mxu1 %v1876_v14 }
 0x231   :  { %4761 = vmatprep.mubr.msk.bf16.mxu1 %vm275_vm0, %v1879_v51  ;;  %3020 = vmatpush1.bf16.msra.mxu0 %v5342_v49 }
 0x232   :  { %3021 = vmatprep.subr.bf16.mxu0 %v5423_v32 }
 0x235   :  { %3022 = vmatpush1.bf16.msra.mxu0 %v5343_v50 }
 0x236   :  { %3023 = vmatprep.subr.bf16.mxu0 %v5423_v32 }
 0x238   :  { %2084 = vmatmul.mubr.bf16.gmra.mrb[40].mxu1 %v1878_v36 }
 0x239   :  { %4762 = vmatprep.mubr.msk.bf16.mxu1 %vm275_vm0, %v1881_v38  ;;  %3024 = vmatpush1.bf16.msra.mxu0 %v5344_v56 }
 0x23a   :  { %3025 = vmatprep.subr.bf16.mxu0 %v5423_v32 }
 0x23d   :  { %3026 = vmatpush1.bf16.msra.mxu0 %v5345_v1 }
 0x23e   :  { %3027 = vmatprep.subr.bf16.mxu0 %v5423_v32 }
 0x240   :  { %2092 = vmatmul.mubr.bf16.gmra.mrb[44].mxu1 %v1880_v44 }
 0x241   :  { %4239 = vmatprep.mubr.bf16.mxu1 %v5423_v32  ;;  %3028 = vmatpush1.bf16.msra.mxu0 %v5346_v45 }
 0x242   :  { %3029 = vmatprep.subr.bf16.mxu0 %v5423_v32 }
 0x245   :  { %3030 = vmatpush1.bf16.msra.mxu0 %v5347_v17 }
 0x246   :  { %3188 = vmatprep.subr.bf16.mxu0 %v5423_v32 }
 0x2db   :  { %v2037_v54 = vpop.f32.mrb[16].mxu1 }
 0x2dc   :  { %v2123_v0 = vmul.f32 %v6295_v53, %v2037_v54  ;;  %v2039_v8 = vpop.f32.mrb[17].mxu1 }
 0x2dd   :  { %v2040_v59 = vpop.f32.mrb[18].mxu1 }
 0x2de   :  { %v2146_v60 = vadd.f32 %v6301_v55, %v2123_v0  ;;  %v2124_v61 = vmul.f32 %v6295_v53, %v2040_v59  ;;  %v2042_v62 = vpop.f32.mrb[19].mxu1 }
 0x2e0   :  { %v2162_v3 = vmax.f32 %v2146_v60, 0.0  ;;  %v2147_v4 = vadd.f32 %v6301_v55, %v2124_v61 }
 0x2e2   :  { %v2163_v5 = vmax.f32 %v2147_v4, 0.0  ;;  %v2295_v6 = vrot.slane %v2162_v3, 7 }
 0x2e3   :  { %v2045_v7 = vpop.f32.mrb[20].mxu1 }
 0x2e4   :  { %v2125_v9 = vmul.f32 %v6295_v53, %v2045_v7  ;;  %2384 = vrot.lane.b32.xlu1 %v2295_v6, %s5425_s21  ;;  %2309 = vrot.lane.b32.xlu0 %v2295_v6, %s5426_s22  ;;  %v2047_v12 = vpop.f32.mrb[21].mxu1  ;;  %v6422_v25 = vpack.i.bf16 %v2163_v5, %v2162_v3  ;;  %v2296_v16 = vrot.slane %v2163_v5, 7 }
 0x2e5   :  { %v2048_v14 = vpop.f32.mrb[22].mxu1 }
 0x2e6   :  { %v2148_v51 = vadd.f32 %v6301_v55, %v2125_v9  ;;  %v2126_v35 = vmul.f32 %v6295_v53, %v2048_v14  ;;  %v2050_v15 = vpop.f32.mrb[23].mxu1 }
 0x2e8   :  { %v2164_v18 = vmax.f32 %v2148_v51, 0.0  ;;  %v2149_v20 = vadd.f32 %v6301_v55, %v2126_v35  ;;  %2466 = vrot.lane.b32.xlu1 %v2296_v16, %s5424_s15  ;;  %2386 = vrot.lane.b32.xlu0 %v2296_v16, %s5425_s21 }
 0x2ea   :  { %v2165_v21 = vmax.f32 %v2149_v20, 0.0  ;;  %v2297_v22 = vrot.slane %v2164_v18, 7 }
 0x2eb   :  { %v2053_v24 = vpop.f32.mrb[24].mxu1 }
 0x2ec   :  { %v2127_v26 = vmul.f32 %v6295_v53, %v2053_v24  ;;  %2311 = vrot.lane.b32.xlu1 %v2296_v16, %s5426_s22  ;;  %2468 = vrot.lane.b32.xlu0 %v2297_v22, %s5424_s15  ;;  %v2055_v27 = vpop.f32.mrb[25].mxu1  ;;  %v6437_v30 = vpack.i.bf16 %v2165_v21, %v2164_v18  ;;  %v2298_v40 = vrot.slane %v2165_v21, 7 }
 0x2ed   :  { %v2056_v31 = vpop.f32.mrb[26].mxu1 }
 0x2ee   :  { %v2150_v23 = vadd.f32 %v6301_v55, %v2127_v26  ;;  %v2128_v36 = vmul.f32 %v6295_v53, %v2056_v31  ;;  %v2058_v37 = vpop.f32.mrb[27].mxu1 }
 0x2f0   :  { %v2151_v33 = vadd.f32 %v6301_v55, %v2128_v36  ;;  %2388 = vrot.lane.b32.xlu1 %v2297_v22, %s5425_s21  ;;  %2313 = vrot.lane.b32.xlu0 %v2297_v22, %s5426_s22  ;;  %v2166_v38 = vmax.f32 %v2150_v23, 0.0 }
 0x2f2   :  { %v2167_v39 = vmax.f32 %v2151_v33, 0.0  ;;  %v2299_v49 = vrot.slane %v2166_v38, 7 }
 0x2f3   :  { %v2061_v52 = vpop.f32.mrb[28].mxu1 }
 0x2f4   :  { %v2129_v57 = vmul.f32 %v6295_v53, %v2061_v52  ;;  %2470 = vrot.lane.b32.xlu1 %v2298_v40, %s5424_s15  ;;  %2390 = vrot.lane.b32.xlu0 %v2298_v40, %s5425_s21  ;;  %v2063_v42 = vpop.f32.mrb[29].mxu1  ;;  %v6447_v10 = vpack.i.bf16 %v2167_v39, %v2166_v38  ;;  %v2300_v3 = vrot.slane %v2167_v39, 7 }
 0x2f5   :  { %v2064_v44 = vpop.f32.mrb[30].mxu1 }
 0x2f6   :  { %v2152_v46 = vadd.f32 %v6301_v55, %v2129_v57  ;;  %v2130_v47 = vmul.f32 %v6295_v53, %v2064_v44  ;;  %v2066_v48 = vpop.f32.mrb[31].mxu1 }
 0x2f8   :  { %v2153_v50 = vadd.f32 %v6301_v55, %v2130_v47  ;;  %2315 = vrot.lane.b32.xlu1 %v2298_v40, %s5426_s22  ;;  %2472 = vrot.lane.b32.xlu0 %v2299_v49, %s5424_s15  ;;  %v2168_v54 = vmax.f32 %v2152_v46, 0.0 }
 0x2fa   :  { %v2169_v56 = vmax.f32 %v2153_v50, 0.0  ;;  %v2301_v7 = vrot.slane %v2168_v54, 7 }
 0x2fb   :  { %v2069_v0 = vpop.f32.mrb[32].mxu1 }
 0x2fc   :  { %v2131_v8 = vmul.f32 %v6295_v53, %v2069_v0  ;;  %2392 = vrot.lane.b32.xlu1 %v2299_v49, %s5425_s21  ;;  %2317 = vrot.lane.b32.xlu0 %v2299_v49, %s5426_s22  ;;  %v2071_v59 = vpop.f32.mrb[33].mxu1  ;;  %v6457_v60 = vpack.i.bf16 %v2169_v56, %v2168_v54  ;;  %v2382_v21 = vrot.slane %v2169_v56, 7 }
 0x2fd   :  { %v2072_v61 = vpop.f32.mrb[34].mxu1 }
 0x2fe   :  { %v2154_v62 = vadd.f32 %v6301_v55, %v2131_v8  ;;  %v2132_v63 = vmul.f32 %v6295_v53, %v2072_v61  ;;  %v2074_v1 = vpop.f32.mrb[35].mxu1 }
 0x300   :  { %v2155_v4 = vadd.f32 %v6301_v55, %v2132_v63  ;;  %2474 = vrot.lane.b32.xlu1 %v2300_v3, %s5424_s15  ;;  %2394 = vrot.lane.b32.xlu0 %v2300_v3, %s5425_s21  ;;  %v2170_v5 = vmax.f32 %v2154_v62, 0.0 }
 0x302   :  { %v2171_v6 = vmax.f32 %v2155_v4, 0.0  ;;  %v2302_v33 = vrot.slane %v2170_v5, 7 }
 0x303   :  { %v2077_v45 = vpop.f32.mrb[36].mxu1 }
 0x304   :  { %v2133_v9 = vmul.f32 %v6295_v53, %v2077_v45  ;;  %2319 = vrot.lane.b32.xlu1 %v2300_v3, %s5426_s22  ;;  %2476 = vrot.lane.b32.xlu0 %v2301_v7, %s5424_s15  ;;  %v2079_v12 = vpop.f32.mrb[37].mxu1  ;;  %v6467_v14 = vpack.i.bf16 %v2171_v6, %v2170_v5  ;;  %v2303_v52 = vrot.slane %v2171_v6, 7 }
 0x305   :  { %v2080_v51 = vpop.f32.mrb[38].mxu1 }
 0x306   :  { %v2156_v35 = vadd.f32 %v6301_v55, %v2133_v9  ;;  %v2134_v15 = vmul.f32 %v6295_v53, %v2080_v51  ;;  %v2082_v16 = vpop.f32.mrb[39].mxu1 }
 0x308   :  { %v2157_v17 = vadd.f32 %v6301_v55, %v2134_v15  ;;  %2396 = vrot.lane.b32.xlu1 %v2301_v7, %s5425_s21  ;;  %2321 = vrot.lane.b32.xlu0 %v2301_v7, %s5426_s22  ;;  %v2172_v18 = vmax.f32 %v2156_v35, 0.0 }
 0x30a   :  { %v2173_v20 = vmax.f32 %v2157_v17, 0.0  ;;  %v2304_v54 = vrot.slane %v2172_v18, 7 }
 0x30b   :  { %v2085_v22 = vpop.f32.mrb[40].mxu1 }
 0x30c   :  { %v2135_v24 = vmul.f32 %v6295_v53, %v2085_v22  ;;  %2478 = vrot.lane.b32.xlu1 %v2382_v21, %s5424_s15  ;;  %2398 = vrot.lane.b32.xlu0 %v2382_v21, %s5425_s21  ;;  %v2087_v26 = vpop.f32.mrb[41].mxu1  ;;  %v6477_v27 = vpack.i.bf16 %v2173_v20, %v2172_v18  ;;  %v2305_v61 = vrot.slane %v2173_v20, 7 }
 0x30d   :  { %v2088_v31 = vpop.f32.mrb[42].mxu1 }
 0x30e   :  { %v2158_v23 = vadd.f32 %v6301_v55, %v2135_v24  ;;  %v2136_v36 = vmul.f32 %v6295_v53, %v2088_v31  ;;  %v2090_v37 = vpop.f32.mrb[43].mxu1 }
 0x310   :  { %v2159_v38 = vadd.f32 %v6301_v55, %v2136_v36  ;;  %2400 = vrot.lane.b32.xlu1 %v2302_v33, %s5425_s21  ;;  %2323 = vrot.lane.b32.xlu0 %v2302_v33, %s5426_s22  ;;  %v2174_v39 = vmax.f32 %v2158_v23, 0.0 }
 0x312   :  { %v2175_v40 = vmax.f32 %v2159_v38, 0.0 }
 0x313   :  { %v2093_v57 = vpop.f32.mrb[44].mxu1 }
 0x314   :  { %v2137_v42 = vmul.f32 %v6295_v53, %v2093_v57  ;;  %2480 = vrot.lane.b32.xlu1 %v2303_v52, %s5424_s15  ;;  %2402 = vrot.lane.b32.xlu0 %v2303_v52, %s5425_s21  ;;  %v2095_v44 = vpop.f32.mrb[45].mxu1  ;;  %v6487_v46 = vpack.i.bf16 %v2175_v40, %v2174_v39 }
 0x315   :  { %v2096_v47 = vpop.f32.mrb[46].mxu1 }
 0x316   :  { %v2160_v48 = vadd.f32 %v6301_v55, %v2137_v42  ;;  %v2138_v49 = vmul.f32 %v6295_v53, %v2096_v47  ;;  %v2098_v50 = vpop.f32.mrb[47].mxu1  ;;  %v2306_v53 = vrot.slane %v2174_v39, 7  ;;  %v5348_v42 = vld [vmem:[%s7225_s7] sm:$0xff]   ;;  %v5349_v47 = vld [vmem:[%s7225_s7 + $0x8] sm:$0xff]  }
 0x318   :  { %v2161_v56 = vadd.f32 %v6301_v55, %v2138_v49  ;;  %2325 = vrot.lane.b32.xlu1 %v2303_v52, %s5426_s22  ;;  %2482 = vrot.lane.b32.xlu0 %v2304_v54, %s5424_s15  ;;  %v2176_v0 = vmax.f32 %v2160_v48, 0.0  ;;  %v2307_v55 = vrot.slane %v2175_v40, 7 }
 0x31a   :  { %v2177_v8 = vmax.f32 %v2161_v56, 0.0  ;;  %v2308_v62 = vrot.slane %v2176_v0, 7 }
 0x31c   :  { %2404 = vrot.lane.b32.xlu1 %v2304_v54, %s5425_s21  ;;  %2327 = vrot.lane.b32.xlu0 %v2304_v54, %s5426_s22  ;;  %v6496_v59 = vpack.i.bf16 %v2177_v8, %v2176_v0  ;;  %v2383_v63 = vrot.slane %v2177_v8, 7 }
 0x320   :  { %2484 = vrot.lane.b32.xlu1 %v2305_v61, %s5424_s15  ;;  %2406 = vrot.lane.b32.xlu0 %v2305_v61, %s5425_s21 }
 0x324   :  { %2329 = vrot.lane.b32.xlu1 %v2305_v61, %s5426_s22  ;;  %2486 = vrot.lane.b32.xlu0 %v2306_v53, %s5424_s15 }
 0x328   :  { %2408 = vrot.lane.b32.xlu1 %v2306_v53, %s5425_s21  ;;  %2331 = vrot.lane.b32.xlu0 %v2306_v53, %s5426_s22 }
 0x32c   :  { %2488 = vrot.lane.b32.xlu1 %v2307_v55, %s5424_s15  ;;  %2410 = vrot.lane.b32.xlu0 %v2307_v55, %s5425_s21 }
 0x330   :  { %2333 = vrot.lane.b32.xlu1 %v2307_v55, %s5426_s22  ;;  %2490 = vrot.lane.b32.xlu0 %v2308_v62, %s5424_s15 }
 0x334   :  { %2412 = vrot.lane.b32.xlu1 %v2308_v62, %s5425_s21  ;;  %2335 = vrot.lane.b32.xlu0 %v2308_v62, %s5426_s22  ;;  %v5350_v62 = vld [vmem:[%s7225_s7 + $0x10] sm:$0xff]  }
 0x338   :  { %2492 = vrot.lane.b32.xlu1 %v2383_v63, %s5424_s15  ;;  %2414 = vrot.lane.b32.xlu0 %v2383_v63, %s5425_s21 }
 0x33c   :  { %5169 = vrot.lane.b32.xlu1 %v6422_v25, %s5427_s24  ;;  %5164 = vrot.lane.b32.xlu0 %v5908_v19, %s5424_s15 }
 0x340   :  { %5179 = vrot.lane.b32.xlu1 %v5935_v43, %s5424_s15 }
 0x356   :  { %v2385_v1 = vpop.permute.xlu1 %2384  ;;  %v2310_v3 = vpop.permute.xlu0 %2309 }
 0x357   :  { %2433 = vst.msk [vmem:[#allocation3] sm:$0xfe] %vm2432_vm13, %v2385_v1 }
 0x358   :  { %2435 = vst.msk [vmem:[#allocation3 + $0x10] sm:$0x1] %vm2434_vm14, %v2385_v1 }
 0x359   :  { %2352 = vst.msk [vmem:[#allocation3 + $0x20] sm:$0xfe] %vm2275_vm8, %v2310_v3 }
 0x35a   :  { %2353 = vst.msk [vmem:[#allocation3 + $0x30] sm:$0x1] %vm2277_vm9, %v2310_v3  ;;  %v2467_v25 = vpop.permute.xlu1 %2466  ;;  %v2387_v4 = vpop.permute.xlu0 %2386 }
 0x35b   :  { %2509 = vst.msk [vmem:[#allocation3] sm:$0xfe] %vm2508_vm15, %v2467_v25 }
 0x35c   :  { %2511 = vst.msk [vmem:[#allocation3 + $0x8] sm:$0xfe] %vm2510_vm10, %v2467_v25 }
 0x35d   :  { %2513 = vst.msk [vmem:[#allocation3 + $0x10] sm:$0x1] %vm2512_vm1, %v2467_v25 }
 0x35e   :  { %2515 = vst.msk [vmem:[#allocation3 + $0x18] sm:$0x1] %vm2514_vm11, %v2467_v25  ;;  %v2312_v19 = vpop.permute.xlu1 %2311  ;;  %v2469_v43 = vpop.permute.xlu0 %2468 }
 0x35f   :  { %2436 = vst.msk [vmem:[#allocation3 + $0x20] sm:$0xfe] %vm2432_vm13, %v2387_v4 }
 0x360   :  { %2437 = vst.msk [vmem:[#allocation3 + $0x30] sm:$0x1] %vm2434_vm14, %v2387_v4 }
 0x361   :  { %2354 = vst.msk [vmem:[#allocation3 + $0x40] sm:$0xfe] %vm2275_vm8, %v2312_v19 }
 0x362   :  { %2355 = vst.msk [vmem:[#allocation3 + $0x50] sm:$0x1] %vm2277_vm9, %v2312_v19  ;;  %v2389_v5 = vpop.permute.xlu1 %2388  ;;  %v2314_v6 = vpop.permute.xlu0 %2313  ;;  %v2643_v9 = vld [vmem:[#allocation3] sm:$0xfe] }
 0x363   :  { %2516 = vst.msk [vmem:[#allocation3 + $0x20] sm:$0xfe] %vm2508_vm15, %v2469_v43  ;;  %v2644_v7 = vld [vmem:[#allocation3 + $0x8] sm:$0xfe]  ;;  %v2771_v15 = vrot.slane %v2643_v9, 1 }
 0x364   :  { %2517 = vst.msk [vmem:[#allocation3 + $0x28] sm:$0xfe] %vm2510_vm10, %v2469_v43  ;;  %v2645_v12 = vld [vmem:[#allocation3 + $0x10] sm:$0x1]  ;;  %v2774_v51 = vrot.slane %v2644_v7, 1 }
 0x365   :  { %2518 = vst.msk [vmem:[#allocation3 + $0x30] sm:$0x1] %vm2512_vm1, %v2469_v43  ;;  %v2646_v45 = vld [vmem:[#allocation3 + $0x18] sm:$0x1]  ;;  %v2772_v16 = vrot.slane %v2645_v12, 1 }
 0x366   :  { %2519 = vst.msk [vmem:[#allocation3 + $0x38] sm:$0x1] %vm2514_vm11, %v2469_v43  ;;  %v2775_v35 = vrot.slane %v2646_v45, 1  ;;  %v2471_v17 = vpop.permute.xlu1 %2470  ;;  %v2391_v18 = vpop.permute.xlu0 %2390 }
 0x367   :  { %2438 = vst.msk [vmem:[#allocation3 + $0x40] sm:$0xfe] %vm2432_vm13, %v2389_v5  ;;  %v2773_v52 = vsel %vm1053_vm4, %v2771_v15, %v2772_v16 }
 0x368   :  { %2439 = vst.msk [vmem:[#allocation3 + $0x50] sm:$0x1] %vm2434_vm14, %v2389_v5  ;;  %v2776_v37 = vsel %vm1053_vm4, %v2774_v51, %v2775_v35 }
 0x369   :  { %2356 = vst.msk [vmem:[#allocation3 + $0x60] sm:$0xfe] %vm2275_vm8, %v2314_v6 }
 0x36a   :  { %2357 = vst.msk [vmem:[#allocation3 + $0x70] sm:$0x1] %vm2277_vm9, %v2314_v6  ;;  %v2647_v22 = vld [vmem:[#allocation3 + $0x20] sm:$0xfe]  ;;  %v2316_v38 = vpop.permute.xlu1 %2315  ;;  %v2473_v39 = vpop.permute.xlu0 %2472 }
 0x36b   :  { %v2648_v20 = vld [vmem:[#allocation3 + $0x28] sm:$0xfe]  ;;  %2520 = vst.msk [vmem:[#allocation3 + $0x40] sm:$0xfe] %vm2508_vm15, %v2471_v17  ;;  %v2777_v23 = vrot.slane %v2647_v22, 1 }
 0x36c   :  { %2521 = vst.msk [vmem:[#allocation3 + $0x48] sm:$0xfe] %vm2510_vm10, %v2471_v17  ;;  %v2780_v24 = vrot.slane %v2648_v20, 1  ;;  %v2649_v31 = vld [vmem:[#allocation3 + $0x30] sm:$0x1]  ;;  %v5352_v20 = vld [vmem:[%s7225_s7 + $0x20] sm:$0xff]  }
 0x36d   :  { %v2650_v21 = vld [vmem:[#allocation3 + $0x38] sm:$0x1]  ;;  %2522 = vst.msk [vmem:[#allocation3 + $0x50] sm:$0x1] %vm2512_vm1, %v2471_v17  ;;  %v2778_v36 = vrot.slane %v2649_v31, 1 }
 0x36e   :  { %2523 = vst.msk [vmem:[#allocation3 + $0x58] sm:$0x1] %vm2514_vm11, %v2471_v17  ;;  %v2781_v26 = vrot.slane %v2650_v21, 1  ;;  %2527 = vst.msk [vmem:[#allocation3 + $0x78] sm:$0x1] %vm2514_vm11, %v2473_v39  ;;  %v2393_v48 = vpop.permute.xlu1 %2392  ;;  %v2318_v49 = vpop.permute.xlu0 %2317  ;;  %v5351_v17 = vld [vmem:[%s7225_s7 + $0x18] sm:$0xff]  }
 0x36f   :  { %2440 = vst.msk [vmem:[#allocation3 + $0x60] sm:$0xfe] %vm2432_vm13, %v2391_v18  ;;  %v2779_v57 = vsel %vm1053_vm4, %v2777_v23, %v2778_v36 }
 0x370   :  { %2441 = vst.msk [vmem:[#allocation3 + $0x70] sm:$0x1] %vm2434_vm14, %v2391_v18  ;;  %v2782_v33 = vsel %vm1053_vm4, %v2780_v24, %v2781_v26  ;;  %v2899_v44 = vpack.c.bf16 %v2779_v57, %v2773_v52 }
 0x371   :  { %v2900_v40 = vpack.c.bf16 %v2782_v33, %v2776_v37  ;;  %2358 = vst.msk [vmem:[#allocation3 + $0x80] sm:$0xfe] %vm2275_vm8, %v2316_v38  ;;  %2360 = vst.msk [vmem:[#allocation3 + $0xa0] sm:$0xfe] %vm2275_vm8, %v2318_v49 }
 0x372   :  { %2359 = vst.msk [vmem:[#allocation3 + $0x90] sm:$0x1] %vm2277_vm9, %v2316_v38  ;;  %v2651_v56 = vld [vmem:[#allocation3 + $0x40] sm:$0xfe]  ;;  %2361 = vst.msk [vmem:[#allocation3 + $0xb0] sm:$0x1] %vm2277_vm9, %v2318_v49  ;;  %v2475_v63 = vpop.permute.xlu1 %2474  ;;  %v2395_v1 = vpop.permute.xlu0 %2394 }
 0x373   :  { %2524 = vst.msk [vmem:[#allocation3 + $0x60] sm:$0xfe] %vm2508_vm15, %v2473_v39  ;;  %4792 = vmatprep.mubr.msk.bf16.mxu0 %vm2988_vm2, %v2900_v40  ;;  %v2652_v50 = vld [vmem:[#allocation3 + $0x48] sm:$0xfe]  ;;  %v2783_v53 = vrot.slane %v2651_v56, 1 }
 0x374   :  { %2525 = vst.msk [vmem:[#allocation3 + $0x68] sm:$0xfe] %vm2510_vm10, %v2473_v39  ;;  %3046 = vmatmul.mubr.bf16.vlgmr.msra.gmra.mrb[32].mxu0 %v2899_v44  ;;  %v2653_v0 = vld [vmem:[#allocation3 + $0x50] sm:$0x1]  ;;  %v2786_v8 = vrot.slane %v2652_v50, 1 }
 0x375   :  { %2526 = vst.msk [vmem:[#allocation3 + $0x70] sm:$0x1] %vm2512_vm1, %v2473_v39  ;;  %v2654_v54 = vld [vmem:[#allocation3 + $0x58] sm:$0x1]  ;;  %3189 = vmatpush1.bf16.msra.mxu0 %v5348_v42  ;;  %v2784_v55 = vrot.slane %v2653_v0, 1  ;;  %v5353_v39 = vld [vmem:[%s7225_s7 + $0x28] sm:$0xff]  }
 0x376   :  { %2442 = vst.msk [vmem:[#allocation3 + $0x80] sm:$0xfe] %vm2432_vm13, %v2393_v48  ;;  %3190 = vmatprep.subr.bf16.mxu0 %v5423_v32  ;;  %v2787_v61 = vrot.slane %v2654_v54, 1  ;;  %v2658_v25 = vld [vmem:[#allocation3 + $0x78] sm:$0x1]  ;;  %v2320_v12 = vpop.permute.xlu1 %2319  ;;  %v2477_v51 = vpop.permute.xlu0 %2476 }
 0x377   :  { %2443 = vst.msk [vmem:[#allocation3 + $0x90] sm:$0x1] %vm2434_vm14, %v2393_v48  ;;  %2445 = vst.msk [vmem:[#allocation3 + $0xb0] sm:$0x1] %vm2434_vm14, %v2395_v1  ;;  %v2793_v43 = vrot.slane %v2658_v25, 1  ;;  %v2785_v15 = vsel %vm1053_vm4, %v2783_v53, %v2784_v55 }
 0x378   :  { %2528 = vst.msk [vmem:[#allocation3 + $0x80] sm:$0xfe] %vm2508_vm15, %v2475_v63  ;;  %v2788_v45 = vsel %vm1053_vm4, %v2786_v8, %v2787_v61  ;;  %v2672_v56 = vld [vmem:[#allocation3 + $0xe8] sm:$0xfe]  ;;  %v2674_v0 = vld [vmem:[#allocation3 + $0xf8] sm:$0x1] }
 0x379   :  { %3191 = vmatpush1.bf16.msra.mxu0 %v5349_v47  ;;  %2529 = vst.msk [vmem:[#allocation3 + $0x88] sm:$0xfe] %vm2510_vm10, %v2475_v63  ;;  %2533 = vst.msk [vmem:[#allocation3 + $0xa8] sm:$0xfe] %vm2510_vm10, %v2477_v51 }
 0x37a   :  { %v2655_v4 = vld [vmem:[#allocation3 + $0x60] sm:$0xfe]  ;;  %2530 = vst.msk [vmem:[#allocation3 + $0x90] sm:$0x1] %vm2512_vm1, %v2475_v63  ;;  %3192 = vmatprep.subr.bf16.mxu0 %v5423_v32  ;;  %2534 = vst.msk [vmem:[#allocation3 + $0xb0] sm:$0x1] %vm2512_vm1, %v2477_v51  ;;  %v2397_v21 = vpop.permute.xlu1 %2396  ;;  %v2322_v22 = vpop.permute.xlu0 %2321 }
 0x37b   :  { %v2656_v3 = vld [vmem:[#allocation3 + $0x68] sm:$0xfe]  ;;  %2531 = vst.msk [vmem:[#allocation3 + $0x98] sm:$0x1] %vm2514_vm11, %v2475_v63  ;;  %v2789_v6 = vrot.slane %v2655_v4, 1  ;;  %v2816_v4 = vrot.slane %v2672_v56, 1 }
 0x37c   :  { %2444 = vst.msk [vmem:[#allocation3 + $0xa0] sm:$0xfe] %vm2432_vm13, %v2395_v1  ;;  %v2792_v19 = vrot.slane %v2656_v3, 1  ;;  %v2657_v5 = vld [vmem:[#allocation3 + $0x70] sm:$0x1] }
 0x37d   :  { %v2790_v7 = vrot.slane %v2657_v5, 1  ;;  %3193 = vmatpush1.bf16.msra.mxu0 %v5350_v62  ;;  %2362 = vst.msk [vmem:[#allocation3 + $0xc0] sm:$0xfe] %vm2275_vm8, %v2320_v12  ;;  %2364 = vst.msk [vmem:[#allocation3 + $0xe0] sm:$0xfe] %vm2275_vm8, %v2322_v22  ;;  %v5354_v3 = vld [vmem:[%s7225_s7 + $0x30] sm:$0xff]  }
 0x37e   :  { %v2794_v9 = vsel %vm1053_vm4, %v2792_v19, %v2793_v43  ;;  %2363 = vst.msk [vmem:[#allocation3 + $0xd0] sm:$0x1] %vm2277_vm9, %v2320_v12  ;;  %3194 = vmatprep.subr.bf16.mxu0 %v5423_v32  ;;  %2365 = vst.msk [vmem:[#allocation3 + $0xf0] sm:$0x1] %vm2277_vm9, %v2322_v22  ;;  %v2479_v40 = vpop.permute.xlu1 %2478  ;;  %v2399_v52 = vpop.permute.xlu0 %2398  ;;  %v2817_v19 = vrot.slane %v2674_v0, 1  ;;  %v5355_v43 = vld [vmem:[%s7225_s7 + $0x38] sm:$0xff]  }
 0x37f   :  { %v2902_v35 = vpack.c.bf16 %v2794_v9, %v2788_v45  ;;  %v2791_v16 = vsel %vm1053_vm4, %v2789_v6, %v2790_v7  ;;  %2532 = vst.msk [vmem:[#allocation3 + $0xa0] sm:$0xfe] %vm2508_vm15, %v2477_v51  ;;  %v2659_v31 = vld [vmem:[#allocation3 + $0x80] sm:$0xfe] }
 0x380   :  { %2535 = vst.msk [vmem:[#allocation3 + $0xb8] sm:$0x1] %vm2514_vm11, %v2477_v51  ;;  %v2901_v18 = vpack.c.bf16 %v2791_v16, %v2785_v15  ;;  %v2660_v24 = vld [vmem:[#allocation3 + $0x88] sm:$0xfe]  ;;  %v2795_v33 = vrot.slane %v2659_v31, 1 }
 0x381   :  { %4793 = vmatprep.mubr.msk.bf16.mxu0 %vm2988_vm2, %v2902_v35  ;;  %3195 = vmatpush1.bf16.msra.mxu0 %v5351_v17  ;;  %2446 = vst.msk [vmem:[#allocation3 + $0xc0] sm:$0xfe] %vm2432_vm13, %v2397_v21  ;;  %v2661_v23 = vld [vmem:[#allocation3 + $0x90] sm:$0x1]  ;;  %v2798_v36 = vrot.slane %v2660_v24, 1  ;;  %v2818_v35 = vsel %vm1053_vm4, %v2816_v4, %v2817_v19 }
 0x382   :  { %3054 = vmatmul.mubr.bf16.gmra.mrb[36].mxu0 %v2901_v18  ;;  %v2662_v26 = vld [vmem:[#allocation3 + $0x98] sm:$0x1]  ;;  %2447 = vst.msk [vmem:[#allocation3 + $0xd0] sm:$0x1] %vm2434_vm14, %v2397_v21  ;;  %3196 = vmatprep.subr.bf16.mxu0 %v5423_v32  ;;  %v2796_v38 = vrot.slane %v2661_v23, 1  ;;  %v2401_v53 = vpop.permute.xlu1 %2400  ;;  %v2324_v55 = vpop.permute.xlu0 %2323 }
 0x383   :  { %v2799_v37 = vrot.slane %v2662_v26, 1  ;;  %v2664_v57 = vld [vmem:[#allocation3 + $0xa8] sm:$0xfe]  ;;  %2536 = vst.msk [vmem:[#allocation3 + $0xc0] sm:$0xfe] %vm2508_vm15, %v2479_v40 }
 0x384   :  { %2537 = vst.msk [vmem:[#allocation3 + $0xc8] sm:$0xfe] %vm2510_vm10, %v2479_v40  ;;  %v2804_v47 = vrot.slane %v2664_v57, 1  ;;  %v2665_v49 = vld [vmem:[#allocation3 + $0xb0] sm:$0x1]  ;;  %v2797_v63 = vsel %vm1053_vm4, %v2795_v33, %v2796_v38  ;;  %v5356_v33 = vld [vmem:[%s7225_s7 + $0x40] sm:$0xff]  }
 0x385   :  { %3197 = vmatpush1.bf16.msra.mxu0 %v5352_v20  ;;  %2538 = vst.msk [vmem:[#allocation3 + $0xd0] sm:$0x1] %vm2512_vm1, %v2479_v40  ;;  %v2802_v54 = vrot.slane %v2665_v49, 1  ;;  %v2800_v8 = vsel %vm1053_vm4, %v2798_v36, %v2799_v37 }
 0x386   :  { %v2663_v44 = vld [vmem:[#allocation3 + $0xa0] sm:$0xfe]  ;;  %2539 = vst.msk [vmem:[#allocation3 + $0xd8] sm:$0x1] %vm2514_vm11, %v2479_v40  ;;  %3198 = vmatprep.subr.bf16.mxu0 %v5423_v32  ;;  %v2481_v5 = vpop.permute.xlu1 %2480  ;;  %v2403_v6 = vpop.permute.xlu0 %2402 }
 0x387   :  { %v2666_v42 = vld [vmem:[#allocation3 + $0xb8] sm:$0x1]  ;;  %2448 = vst.msk [vmem:[#allocation3 + $0xe0] sm:$0xfe] %vm2432_vm13, %v2399_v52  ;;  %v2801_v50 = vrot.slane %v2663_v44, 1 }
 0x388   :  { %2449 = vst.msk [vmem:[#allocation3 + $0xf0] sm:$0x1] %vm2434_vm14, %v2399_v52  ;;  %v2805_v48 = vrot.slane %v2666_v42, 1  ;;  %2451 = vst.msk [vmem:[#allocation3 + $0x110] sm:$0x1] %vm2434_vm14, %v2401_v53 }
 0x389   :  { %2569 = vst.msk [vmem:[#allocation3 + $0xe0] sm:$0xfe] %vm2508_vm15, %v5422_v29  ;;  %v2803_v1 = vsel %vm1053_vm4, %v2801_v50, %v2802_v54  ;;  %3199 = vmatpush1.bf16.msra.mxu0 %v5353_v39 }
 0x38a   :  { %2571 = vst.msk [vmem:[#allocation3 + $0xf0] sm:$0x1] %vm2512_vm1, %v5422_v29  ;;  %v2806_v61 = vsel %vm1053_vm4, %v2804_v47, %v2805_v48  ;;  %v2903_v25 = vpack.c.bf16 %v2803_v1, %v2797_v63  ;;  %3200 = vmatprep.subr.bf16.mxu0 %v5423_v32  ;;  %v2667_v9 = vld [vmem:[#allocation3 + $0xc0] sm:$0xfe]  ;;  %2542 = vst.msk [vmem:[#allocation3 + $0x110] sm:$0x1] %vm2512_vm1, %v2481_v5  ;;  %v2326_v26 = vpop.permute.xlu1 %2325  ;;  %v2483_v31 = vpop.permute.xlu0 %2482 }
 0x38b   :  { %v2904_v62 = vpack.c.bf16 %v2806_v61, %v2800_v8  ;;  %2450 = vst.msk [vmem:[#allocation3 + $0x100] sm:$0xfe] %vm2432_vm13, %v2401_v53  ;;  %v2668_v7 = vld [vmem:[#allocation3 + $0xc8] sm:$0xfe]  ;;  %v2807_v18 = vrot.slane %v2667_v9, 1 }
 0x38c   :  { %2366 = vst.msk [vmem:[#allocation3 + $0x120] sm:$0xfe] %vm2275_vm8, %v2324_v55  ;;  %v2810_v12 = vrot.slane %v2668_v7, 1  ;;  %v2669_v15 = vld [vmem:[#allocation3 + $0xd0] sm:$0x1] }
 0x38d   :  { %2367 = vst.msk [vmem:[#allocation3 + $0x130] sm:$0x1] %vm2277_vm9, %v2324_v55  ;;  %4794 = vmatprep.mubr.msk.bf16.mxu0 %vm2988_vm2, %v2904_v62  ;;  %v2670_v45 = vld [vmem:[#allocation3 + $0xd8] sm:$0x1]  ;;  %3201 = vmatpush1.bf16.msra.mxu0 %v5354_v3  ;;  %v2808_v20 = vrot.slane %v2669_v15, 1 }
 0x38e   :  { %3062 = vmatmul.mubr.bf16.gmra.mrb[40].mxu0 %v2903_v25  ;;  %2540 = vst.msk [vmem:[#allocation3 + $0x100] sm:$0xfe] %vm2508_vm15, %v2481_v5  ;;  %v2811_v51 = vrot.slane %v2670_v45, 1  ;;  %3202 = vmatprep.subr.bf16.mxu0 %v5423_v32  ;;  %v2405_v39 = vpop.permute.xlu1 %2404  ;;  %v2328_v40 = vpop.permute.xlu0 %2327 }
 0x38f   :  { %2541 = vst.msk [vmem:[#allocation3 + $0x108] sm:$0xfe] %vm2510_vm10, %v2481_v5  ;;  %v2809_v36 = vsel %vm1053_vm4, %v2807_v18, %v2808_v20  ;;  %2545 = vst.msk [vmem:[#allocation3 + $0x128] sm:$0xfe] %vm2510_vm10, %v2483_v31 }
 0x390   :  { %2543 = vst.msk [vmem:[#allocation3 + $0x118] sm:$0x1] %vm2514_vm11, %v2481_v5  ;;  %v2671_v16 = vld [vmem:[#allocation3 + $0xe0] sm:$0xfe]  ;;  %v2812_v22 = vsel %vm1053_vm4, %v2810_v12, %v2811_v51  ;;  %2547 = vst.msk [vmem:[#allocation3 + $0x138] sm:$0x1] %vm2514_vm11, %v2483_v31 }
 0x391   :  { %2452 = vst.msk [vmem:[#allocation3 + $0x120] sm:$0xfe] %vm2432_vm13, %v2403_v6  ;;  %v2673_v17 = vld [vmem:[#allocation3 + $0xf0] sm:$0x1]  ;;  %v2813_v21 = vrot.slane %v2671_v16, 1  ;;  %v2906_v23 = vpack.c.bf16 %v2818_v35, %v2812_v22  ;;  %3203 = vmatpush1.bf16.msra.mxu0 %v5355_v43 }
 0x392   :  { %2453 = vst.msk [vmem:[#allocation3 + $0x130] sm:$0x1] %vm2434_vm14, %v2403_v6  ;;  %v2814_v24 = vrot.slane %v2673_v17, 1  ;;  %3204 = vmatprep.subr.bf16.mxu0 %v5423_v32  ;;  %v2677_v44 = vld [vmem:[#allocation3 + $0x110] sm:$0x1]  ;;  %v2485_v54 = vpop.permute.xlu1 %2484  ;;  %v2407_v56 = vpop.permute.xlu0 %2406 }
 0x393   :  { %2368 = vst.msk [vmem:[#allocation3 + $0x140] sm:$0xfe] %vm2275_vm8, %v2326_v26  ;;  %4795 = vmatprep.mubr.msk.bf16.mxu0 %vm2988_vm2, %v2906_v23  ;;  %2370 = vst.msk [vmem:[#allocation3 + $0x160] sm:$0xfe] %vm2275_vm8, %v2328_v40  ;;  %v2820_v50 = vrot.slane %v2677_v44, 1 }
 0x394   :  { %2369 = vst.msk [vmem:[#allocation3 + $0x150] sm:$0x1] %vm2277_vm9, %v2326_v26  ;;  %v2815_v37 = vsel %vm1053_vm4, %v2813_v21, %v2814_v24  ;;  %2371 = vst.msk [vmem:[#allocation3 + $0x170] sm:$0x1] %vm2277_vm9, %v2328_v40 }
 0x395   :  { %2544 = vst.msk [vmem:[#allocation3 + $0x120] sm:$0xfe] %vm2508_vm15, %v2483_v31  ;;  %v2905_v38 = vpack.c.bf16 %v2815_v37, %v2809_v36  ;;  %v2675_v42 = vld [vmem:[#allocation3 + $0x100] sm:$0xfe]  ;;  %3205 = vmatpush1.bf16.msra.mxu0 %v5356_v33 }
 0x396   :  { %2546 = vst.msk [vmem:[#allocation3 + $0x130] sm:$0x1] %vm2512_vm1, %v2483_v31  ;;  %v2676_v52 = vld [vmem:[#allocation3 + $0x108] sm:$0xfe]  ;;  %3654 = vmatprep.subr.bf16.mxu0 %v5423_v32  ;;  %v2819_v49 = vrot.slane %v2675_v42, 1  ;;  %v2330_v4 = vpop.permute.xlu1 %2329  ;;  %v2487_v19 = vpop.permute.xlu0 %2486 }
 0x397   :  { %3070 = vmatmul.mubr.bf16.gmra.mrb[44].mxu0 %v2905_v38  ;;  %v2678_v57 = vld [vmem:[#allocation3 + $0x118] sm:$0x1]  ;;  %2454 = vst.msk [vmem:[#allocation3 + $0x140] sm:$0xfe] %vm2432_vm13, %v2405_v39  ;;  %v2822_v47 = vrot.slane %v2676_v52, 1 }
 0x398   :  { %2455 = vst.msk [vmem:[#allocation3 + $0x150] sm:$0x1] %vm2434_vm14, %v2405_v39  ;;  %v2823_v48 = vrot.slane %v2678_v57, 1  ;;  %v2680_v0 = vld [vmem:[#allocation3 + $0x128] sm:$0xfe]  ;;  %v2821_v5 = vsel %vm1053_vm4, %v2819_v49, %v2820_v50 }
 0x399   :  { %v2682_v8 = vld [vmem:[#allocation3 + $0x138] sm:$0x1]  ;;  %2548 = vst.msk [vmem:[#allocation3 + $0x140] sm:$0xfe] %vm2508_vm15, %v2485_v54  ;;  %v2828_v53 = vrot.slane %v2680_v0, 1 }
 0x39a   :  { %2549 = vst.msk [vmem:[#allocation3 + $0x148] sm:$0xfe] %vm2510_vm10, %v2485_v54  ;;  %v2829_v55 = vrot.slane %v2682_v8, 1  ;;  %v2824_v3 = vsel %vm1053_vm4, %v2822_v47, %v2823_v48  ;;  %2553 = vst.msk [vmem:[#allocation3 + $0x168] sm:$0xfe] %vm2510_vm10, %v2487_v19  ;;  %v2409_v45 = vpop.permute.xlu1 %2408  ;;  %v2332_v9 = vpop.permute.xlu0 %2331 }
 0x39b   :  { %2550 = vst.msk [vmem:[#allocation3 + $0x150] sm:$0x1] %vm2512_vm1, %v2485_v54 }
 0x39c   :  { %v2679_v61 = vld [vmem:[#allocation3 + $0x120] sm:$0xfe]  ;;  %2551 = vst.msk [vmem:[#allocation3 + $0x158] sm:$0x1] %vm2514_vm11, %v2485_v54  ;;  %v2830_v25 = vsel %vm1053_vm4, %v2828_v53, %v2829_v55  ;;  %2555 = vst.msk [vmem:[#allocation3 + $0x178] sm:$0x1] %vm2514_vm11, %v2487_v19 }
 0x39d   :  { %2456 = vst.msk [vmem:[#allocation3 + $0x160] sm:$0xfe] %vm2432_vm13, %v2407_v56  ;;  %v2681_v62 = vld [vmem:[#allocation3 + $0x130] sm:$0x1]  ;;  %v2825_v63 = vrot.slane %v2679_v61, 1  ;;  %v2908_v43 = vpack.c.bf16 %v2830_v25, %v2824_v3 }
 0x39e   :  { %2457 = vst.msk [vmem:[#allocation3 + $0x170] sm:$0x1] %vm2434_vm14, %v2407_v56  ;;  %v2826_v1 = vrot.slane %v2681_v62, 1  ;;  %v2489_v21 = vpop.permute.xlu1 %2488  ;;  %v2411_v22 = vpop.permute.xlu0 %2410 }
 0x39f   :  { %2372 = vst.msk [vmem:[#allocation3 + $0x180] sm:$0xfe] %vm2275_vm8, %v2330_v4  ;;  %4796 = vmatprep.mubr.msk.bf16.mxu0 %vm2988_vm2, %v2908_v43  ;;  %2374 = vst.msk [vmem:[#allocation3 + $0x1a0] sm:$0xfe] %vm2275_vm8, %v2332_v9 }
 0x3a0   :  { %v2827_v6 = vsel %vm1053_vm4, %v2825_v63, %v2826_v1  ;;  %2373 = vst.msk [vmem:[#allocation3 + $0x190] sm:$0x1] %vm2277_vm9, %v2330_v4  ;;  %v2683_v35 = vld [vmem:[#allocation3 + $0x140] sm:$0xfe]  ;;  %2375 = vst.msk [vmem:[#allocation3 + $0x1b0] sm:$0x1] %vm2277_vm9, %v2332_v9 }
 0x3a1   :  { %2552 = vst.msk [vmem:[#allocation3 + $0x160] sm:$0xfe] %vm2508_vm15, %v2487_v19  ;;  %v2907_v7 = vpack.c.bf16 %v2827_v6, %v2821_v5  ;;  %v2684_v12 = vld [vmem:[#allocation3 + $0x148] sm:$0xfe]  ;;  %v2831_v18 = vrot.slane %v2683_v35, 1 }
 0x3a2   :  { %2554 = vst.msk [vmem:[#allocation3 + $0x170] sm:$0x1] %vm2512_vm1, %v2487_v19  ;;  %v2685_v15 = vld [vmem:[#allocation3 + $0x150] sm:$0x1]  ;;  %v2834_v16 = vrot.slane %v2684_v12, 1  ;;  %v2334_v52 = vpop.permute.xlu1 %2333  ;;  %v2491_v57 = vpop.permute.xlu0 %2490 }
 0x3a3   :  { %3078 = vmatmul.mubr.bf16.gmra.mrb[48].mxu0 %v2907_v7  ;;  %v2686_v51 = vld [vmem:[#allocation3 + $0x158] sm:$0x1]  ;;  %2458 = vst.msk [vmem:[#allocation3 + $0x180] sm:$0xfe] %vm2432_vm13, %v2409_v45  ;;  %v2832_v20 = vrot.slane %v2685_v15, 1 }
 0x3a4   :  { %2459 = vst.msk [vmem:[#allocation3 + $0x190] sm:$0x1] %vm2434_vm14, %v2409_v45  ;;  %v2835_v17 = vrot.slane %v2686_v51, 1  ;;  %v2688_v24 = vld [vmem:[#allocation3 + $0x168] sm:$0xfe] }
 0x3a5   :  { %v2690_v26 = vld [vmem:[#allocation3 + $0x178] sm:$0x1]  ;;  %2556 = vst.msk [vmem:[#allocation3 + $0x180] sm:$0xfe] %vm2508_vm15, %v2489_v21  ;;  %v2840_v23 = vrot.slane %v2688_v24, 1  ;;  %v2833_v44 = vsel %vm1053_vm4, %v2831_v18, %v2832_v20 }
 0x3a6   :  { %2557 = vst.msk [vmem:[#allocation3 + $0x188] sm:$0xfe] %vm2510_vm10, %v2489_v21  ;;  %v2841_v36 = vrot.slane %v2690_v26, 1  ;;  %v2836_v39 = vsel %vm1053_vm4, %v2834_v16, %v2835_v17  ;;  %2561 = vst.msk [vmem:[#allocation3 + $0x1a8] sm:$0xfe] %vm2510_vm10, %v2491_v57  ;;  %v2413_v49 = vpop.permute.xlu1 %2412  ;;  %v2336_v50 = vpop.permute.xlu0 %2335 }
 0x3a7   :  { %2558 = vst.msk [vmem:[#allocation3 + $0x190] sm:$0x1] %vm2512_vm1, %v2489_v21  ;;  %v2704_v45 = vld [vmem:[#allocation3 + $0x1e8] sm:$0xfe]  ;;  %v2706_v9 = vld [vmem:[#allocation3 + $0x1f8] sm:$0x1] }
 0x3a8   :  { %v2687_v31 = vld [vmem:[#allocation3 + $0x160] sm:$0xfe]  ;;  %2559 = vst.msk [vmem:[#allocation3 + $0x198] sm:$0x1] %vm2514_vm11, %v2489_v21  ;;  %v2842_v40 = vsel %vm1053_vm4, %v2840_v23, %v2841_v36  ;;  %2563 = vst.msk [vmem:[#allocation3 + $0x1b8] sm:$0x1] %vm2514_vm11, %v2491_v57 }
 0x3a9   :  { %2460 = vst.msk [vmem:[#allocation3 + $0x1a0] sm:$0xfe] %vm2432_vm13, %v2411_v22  ;;  %v2689_v37 = vld [vmem:[#allocation3 + $0x170] sm:$0x1]  ;;  %v2837_v33 = vrot.slane %v2687_v31, 1  ;;  %v2910_v42 = vpack.c.bf16 %v2842_v40, %v2836_v39  ;;  %v2864_v17 = vrot.slane %v2704_v45, 1 }
 0x3aa   :  { %2461 = vst.msk [vmem:[#allocation3 + $0x1b0] sm:$0x1] %vm2434_vm14, %v2411_v22  ;;  %v2838_v38 = vrot.slane %v2689_v37, 1  ;;  %v2493_v62 = vpop.permute.xlu1 %2492  ;;  %v2415_v63 = vpop.permute.xlu0 %2414  ;;  %v2865_v18 = vrot.slane %v2706_v9, 1  ;;  %v2592_v45 = vld [vmem:[#allocation3 + $0xe8] sm:$0xff]  ;;  %v2585_v9 = vld [vmem:[#allocation3 + $0x80] sm:$0xff] }
 0x3ab   :  { %2376 = vst.msk [vmem:[#allocation3 + $0x1c0] sm:$0xfe] %vm2275_vm8, %v2334_v52  ;;  %4797 = vmatprep.mubr.msk.bf16.mxu0 %vm2988_vm2, %v2910_v42  ;;  %2378 = vst.msk [vmem:[#allocation3 + $0x1e0] sm:$0xfe] %vm2275_vm8, %v2336_v50 }
 0x3ac   :  { %v2839_v47 = vsel %vm1053_vm4, %v2837_v33, %v2838_v38  ;;  %2377 = vst.msk [vmem:[#allocation3 + $0x1d0] sm:$0x1] %vm2277_vm9, %v2334_v52  ;;  %v2691_v0 = vld [vmem:[#allocation3 + $0x180] sm:$0xfe]  ;;  %2379 = vst.msk [vmem:[#allocation3 + $0x1f0] sm:$0x1] %vm2277_vm9, %v2336_v50  ;;  %v2866_v31 = vsel %vm1053_vm4, %v2864_v17, %v2865_v18 }
 0x3ad   :  { %2560 = vst.msk [vmem:[#allocation3 + $0x1a0] sm:$0xfe] %vm2508_vm15, %v2491_v57  ;;  %v2909_v48 = vpack.c.bf16 %v2839_v47, %v2833_v44  ;;  %v2692_v54 = vld [vmem:[#allocation3 + $0x188] sm:$0xfe]  ;;  %v2843_v55 = vrot.slane %v2691_v0, 1  ;;  %v2577_v0 = vld [vmem:[#allocation3] sm:$0xff] }
 0x3ae   :  { %2562 = vst.msk [vmem:[#allocation3 + $0x1b0] sm:$0x1] %vm2512_vm1, %v2491_v57  ;;  %v2693_v8 = vld [vmem:[#allocation3 + $0x190] sm:$0x1]  ;;  %v2846_v61 = vrot.slane %v2692_v54, 1  ;;  %v2580_v44 = vld [vmem:[#allocation3 + $0x28] sm:$0xff] }
 0x3af   :  { %3086 = vmatmul.mubr.bf16.gmra.mrb[52].mxu0 %v2909_v48  ;;  %v2694_v56 = vld [vmem:[#allocation3 + $0x198] sm:$0x1]  ;;  %2462 = vst.msk [vmem:[#allocation3 + $0x1c0] sm:$0xfe] %vm2432_vm13, %v2413_v49  ;;  %v2696_v1 = vld [vmem:[#allocation3 + $0x1a8] sm:$0xfe] }
 0x3b0   :  { %2463 = vst.msk [vmem:[#allocation3 + $0x1d0] sm:$0x1] %vm2434_vm14, %v2413_v49  ;;  %v2847_v53 = vrot.slane %v2694_v56, 1  ;;  %v2698_v3 = vld [vmem:[#allocation3 + $0x1b8] sm:$0x1]  ;;  %v2852_v4 = vrot.slane %v2696_v1, 1 }
 0x3b1   :  { %2564 = vst.msk [vmem:[#allocation3 + $0x1c0] sm:$0xfe] %vm2508_vm15, %v2493_v62  ;;  %v2853_v19 = vrot.slane %v2698_v3, 1  ;;  %v2844_v5 = vrot.slane %v2693_v8, 1  ;;  %v2578_v49 = vld [vmem:[#allocation3 + $0x8] sm:$0xff]  ;;  %v2579_v54 = vld [vmem:[#allocation3 + $0x20] sm:$0xff] }
 0x3b2   :  { %2565 = vst.msk [vmem:[#allocation3 + $0x1c8] sm:$0xfe] %vm2510_vm10, %v2493_v62  ;;  %v2848_v12 = vsel %vm1053_vm4, %v2846_v61, %v2847_v53  ;;  %v2610_v50 = vpack.c.bf16 %v2580_v44, %v2578_v49  ;;  %v2584_v56 = vld [vmem:[#allocation3 + $0x68] sm:$0xff]  ;;  %v5357_v8 = vld [vmem:[%s7225_s7 + $0x90] sm:$0xff]   ;;  %v2609_v61 = vpack.c.bf16 %v2579_v54, %v2577_v0  ;;  %v2581_v3 = vld [vmem:[#allocation3 + $0x40] sm:$0xff] }
 0x3b3   :  { %2566 = vst.msk [vmem:[#allocation3 + $0x1d0] sm:$0x1] %vm2512_vm1, %v2493_v62  ;;  %v2854_v51 = vsel %vm1053_vm4, %v2852_v4, %v2853_v19  ;;  %v2845_v16 = vsel %vm1053_vm4, %v2843_v55, %v2844_v5  ;;  %v2582_v53 = vld [vmem:[#allocation3 + $0x48] sm:$0xff]  ;;  %v2591_v17 = vld [vmem:[#allocation3 + $0xe0] sm:$0xff] }
 0x3b4   :  { %v2695_v25 = vld [vmem:[#allocation3 + $0x1a0] sm:$0xfe]  ;;  %2567 = vst.msk [vmem:[#allocation3 + $0x1d8] sm:$0x1] %vm2514_vm11, %v2493_v62  ;;  %v2912_v35 = vpack.c.bf16 %v2854_v51, %v2848_v12  ;;  %v2612_v55 = vpack.c.bf16 %v2584_v56, %v2582_v53  ;;  %v5358_v62 = vld [vmem:[%s7225_s7 + $0x98] sm:$0xff]   ;;  %v2588_v1 = vld [vmem:[#allocation3 + $0xa8] sm:$0xff] }
 0x3b5   :  { %2464 = vst.msk [vmem:[#allocation3 + $0x1e0] sm:$0xfe] %vm2432_vm13, %v2415_v63  ;;  %v2697_v43 = vld [vmem:[#allocation3 + $0x1b0] sm:$0x1]  ;;  %v2849_v6 = vrot.slane %v2695_v25, 1  ;;  %v5359_v25 = vld [vmem:[%s7225_s7 + $0xa0] sm:$0xff]  }
 0x3b6   :  { %2465 = vst.msk [vmem:[#allocation3 + $0x1f0] sm:$0x1] %vm2434_vm14, %v2415_v63  ;;  %v2850_v7 = vrot.slane %v2697_v43, 1  ;;  %4798 = vmatprep.mubr.msk.bf16.mxu0 %vm2988_vm2, %v2912_v35  ;;  %v2583_v63 = vld [vmem:[#allocation3 + $0x60] sm:$0xff]  ;;  %v2586_v19 = vld [vmem:[#allocation3 + $0x88] sm:$0xff]  ;;  %v5361_v12 = vld [vmem:[%s7225_s7 + $0xb0] sm:$0xff]  }
 0x3b7   :  { %2573 = vst.msk [vmem:[#allocation3 + $0x1e0] sm:$0xfe] %vm2508_vm15, %v5422_v29  ;;  %v2611_v4 = vpack.c.bf16 %v2583_v63, %v2581_v3  ;;  %v2614_v43 = vpack.c.bf16 %v2588_v1, %v2586_v19  ;;  %v5360_v5 = vld [vmem:[%s7225_s7 + $0xa8] sm:$0xff]   ;;  %v3292_v56 = vld [vmem:[#allocation3 + $0x38] sm:$0x3] }
 0x3b8   :  { %2575 = vst.msk [vmem:[#allocation3 + $0x1f0] sm:$0x1] %vm2512_vm1, %v5422_v29  ;;  %v2851_v15 = vsel %vm1053_vm4, %v2849_v6, %v2850_v7  ;;  %v2699_v22 = vld [vmem:[#allocation3 + $0x1c0] sm:$0xfe]  ;;  %v2590_v7 = vld [vmem:[#allocation3 + $0xc8] sm:$0xff] }
 0x3b9   :  { %v2911_v20 = vpack.c.bf16 %v2851_v15, %v2845_v16  ;;  %v2700_v21 = vld [vmem:[#allocation3 + $0x1c8] sm:$0xfe]  ;;  %v2855_v33 = vrot.slane %v2699_v22, 1  ;;  %v2587_v6 = vld [vmem:[#allocation3 + $0xa0] sm:$0xff]  ;;  %v2616_v35 = vpack.c.bf16 %v2592_v45, %v2590_v7  ;;  %v5362_v15 = vld [vmem:[%s7225_s7 + $0xb8] sm:$0xff]  }
 0x3ba   :  { %v2858_v24 = vrot.slane %v2700_v21, 1  ;;  %v2701_v23 = vld [vmem:[#allocation3 + $0x1d0] sm:$0x1]  ;;  %v2613_v51 = vpack.c.bf16 %v2587_v6, %v2585_v9  ;;  %v2589_v16 = vld [vmem:[#allocation3 + $0xc0] sm:$0xff]  ;;  %v2596_v18 = vld [vmem:[#allocation3 + $0x128] sm:$0xff] }
 0x3bb   :  { %3094 = vmatmul.mubr.bf16.gmra.mrb[56].mxu0 %v2911_v20  ;;  %v2702_v29 = vld [vmem:[#allocation3 + $0x1d8] sm:$0x1]  ;;  %v2856_v38 = vrot.slane %v2701_v23, 1  ;;  %v5363_v20 = vld [vmem:[%s7225_s7 + $0xc0] sm:$0xff]   ;;  %v2615_v21 = vpack.c.bf16 %v2591_v17, %v2589_v16  ;;  %v2608_v49 = vld [vmem:[#allocation3 + $0x1e8] sm:$0xff] }
 0x3bc   :  { %v2859_v26 = vrot.slane %v2702_v29, 1  ;;  %v2594_v29 = vld [vmem:[#allocation3 + $0x108] sm:$0xff]  ;;  %v2593_v23 = vld [vmem:[#allocation3 + $0x100] sm:$0xff]  ;;  %v3288_v53 = vld [vmem:[#allocation3 + $0x18] sm:$0x3] }
 0x3bd   :  { %v2857_v42 = vsel %vm1053_vm4, %v2855_v33, %v2856_v38  ;;  %v2618_v22 = vpack.c.bf16 %v2596_v18, %v2594_v29  ;;  %v2598_v33 = vld [vmem:[#allocation3 + $0x148] sm:$0xff]  ;;  %v3417_v1 = vrot.slane %v3288_v53, 2  ;;  %v2605_v3 = vld [vmem:[#allocation3 + $0x1c0] sm:$0xff]  ;;  %v3300_v6 = vld [vmem:[#allocation3 + $0x78] sm:$0x3] }
 0x3be   :  { %v2703_v36 = vld [vmem:[#allocation3 + $0x1e0] sm:$0xfe]  ;;  %v2860_v40 = vsel %vm1053_vm4, %v2858_v24, %v2859_v26  ;;  %v5364_v24 = vld [vmem:[%s7225_s7 + $0xc8] sm:$0xff]   ;;  %v3296_v17 = vld [vmem:[#allocation3 + $0x58] sm:$0x3] }
 0x3bf   :  { %v2705_v37 = vld [vmem:[#allocation3 + $0x1f0] sm:$0x1]  ;;  %v2861_v39 = vrot.slane %v2703_v36, 1  ;;  %v2914_v57 = vpack.c.bf16 %v2866_v31, %v2860_v40  ;;  %v2595_v26 = vld [vmem:[#allocation3 + $0x120] sm:$0xff]  ;;  %v2600_v31 = vld [vmem:[#allocation3 + $0x168] sm:$0xff] }
 0x3c0   :  { %v2862_v52 = vrot.slane %v2705_v37, 1  ;;  %v5365_v36 = vld [vmem:[%s7225_s7 + $0xd0] sm:$0xff]   ;;  %v2617_v37 = vpack.c.bf16 %v2595_v26, %v2593_v23  ;;  %v2620_v38 = vpack.c.bf16 %v2600_v31, %v2598_v33  ;;  %v2604_v40 = vld [vmem:[#allocation3 + $0x1a8] sm:$0xff]  ;;  %v3289_v19 = vld [vmem:[#allocation3 + $0x20] sm:$0xfc] }
 0x3c1   :  { %4799 = vmatprep.mubr.msk.bf16.mxu0 %vm2988_vm2, %v2914_v57  ;;  %v3290_v54 = vld [vmem:[#allocation3 + $0x28] sm:$0xfc]  ;;  %v3285_v9 = vld [vmem:[#allocation3] sm:$0xfc] }
 0x3c2   :  { %v2863_v47 = vsel %vm1053_vm4, %v2861_v39, %v2862_v52  ;;  %v2599_v39 = vld [vmem:[#allocation3 + $0x160] sm:$0xff]  ;;  %v3294_v16 = vld [vmem:[#allocation3 + $0x48] sm:$0xfc] }
 0x3c3   :  { %v2913_v48 = vpack.c.bf16 %v2863_v47, %v2857_v42  ;;  %v2597_v52 = vld [vmem:[#allocation3 + $0x140] sm:$0xff]  ;;  %v2602_v42 = vld [vmem:[#allocation3 + $0x188] sm:$0xff] }
 0x3c4   :  { %v2619_v57 = vpack.c.bf16 %v2599_v39, %v2597_v52  ;;  %v2622_v44 = vpack.c.bf16 %v2604_v40, %v2602_v42  ;;  %v2603_v47 = vld [vmem:[#allocation3 + $0x1a0] sm:$0xff]  ;;  %v3306_v33 = vld [vmem:[#allocation3 + $0xa8] sm:$0xfc] }
 0x3c5   :  { %3102 = vmatmul.mubr.bf16.gmra.mrb[60].mxu0 %v2913_v48  ;;  %v2606_v48 = vld [vmem:[#allocation3 + $0x1c8] sm:$0xff]  ;;  %v3297_v23 = vld [vmem:[#allocation3 + $0x60] sm:$0xfc] }
 0x3c6   :  { %4809 = vmatprep.mubr.msk.bf16.mxu0 %vm2988_vm2, %v2610_v50  ;;  %v2601_v50 = vld [vmem:[#allocation3 + $0x180] sm:$0xff] }
 0x3c7   :  { %v2621_v0 = vpack.c.bf16 %v2603_v47, %v2601_v50  ;;  %v3293_v52 = vld [vmem:[#allocation3 + $0x40] sm:$0xfc]  ;;  %v3446_v50 = vrot.slane %v3306_v33, 2 }
 0x3cd   :  { %3221 = vmatmul.mubr.bf16.vlgmr.msra.gmra.mrb[32].mxu0 %v2609_v61  ;;  %v3286_v61 = vld [vmem:[#allocation3 + $0x8] sm:$0xfc] }
 0x3ce   :  { %3655 = vmatpush1.bf16.msra.mxu0 %v5357_v8  ;;  %4810 = vmatprep.mubr.msk.bf16.mxu0 %vm2988_vm2, %v2612_v55  ;;  %v2624_v8 = vpack.c.bf16 %v2608_v49, %v2606_v48  ;;  %v3422_v55 = vrot.slane %v3290_v54, 2  ;;  %v3416_v63 = vrot.slane %v3286_v61, 2  ;;  %v3302_v48 = vld [vmem:[#allocation3 + $0x88] sm:$0xfc]  ;;  %v3304_v49 = vld [vmem:[#allocation3 + $0x98] sm:$0x3] }
 0x3cf   :  { %3656 = vmatprep.subr.bf16.mxu0 %v5423_v32  ;;  %v3441_v61 = vrot.slane %v3304_v49, 2 }
 0x3d0   :  { %v3418_v45 = vsel %vm1737_vm7, %v3416_v63, %v3417_v1  ;;  %v3307_v63 = vld [vmem:[#allocation3 + $0xb0] sm:$0x3]  ;;  %v3314_v1 = vld [vmem:[#allocation3 + $0xe8] sm:$0xfc] }
 0x3d2   :  { %3657 = vmatpush1.bf16.msra.mxu0 %v5358_v62  ;;  %v3423_v62 = vrot.slane %v3292_v56, 2  ;;  %v3425_v56 = vrot.slane %v3293_v52, 2 }
 0x3d3   :  { %3658 = vmatprep.subr.bf16.mxu0 %v5423_v32 }
 0x3d5   :  { %3229 = vmatmul.mubr.bf16.gmra.mrb[36].mxu0 %v2611_v4  ;;  %v3424_v4 = vsel %vm1737_vm7, %v3422_v55, %v3423_v62  ;;  %v3305_v62 = vld [vmem:[#allocation3 + $0xa0] sm:$0xfc] }
 0x3d6   :  { %4811 = vmatprep.mubr.msk.bf16.mxu0 %vm2988_vm2, %v2614_v43  ;;  %3659 = vmatpush1.bf16.msra.mxu0 %v5359_v25  ;;  %v2607_v25 = vld [vmem:[#allocation3 + $0x1e0] sm:$0xff]  ;;  %v3291_v43 = vld [vmem:[#allocation3 + $0x30] sm:$0x3] }
 0x3d7   :  { %3660 = vmatprep.subr.bf16.mxu0 %v5423_v32  ;;  %v2623_v7 = vpack.c.bf16 %v2607_v25, %v2605_v3  ;;  %v3310_v25 = vld [vmem:[#allocation3 + $0xc8] sm:$0xfc] }
 0x3da   :  { %3661 = vmatpush1.bf16.msra.mxu0 %v5360_v5  ;;  %v3298_v5 = vld [vmem:[#allocation3 + $0x68] sm:$0xfc] }
 0x3db   :  { %3662 = vmatprep.subr.bf16.mxu0 %v5423_v32  ;;  %v3434_v18 = vrot.slane %v3298_v5, 2 }
 0x3dd   :  { %3237 = vmatmul.mubr.bf16.gmra.mrb[40].mxu0 %v2613_v51  ;;  %v3542_v51 = vpack.c.bf16 %v3424_v4, %v3418_v45  ;;  %v3312_v4 = vld [vmem:[#allocation3 + $0xd8] sm:$0x3] }
 0x3de   :  { %4812 = vmatprep.mubr.msk.bf16.mxu0 %vm2988_vm2, %v2616_v35  ;;  %3663 = vmatpush1.bf16.msra.mxu0 %v5361_v12  ;;  %v3287_v12 = vld [vmem:[#allocation3 + $0x10] sm:$0x3]  ;;  %v3419_v35 = vrot.slane %v3289_v19, 2  ;;  %v3316_v19 = vld [vmem:[#allocation3 + $0xf8] sm:$0x3] }
 0x3df   :  { %3664 = vmatprep.subr.bf16.mxu0 %v5423_v32  ;;  %v3414_v29 = vrot.slane %v3287_v12, 2  ;;  %v3444_v12 = vrot.slane %v3307_v63, 2 }
 0x3e2   :  { %3665 = vmatpush1.bf16.msra.mxu0 %v5362_v15  ;;  %v3420_v15 = vrot.slane %v3291_v43, 2 }
 0x3e3   :  { %3666 = vmatprep.subr.bf16.mxu0 %v5423_v32 }
 0x3e4   :  { %v3421_v26 = vsel %vm1737_vm7, %v3419_v35, %v3420_v15  ;;  %v3453_v35 = vrot.slane %v3312_v4, 2  ;;  %v3458_v15 = vrot.slane %v3314_v1, 2  ;;  %v3317_v1 = vld [vmem:[#allocation3 + $0x100] sm:$0xfc] }
 0x3e5   :  { %3245 = vmatmul.mubr.bf16.gmra.mrb[44].mxu0 %v2615_v21  ;;  %v3413_v21 = vrot.slane %v3285_v9, 2  ;;  %v3443_v9 = vrot.slane %v3305_v62, 2 }
 0x3e6   :  { %4813 = vmatprep.mubr.msk.bf16.mxu0 %vm2988_vm2, %v2618_v22  ;;  %3667 = vmatpush1.bf16.msra.mxu0 %v5363_v20  ;;  %v3435_v20 = vrot.slane %v3300_v6, 2  ;;  %v3428_v22 = vrot.slane %v3294_v16, 2  ;;  %v3301_v6 = vld [vmem:[#allocation3 + $0x80] sm:$0xfc]  ;;  %v3459_v16 = vrot.slane %v3316_v19, 2 }
 0x3e7   :  { %3668 = vmatprep.subr.bf16.mxu0 %v5423_v32 }
 0x3e8   :  { %v3436_v31 = vsel %vm1737_vm7, %v3434_v18, %v3435_v20  ;;  %v3445_v20 = vsel %vm1737_vm7, %v3443_v9, %v3444_v12 }
 0x3ea   :  { %3669 = vmatpush1.bf16.msra.mxu0 %v5364_v24  ;;  %v3429_v24 = vrot.slane %v3296_v17, 2  ;;  %v3437_v17 = vrot.slane %v3301_v6, 2 }
 0x3eb   :  { %3670 = vmatprep.subr.bf16.mxu0 %v5423_v32 }
 0x3ec   :  { %v3430_v40 = vsel %vm1737_vm7, %v3428_v22, %v3429_v24  ;;  %v3460_v24 = vsel %vm1737_vm7, %v3458_v15, %v3459_v16  ;;  %v3329_v16 = vld [vmem:[#allocation3 + $0x160] sm:$0xfc] }
 0x3ed   :  { %3253 = vmatmul.mubr.bf16.gmra.mrb[48].mxu0 %v2617_v37  ;;  %v3415_v37 = vsel %vm1737_vm7, %v3413_v21, %v3414_v29  ;;  %v3544_v42 = vpack.c.bf16 %v3436_v31, %v3430_v40  ;;  %v3309_v21 = vld [vmem:[#allocation3 + $0xc0] sm:$0xfc]  ;;  %v3311_v29 = vld [vmem:[#allocation3 + $0xd0] sm:$0x3] }
 0x3ee   :  { %4814 = vmatprep.mubr.msk.bf16.mxu0 %vm2988_vm2, %v2620_v38  ;;  %3671 = vmatpush1.bf16.msra.mxu0 %v5365_v36  ;;  %v3299_v36 = vld [vmem:[#allocation3 + $0x70] sm:$0x3]  ;;  %v3308_v38 = vld [vmem:[#allocation3 + $0xb8] sm:$0x3]  ;;  %v3541_v39 = vpack.c.bf16 %v3421_v26, %v3415_v37  ;;  %v3313_v26 = vld [vmem:[#allocation3 + $0xe0] sm:$0xfc] }
 0x3ef   :  { %v3432_v47 = vrot.slane %v3299_v36, 2  ;;  %v3447_v54 = vrot.slane %v3308_v38, 2  ;;  %v3315_v31 = vld [vmem:[#allocation3 + $0xf0] sm:$0x3]  ;;  %v3322_v36 = vld [vmem:[#allocation3 + $0x128] sm:$0xfc] }
 0x3f0   :  { %v3324_v37 = vld [vmem:[#allocation3 + $0x138] sm:$0x3]  ;;  %v3449_v38 = vrot.slane %v3309_v21, 2  ;;  %v3455_v52 = vrot.slane %v3313_v26, 2  ;;  %v3327_v26 = vld [vmem:[#allocation3 + $0x150] sm:$0x3] }
 0x3f1   :  { %v3448_v55 = vsel %vm1737_vm7, %v3446_v50, %v3447_v54  ;;  %v3340_v21 = vld [vmem:[#allocation3 + $0x1b8] sm:$0x3] }
 0x3f5   :  { %3261 = vmatmul.mubr.bf16.gmra.mrb[52].mxu0 %v2619_v57  ;;  %v3295_v57 = vld [vmem:[#allocation3 + $0x50] sm:$0x3] }
 0x3f6   :  { %4815 = vmatprep.mubr.msk.bf16.mxu0 %vm2988_vm2, %v2622_v44  ;;  %v3431_v44 = vrot.slane %v3297_v23, 2 }
 0x3f8   :  { %v3433_v53 = vsel %vm1737_vm7, %v3431_v44, %v3432_v47  ;;  %v3320_v44 = vld [vmem:[#allocation3 + $0x118] sm:$0x3]  ;;  %v3470_v47 = vrot.slane %v3322_v36, 2 }
 0x3f9   :  { %v3465_v50 = vrot.slane %v3320_v44, 2 }
 0x3fd   :  { %3269 = vmatmul.mubr.bf16.gmra.mrb[56].mxu0 %v2621_v0  ;;  %v3426_v0 = vrot.slane %v3295_v57, 2  ;;  %v3456_v57 = vrot.slane %v3315_v31, 2 }
 0x3fe   :  { %4816 = vmatprep.mubr.msk.bf16.mxu0 %vm2988_vm2, %v2624_v8  ;;  %v3440_v8 = vrot.slane %v3302_v48, 2  ;;  %v3471_v48 = vrot.slane %v3324_v37, 2  ;;  %v3334_v37 = vld [vmem:[#allocation3 + $0x188] sm:$0xfc] }
 0x3ff   :  { %v3427_v3 = vsel %vm1737_vm7, %v3425_v56, %v3426_v0  ;;  %v3457_v56 = vsel %vm1737_vm7, %v3455_v52, %v3456_v57  ;;  %v3474_v52 = vrot.slane %v3327_v26, 2  ;;  %v3488_v57 = vrot.slane %v3334_v37, 2  ;;  %v5369_v37 = vld [vmem:[%s7228_s10 + $0x18] ss:$12 sps:$4 sm:$0xff]  }
 0x400   :  { %v3543_v43 = vpack.c.bf16 %v3433_v53, %v3427_v3  ;;  %v3442_v5 = vsel %vm1737_vm7, %v3440_v8, %v3441_v61  ;;  %v3472_v0 = vsel %vm1737_vm7, %v3470_v47, %v3471_v48  ;;  %v3321_v8 = vld [vmem:[#allocation3 + $0x120] sm:$0xfc]  ;;  %v3323_v61 = vld [vmem:[#allocation3 + $0x130] sm:$0x3]  ;;  %v3330_v53 = vld [vmem:[#allocation3 + $0x168] sm:$0xfc] }
 0x401   :  { %v3546_v45 = vpack.c.bf16 %v3448_v55, %v3442_v5  ;;  %v3332_v55 = vld [vmem:[#allocation3 + $0x178] sm:$0x3]  ;;  %v3319_v3 = vld [vmem:[#allocation3 + $0x110] sm:$0x3]  ;;  %v3467_v4 = vrot.slane %v3321_v8, 2  ;;  %v3468_v19 = vrot.slane %v3323_v61, 2 }
 0x402   :  { %v3328_v5 = vld [vmem:[#allocation3 + $0x158] sm:$0x3]  ;;  %v3482_v6 = vrot.slane %v3330_v53, 2  ;;  %v3462_v9 = vrot.slane %v3319_v3, 2  ;;  %v3337_v48 = vld [vmem:[#allocation3 + $0x1a0] sm:$0xfc] }
 0x403   :  { %v3348_v8 = vld [vmem:[#allocation3 + $0x1f8] sm:$0x3] }
 0x405   :  { %3277 = vmatmul.mubr.bf16.gmra.mrb[60].mxu0 %v2623_v7  ;;  %v3303_v7 = vld [vmem:[#allocation3 + $0x90] sm:$0x3] }
 0x406   :  { %4844 = vmatprep.mubr.msk.bf16.mxu0 %vm2988_vm2, %v3542_v51  ;;  %v3452_v51 = vrot.slane %v3310_v25, 2  ;;  %v3438_v18 = vrot.slane %v3303_v7, 2  ;;  %v3483_v7 = vrot.slane %v3332_v55, 2  ;;  %v3333_v55 = vld [vmem:[#allocation3 + $0x180] sm:$0xfc] }
 0x408   :  { %v3454_v22 = vsel %vm1737_vm7, %v3452_v51, %v3453_v35  ;;  %v3439_v23 = vsel %vm1737_vm7, %v3437_v17, %v3438_v18  ;;  %v3477_v51 = vrot.slane %v3328_v5, 2  ;;  %v3469_v35 = vsel %vm1737_vm7, %v3467_v4, %v3468_v19  ;;  %v3331_v17 = vld [vmem:[#allocation3 + $0x170] sm:$0x3] }
 0x409   :  { %v3545_v33 = vpack.c.bf16 %v3445_v20, %v3439_v23  ;;  %v3548_v40 = vpack.c.bf16 %v3460_v24, %v3454_v22  ;;  %v3484_v15 = vsel %vm1737_vm7, %v3482_v6, %v3483_v7  ;;  %v3338_v20 = vld [vmem:[#allocation3 + $0x1a8] sm:$0xfc]  ;;  %v3325_v24 = vld [vmem:[#allocation3 + $0x140] sm:$0xfc]  ;;  %v3479_v23 = vrot.slane %v3329_v16, 2 }
 0x40a   :  { %v3480_v36 = vrot.slane %v3331_v17, 2  ;;  %v3485_v5 = vrot.slane %v3333_v55, 2  ;;  %v6867_v55 = vld [vmem:[%s7226_s8] ss:$0 sm:$0xff] }
 0x40c   :  { %v3481_v44 = vsel %vm1737_vm7, %v3479_v23, %v3480_v36  ;;  %v5366_v23 = vld [vmem:[%s7228_s10] ss:$12 sps:$4 sm:$0xff]   ;;  %v5368_v36 = vld [vmem:[%s7228_s10 + $0x4] ss:$12 sps:$4 sm:$0xff]  }
 0x40d   :  { %3687 = vmatmul.mubr.bf16.vlgmr.msra.gmra.mrb[32].mxu0 %v3541_v39  ;;  %v3450_v39 = vrot.slane %v3311_v29, 2  ;;  %4207 = vmatprep.subr.bf16.mxu1 %v5368_v36 }
 0x40e   :  { %4845 = vmatprep.mubr.msk.bf16.mxu0 %vm2988_vm2, %v3544_v42  ;;  %v3318_v42 = vld [vmem:[#allocation3 + $0x108] sm:$0xfc]  ;;  %4208 = vmatpush1.bf16.msra.mxu1 %v5366_v23 }
 0x40f   :  { %v3464_v49 = vrot.slane %v3318_v42, 2  ;;  %v3451_v54 = vsel %vm1737_vm7, %v3449_v38, %v3450_v39  ;;  %v3494_v38 = vrot.slane %v3338_v20, 2  ;;  %v3495_v39 = vrot.slane %v3340_v21, 2 }
 0x410   :  { %v3547_v62 = vpack.c.bf16 %v3457_v56, %v3451_v54  ;;  %v3342_v56 = vld [vmem:[#allocation3 + $0x1c8] sm:$0xfc] }
 0x411   :  { %v3466_v63 = vsel %vm1737_vm7, %v3464_v49, %v3465_v50  ;;  %v3496_v47 = vsel %vm1737_vm7, %v3494_v38, %v3495_v39  ;;  %v3339_v49 = vld [vmem:[#allocation3 + $0x1b0] sm:$0x3]  ;;  %v3346_v50 = vld [vmem:[#allocation3 + $0x1e8] sm:$0xfc]  ;;  %v5374_v38 = vld [vmem:[%s7228_s10 + $0x34] ss:$12 sps:$4 sm:$0xff]  }
 0x412   :  { %v3550_v25 = vpack.c.bf16 %v3472_v0, %v3466_v63  ;;  %v3344_v0 = vld [vmem:[#allocation3 + $0x1d8] sm:$0x3]  ;;  %v3492_v3 = vrot.slane %v3339_v49, 2  ;;  %v3506_v19 = vrot.slane %v3346_v50, 2  ;;  %v5381_v39 = vld [vmem:[%s7228_s10 + $0x8] ss:$12 sps:$4 sm:$0xff]  }
 0x413   :  { %v3501_v4 = vrot.slane %v3344_v0, 2  ;;  %4994 = vmatprep.subr.bf16.mxu0 %v5381_v39  ;;  %v5378_v49 = vld [vmem:[%s7228_s10 + $0x60] ss:$12 sps:$4 sm:$0xff]   ;;  %v5384_v50 = vld [vmem:[%s7228_s10 + $0x7c] ss:$12 sps:$4 sm:$0xff]  }
 0x414   :  { %4995 = vmatpush3.bf16.msra.mxu0 %v5381_v39  ;;  %v5388_v0 = vld [vmem:[%s7228_s10 + $0x94] ss:$12 sps:$4 sm:$0xff]  }
 0x415   :  { %3695 = vmatmul.mubr.bf16.gmra.mrb[36].mxu0 %v3543_v43  ;;  %v3326_v43 = vld [vmem:[#allocation3 + $0x148] sm:$0xfc] }
 0x416   :  { %4846 = vmatprep.mubr.msk.bf16.mxu0 %vm2988_vm2, %v3546_v45  ;;  %v3461_v45 = vrot.slane %v3317_v1, 2  ;;  %v3476_v12 = vrot.slane %v3326_v43, 2  ;;  %v3491_v1 = vrot.slane %v3337_v48, 2  ;;  %v3507_v43 = vrot.slane %v3348_v8, 2  ;;  %v5390_v48 = vld [vmem:[%s7228_s10 + $0x50] ss:$12 sps:$4 sm:$0xff]  }
 0x417   :  { %v5386_v8 = vld [vmem:[%s7228_s10 + $0x90] ss:$12 sps:$4 sm:$0xff]  }
 0x418   :  { %v3463_v18 = vsel %vm1737_vm7, %v3461_v45, %v3462_v9  ;;  %v3478_v22 = vsel %vm1737_vm7, %v3476_v12, %v3477_v51  ;;  %v3493_v7 = vsel %vm1737_vm7, %v3491_v1, %v3492_v3  ;;  %v3341_v45 = vld [vmem:[#allocation3 + $0x1c0] sm:$0xfc]  ;;  %v3508_v12 = vsel %vm1737_vm7, %v3506_v19, %v3507_v43  ;;  %v3343_v51 = vld [vmem:[#allocation3 + $0x1d0] sm:$0x3] }
 0x419   :  { %v3549_v29 = vpack.c.bf16 %v3469_v35, %v3463_v18  ;;  %v3552_v31 = vpack.c.bf16 %v3484_v15, %v3478_v22  ;;  %v3345_v35 = vld [vmem:[#allocation3 + $0x1e0] sm:$0xfc]  ;;  %v3347_v15 = vld [vmem:[#allocation3 + $0x1f0] sm:$0x3]  ;;  %v3497_v18 = vrot.slane %v3341_v45, 2  ;;  %v3498_v21 = vrot.slane %v3343_v51, 2 }
 0x41a   :  { %v3504_v22 = vrot.slane %v3347_v15, 2  ;;  %v5397_v45 = vld [vmem:[%s7228_s10 + $0xb0] ss:$12 sps:$4 sm:$0xff]  }
 0x41d   :  { %3703 = vmatmul.mubr.bf16.gmra.mrb[40].mxu0 %v3545_v33  ;;  %v3336_v33 = vld [vmem:[#allocation3 + $0x198] sm:$0x3] }
 0x41e   :  { %4847 = vmatprep.mubr.msk.bf16.mxu0 %vm2988_vm2, %v3548_v40  ;;  %v3473_v40 = vrot.slane %v3325_v24, 2  ;;  %v3489_v42 = vrot.slane %v3336_v33, 2  ;;  %v3499_v24 = vsel %vm1737_vm7, %v3497_v18, %v3498_v21  ;;  %v5371_v33 = vld [vmem:[%s7228_s10 + $0x1c] ss:$12 sps:$4 sm:$0xff]  }
 0x41f   :  { %4209 = vmatprep.subr.bf16.mxu1 %v5371_v33 }
 0x420   :  { %v3475_v54 = vsel %vm1737_vm7, %v3473_v40, %v3474_v52  ;;  %v3490_v53 = vsel %vm1737_vm7, %v3488_v57, %v3489_v42  ;;  %4210 = vmatpush1.bf16.msra.mxu1 %v5369_v37  ;;  %v5372_v40 = vld [vmem:[%s7228_s10 + $0x30] ss:$12 sps:$4 sm:$0xff]   ;;  %v5385_v52 = vld [vmem:[%s7228_s10 + $0x20] ss:$12 sps:$4 sm:$0xff]   ;;  %v5389_v42 = vld [vmem:[%s7228_s10 + $0x38] ss:$12 sps:$4 sm:$0xff]  }
 0x421   :  { %v3551_v61 = vpack.c.bf16 %v3481_v44, %v3475_v54  ;;  %v3554_v63 = vpack.c.bf16 %v3496_v47, %v3490_v53  ;;  %4211 = vmatprep.subr.bf16.mxu1 %v5374_v38  ;;  %v5377_v57 = vld [vmem:[%s7228_s10 + $0x4c] ss:$12 sps:$4 sm:$0xff]   ;;  %4996 = vmatprep.subr.bf16.mxu0 %v5385_v52  ;;  %v5375_v44 = vld [vmem:[%s7228_s10 + $0x48] ss:$12 sps:$4 sm:$0xff]   ;;  %v5380_v47 = vld [vmem:[%s7228_s10 + $0x64] ss:$12 sps:$4 sm:$0xff]  }
 0x422   :  { %4997 = vmatpush3.bf16.msra.mxu0 %v5385_v52  ;;  %v5394_v54 = vld [vmem:[%s7228_s10 + $0x68] ss:$12 sps:$4 sm:$0xff]  }
 0x423   :  { %4998 = vmatprep.subr.bf16.mxu0 %v5389_v42  ;;  %v5391_v53 = vld [vmem:[%s7228_s10 + $0xa8] ss:$12 sps:$4 sm:$0xff]  }
 0x424   :  { %4212 = vmatpush1.bf16.msra.mxu1 %v5372_v40 }
 0x425   :  { %3711 = vmatmul.mubr.bf16.gmra.mrb[44].mxu0 %v3547_v62  ;;  %v3335_v62 = vld [vmem:[#allocation3 + $0x190] sm:$0x3]  ;;  %4213 = vmatprep.subr.bf16.mxu1 %v5377_v57 }
 0x426   :  { %4848 = vmatprep.mubr.msk.bf16.mxu0 %vm2988_vm2, %v3550_v25  ;;  %v3500_v25 = vrot.slane %v3342_v56, 2  ;;  %v3486_v6 = vrot.slane %v3335_v62, 2  ;;  %4999 = vmatpush3.bf16.msra.mxu0 %v5389_v42  ;;  %v5382_v56 = vld [vmem:[%s7228_s10 + $0x78] ss:$12 sps:$4 sm:$0xff]  }
 0x427   :  { %5000 = vmatprep.subr.bf16.mxu0 %v5390_v48 }
 0x428   :  { %v3502_v9 = vsel %vm1737_vm7, %v3500_v25, %v3501_v4  ;;  %v3487_v16 = vsel %vm1737_vm7, %v3485_v5, %v3486_v6  ;;  %4214 = vmatpush1.bf16.msra.mxu1 %v5375_v44  ;;  %v5395_v25 = vld [vmem:[%s7228_s10 + $0x80] ss:$12 sps:$4 sm:$0xff]   ;;  %v5396_v6 = vld [vmem:[%s7228_s10 + $0x98] ss:$12 sps:$4 sm:$0xff]  }
 0x429   :  { %v3553_v17 = vpack.c.bf16 %v3493_v7, %v3487_v16  ;;  %v3556_v20 = vpack.c.bf16 %v3508_v12, %v3502_v9  ;;  %4215 = vmatprep.subr.bf16.mxu1 %v5380_v47 }
 0x42a   :  { %5001 = vmatpush3.bf16.msra.mxu0 %v5390_v48 }
 0x42b   :  { %5002 = vmatprep.subr.bf16.mxu0 %v5394_v54 }
 0x42c   :  { %4216 = vmatpush1.bf16.msra.mxu1 %v5378_v49 }
 0x42d   :  { %3719 = vmatmul.mubr.bf16.gmra.mrb[48].mxu0 %v3549_v29  ;;  %v3503_v29 = vrot.slane %v3345_v35, 2  ;;  %4217 = vmatprep.subr.bf16.mxu1 %v5384_v50 }
 0x42e   :  { %4849 = vmatprep.mubr.msk.bf16.mxu0 %vm2988_vm2, %v3552_v31  ;;  %5003 = vmatpush3.bf16.msra.mxu0 %v5394_v54 }
 0x42f   :  { %v3505_v26 = vsel %vm1737_vm7, %v3503_v29, %v3504_v22  ;;  %5004 = vmatprep.subr.bf16.mxu0 %v5395_v25 }
 0x430   :  { %v3555_v31 = vpack.c.bf16 %v3505_v26, %v3499_v24  ;;  %4218 = vmatpush1.bf16.msra.mxu1 %v5382_v56 }
 0x431   :  { %4219 = vmatprep.subr.bf16.mxu1 %v5388_v0 }
 0x432   :  { %5005 = vmatpush3.bf16.msra.mxu0 %v5395_v25 }
 0x433   :  { %5006 = vmatprep.subr.bf16.mxu0 %v5396_v6 }
 0x434   :  { %4220 = vmatpush1.bf16.msra.mxu1 %v5386_v8 }
 0x435   :  { %3727 = vmatmul.mubr.bf16.gmra.mrb[52].mxu0 %v3551_v61  ;;  %v5393_v61 = vld [vmem:[%s7228_s10 + $0xac] ss:$12 sps:$4 sm:$0xff]  }
 0x436   :  { %4850 = vmatprep.mubr.msk.bf16.mxu0 %vm2988_vm2, %v3554_v63  ;;  %4221 = vmatprep.subr.bf16.mxu1 %v5393_v61  ;;  %v6872_v63 = vld [vmem:[%s7227_s9] ss:$0 sm:$0xff] }
 0x437   :  { %5007 = vmatpush3.bf16.msra.mxu0 %v5396_v6 }
 0x438   :  { %4222 = vmatpush1.bf16.msra.mxu1 %v5391_v53  ;;  %5008 = vmatprep.subr.bf16.mxu0 %v5397_v45 }
 0x43b   :  { %5009 = vmatpush3.bf16.msra.mxu0 %v5397_v45 }
 0x43d   :  { %3735 = vmatmul.mubr.bf16.gmra.mrb[56].mxu0 %v3553_v17 }
 0x43e   :  { %4851 = vmatprep.mubr.msk.bf16.mxu0 %vm2988_vm2, %v3556_v20 }
 0x445   :  { %3743 = vmatmul.mubr.bf16.gmra.mrb[60].mxu0 %v3555_v31 }
 0x4e0   :  { %v3688_v62 = vpop.f32.mrb[32].mxu0 }
 0x4e1   :  { %v3774_v1 = vmul.f32 %v6867_v55, %v3688_v62  ;;  %v3690_v3 = vpop.f32.mrb[33].mxu0 }
 0x4e2   :  { %v3691_v4 = vpop.f32.mrb[34].mxu0 }
 0x4e3   :  { %v3797_v19 = vadd.f32 %v6872_v63, %v3774_v1  ;;  %v3775_v43 = vmul.f32 %v6867_v55, %v3691_v4  ;;  %v3693_v5 = vpop.f32.mrb[35].mxu0 }
 0x4e5   :  { %v3798_v7 = vadd.f32 %v6872_v63, %v3775_v43  ;;  %v3813_v9 = vmax.f32 %v3797_v19, 0.0 }
 0x4e7   :  { %v3814_v12 = vmax.f32 %v3798_v7, 0.0 }
 0x4e8   :  { %v3696_v51 = vpop.f32.mrb[36].mxu0 }
 0x4e9   :  { %v3776_v35 = vmul.f32 %v6867_v55, %v3696_v51  ;;  %v3698_v15 = vpop.f32.mrb[37].mxu0  ;;  %v5173_v16 = vpack.i.bf16 %v3814_v12, %v3813_v9 }
 0x4ea   :  { %v3699_v17 = vpop.f32.mrb[38].mxu0 }
 0x4eb   :  { %v3799_v18 = vadd.f32 %v6872_v63, %v3776_v35  ;;  %v3777_v20 = vmul.f32 %v6867_v55, %v3699_v17  ;;  %5174 = vrot.lane.b32.xlu0 %v5173_v16, %s5424_s15  ;;  %v3701_v21 = vpop.f32.mrb[39].mxu0 }
 0x4ed   :  { %v3800_v29 = vadd.f32 %v6872_v63, %v3777_v20  ;;  %v3815_v22 = vmax.f32 %v3799_v18, 0.0 }
 0x4ef   :  { %v3816_v24 = vmax.f32 %v3800_v29, 0.0  ;;  %5184 = vrot.lane.b32.xlu0 %v6437_v30, %s5427_s24 }
 0x4f0   :  { %v3704_v26 = vpop.f32.mrb[40].mxu0 }
 0x4f1   :  { %v3778_v31 = vmul.f32 %v6867_v55, %v3704_v26  ;;  %v3706_v23 = vpop.f32.mrb[41].mxu0  ;;  %v5188_v36 = vpack.i.bf16 %v3816_v24, %v3815_v22 }
 0x4f2   :  { %v3707_v37 = vpop.f32.mrb[42].mxu0 }
 0x4f3   :  { %v3801_v33 = vadd.f32 %v6872_v63, %v3778_v31  ;;  %v3779_v38 = vmul.f32 %v6867_v55, %v3707_v37  ;;  %5194 = vrot.lane.b32.xlu0 %v5953_v11, %s5424_s15  ;;  %5189 = vrot.lane.b32.xlu1 %v5188_v36, %s5424_s15  ;;  %v3709_v39 = vpop.f32.mrb[43].mxu0 }
 0x4f5   :  { %v3802_v40 = vadd.f32 %v6872_v63, %v3779_v38  ;;  %v3817_v52 = vmax.f32 %v3801_v33, 0.0 }
 0x4f7   :  { %v3818_v30 = vmax.f32 %v3802_v40, 0.0  ;;  %5199 = vrot.lane.b32.xlu1 %v6447_v10, %s5427_s24 }
 0x4f8   :  { %v3712_v57 = vpop.f32.mrb[44].mxu0 }
 0x4f9   :  { %v3780_v42 = vmul.f32 %v6867_v55, %v3712_v57  ;;  %v3714_v44 = vpop.f32.mrb[45].mxu0  ;;  %v5203_v47 = vpack.i.bf16 %v3818_v30, %v3817_v52  ;;  %v5170_v52 = vpop.permute.xlu1 %5169 }
 0x4fa   :  { %v3715_v48 = vpop.f32.mrb[46].mxu0  ;;  %v5165_v30 = vpop.permute.xlu0 %5164  ;;  %v5172_v57 = vunpack.i.h.bf16 %v5170_v52 }
 0x4fb   :  { %v3803_v49 = vadd.f32 %v6872_v63, %v3780_v42  ;;  %v3781_v11 = vmul.f32 %v6867_v55, %v3715_v48  ;;  %5209 = vrot.lane.b32.xlu1 %v5974_v2, %s5424_s15  ;;  %5204 = vrot.lane.b32.xlu0 %v5203_v47, %s5424_s15  ;;  %v3717_v50 = vpop.f32.mrb[47].mxu0  ;;  %v5167_v42 = vunpack.i.h.bf16 %v5165_v30  ;;  %v5166_v44 = vunpack.i.l.bf16 %v5165_v30 }
 0x4fd   :  { %v3804_v54 = vadd.f32 %v6872_v63, %v3781_v11  ;;  %v3819_v56 = vmax.f32 %v3803_v49, 0.0  ;;  %v5180_v50 = vpop.permute.xlu1 %5179 }
 0x4ff   :  { %v3820_v10 = vmax.f32 %v3804_v54, 0.0  ;;  %5214 = vrot.lane.b32.xlu0 %v6457_v60, %s5427_s24 }
 0x500   :  { %v3720_v0 = vpop.f32.mrb[48].mxu0 }
 0x501   :  { %v3782_v8 = vmul.f32 %v6867_v55, %v3720_v0  ;;  %v3722_v61 = vpop.f32.mrb[49].mxu0  ;;  %v5218_v53 = vpack.i.bf16 %v3820_v10, %v3819_v56 }
 0x502   :  { %v3723_v62 = vpop.f32.mrb[50].mxu0  ;;  %v5181_v61 = vunpack.i.l.bf16 %v5180_v50 }
 0x503   :  { %v3805_v1 = vadd.f32 %v6872_v63, %v3782_v8  ;;  %v3783_v2 = vmul.f32 %v6867_v55, %v3723_v62  ;;  %5224 = vrot.lane.b32.xlu0 %v5988_v58, %s5424_s15  ;;  %5219 = vrot.lane.b32.xlu1 %v5218_v53, %s5424_s15  ;;  %v3725_v3 = vpop.f32.mrb[51].mxu0  ;;  %v5182_v8 = vunpack.i.h.bf16 %v5180_v50 }
 0x505   :  { %v3806_v25 = vadd.f32 %v6872_v63, %v3783_v2  ;;  %v3821_v4 = vmax.f32 %v3805_v1, 0.0 }
 0x507   :  { %v3822_v60 = vmax.f32 %v3806_v25, 0.0  ;;  %5229 = vrot.lane.b32.xlu1 %v6467_v14, %s5427_s24 }
 0x508   :  { %v3728_v19 = vpop.f32.mrb[52].mxu0 }
 0x509   :  { %v3784_v43 = vmul.f32 %v6867_v55, %v3728_v19  ;;  %v3730_v5 = vpop.f32.mrb[53].mxu0  ;;  %v5233_v6 = vpack.i.bf16 %v3822_v60, %v3821_v4 }
 0x50a   :  { %v3731_v7 = vpop.f32.mrb[54].mxu0 }
 0x50b   :  { %v3807_v45 = vadd.f32 %v6872_v63, %v3784_v43  ;;  %v3785_v58 = vmul.f32 %v6867_v55, %v3731_v7  ;;  %5239 = vrot.lane.b32.xlu1 %v6006_v13, %s5424_s15  ;;  %5234 = vrot.lane.b32.xlu0 %v5233_v6, %s5424_s15  ;;  %v3733_v9 = vpop.f32.mrb[55].mxu0 }
 0x50d   :  { %v3808_v12 = vadd.f32 %v6872_v63, %v3785_v58  ;;  %v3823_v51 = vmax.f32 %v3807_v45, 0.0 }
 0x50f   :  { %v3824_v14 = vmax.f32 %v3808_v12, 0.0  ;;  %5244 = vrot.lane.b32.xlu0 %v6477_v27, %s5427_s24 }
 0x510   :  { %v3736_v35 = vpop.f32.mrb[56].mxu0 }
 0x511   :  { %v3786_v15 = vmul.f32 %v6867_v55, %v3736_v35  ;;  %v3738_v16 = vpop.f32.mrb[57].mxu0  ;;  %v5248_v17 = vpack.i.bf16 %v3824_v14, %v3823_v51 }
 0x512   :  { %v3739_v18 = vpop.f32.mrb[58].mxu0 }
 0x513   :  { %v3809_v20 = vadd.f32 %v6872_v63, %v3786_v15  ;;  %v3787_v13 = vmul.f32 %v6867_v55, %v3739_v18  ;;  %5254 = vrot.lane.b32.xlu0 %v6024_v34, %s5424_s15  ;;  %5249 = vrot.lane.b32.xlu1 %v5248_v17, %s5424_s15  ;;  %v3741_v21 = vpop.f32.mrb[59].mxu0 }
 0x515   :  { %v3810_v29 = vadd.f32 %v6872_v63, %v3787_v13  ;;  %v3825_v22 = vmax.f32 %v3809_v20, 0.0 }
 0x517   :  { %v3826_v27 = vmax.f32 %v3810_v29, 0.0  ;;  %5259 = vrot.lane.b32.xlu1 %v6487_v46, %s5427_s24 }
 0x518   :  { %v3744_v24 = vpop.f32.mrb[60].mxu0 }
 0x519   :  { %v3788_v26 = vmul.f32 %v6867_v55, %v3744_v24  ;;  %v3746_v31 = vpop.f32.mrb[61].mxu0  ;;  %v5263_v23 = vpack.i.bf16 %v3826_v27, %v3825_v22 }
 0x51a   :  { %v3747_v36 = vpop.f32.mrb[62].mxu0 }
 0x51b   :  { %v3811_v37 = vadd.f32 %v6872_v63, %v3788_v26  ;;  %v3789_v34 = vmul.f32 %v6867_v55, %v3747_v36  ;;  %5269 = vrot.lane.b32.xlu1 %v6039_v41, %s5424_s15  ;;  %5264 = vrot.lane.b32.xlu0 %v5263_v23, %s5424_s15  ;;  %v3749_v33 = vpop.f32.mrb[63].mxu0  ;;  %v5171_v55 = vunpack.i.l.bf16 %v5170_v52 }
 0x51d   :  { %v3812_v38 = vadd.f32 %v6872_v63, %v3789_v34  ;;  %v3827_v39 = vmax.f32 %v3811_v37, 0.0  ;;  %v3991_v63 = vsel %vm3989_vm3, %v5167_v42, %v5172_v57  ;;  %v3990_v49 = vsel %vm3989_vm3, %v5166_v44, %v5171_v55 }
 0x51f   :  { %v3828_v46 = vmax.f32 %v3812_v38, 0.0  ;;  %5274 = vrot.lane.b32.xlu0 %v6496_v59, %s5427_s24 }
 0x521   :  { %v5278_v40 = vpack.i.bf16 %v3828_v46, %v3827_v39 }
 0x523   :  { %5279 = vrot.lane.b32.xlu1 %v5278_v40, %s5424_s15 }
 0x55d   :  { %v5175_v41 = vpop.permute.xlu0 %5174 }
 0x55e   :  { %v5177_v47 = vunpack.i.h.bf16 %v5175_v41  ;;  %v5176_v48 = vunpack.i.l.bf16 %v5175_v41 }
 0x560   :  { %v4006_v11 = vsel %vm275_vm0, %v3990_v49, %v5176_v48  ;;  %v4007_v59 = vsel %vm275_vm0, %v3991_v63, %v5177_v47 }
 0x561   :  { %v4022_v54 = vpack.c.bf16 %v4007_v59, %v4006_v11  ;;  %v5185_v56 = vpop.permute.xlu0 %5184 }
 0x562   :  { %v5187_v10 = vunpack.i.h.bf16 %v5185_v56  ;;  %v5186_v0 = vunpack.i.l.bf16 %v5185_v56 }
 0x563   :  { %4240 = vmatmul.mubr.bf16.vlgmr.msra.gmra.mrb[48].mxu1 %v4022_v54  ;;  %5010 = vmatprep.mubr.bf16.mxu0 %v4022_v54 }
 0x564   :  { %4249 = vmatprep.mubr.bf16.mxu1 %v5423_v32  ;;  %v3993_v2 = vsel %vm3989_vm3, %v5182_v8, %v5187_v10  ;;  %v3992_v3 = vsel %vm3989_vm3, %v5181_v61, %v5186_v0 }
 0x565   :  { %v5190_v53 = vpop.permute.xlu1 %5189  ;;  %v5195_v60 = vpop.permute.xlu0 %5194 }
 0x566   :  { %v5192_v62 = vunpack.i.h.bf16 %v5190_v53  ;;  %v5191_v1 = vunpack.i.l.bf16 %v5190_v53  ;;  %v5197_v7 = vunpack.i.h.bf16 %v5195_v60  ;;  %v5196_v45 = vunpack.i.l.bf16 %v5195_v60 }
 0x568   :  { %v4008_v25 = vsel %vm275_vm0, %v3992_v3, %v5191_v1  ;;  %v4009_v4 = vsel %vm275_vm0, %v3993_v2, %v5192_v62 }
 0x569   :  { %v5200_v19 = vpop.permute.xlu1 %5199  ;;  %v4023_v43 = vpack.c.bf16 %v4009_v4, %v4008_v25 }
 0x56a   :  { %v5202_v5 = vunpack.i.h.bf16 %v5200_v19  ;;  %v5201_v6 = vunpack.i.l.bf16 %v5200_v19 }
 0x56b   :  { %4250 = vmatmul.mubr.bf16.gmra.mrb[52].mxu1 %v4023_v43  ;;  %5011 = vmatmul.mubr.bf16.vlgmr.msra.gmra.mrb[64].mxu0 %v4023_v43 }
 0x56c   :  { %4259 = vmatprep.mubr.bf16.mxu1 %v5423_v32  ;;  %v3994_v51 = vsel %vm3989_vm3, %v5196_v45, %v5201_v6  ;;  %v3995_v14 = vsel %vm3989_vm3, %v5197_v7, %v5202_v5 }
 0x56d   :  { %v5205_v58 = vpop.permute.xlu0 %5204  ;;  %v5210_v16 = vpop.permute.xlu1 %5209 }
 0x56e   :  { %v5207_v9 = vunpack.i.h.bf16 %v5205_v58  ;;  %v5206_v12 = vunpack.i.l.bf16 %v5205_v58  ;;  %v5212_v21 = vunpack.i.h.bf16 %v5210_v16  ;;  %v5211_v29 = vunpack.i.l.bf16 %v5210_v16 }
 0x570   :  { %v4010_v35 = vsel %vm275_vm0, %v3994_v51, %v5206_v12  ;;  %v4011_v15 = vsel %vm275_vm0, %v3995_v14, %v5207_v9 }
 0x571   :  { %v5215_v17 = vpop.permute.xlu0 %5214  ;;  %v4024_v18 = vpack.c.bf16 %v4011_v15, %v4010_v35 }
 0x572   :  { %v5217_v20 = vunpack.i.h.bf16 %v5215_v17  ;;  %v5216_v13 = vunpack.i.l.bf16 %v5215_v17 }
 0x573   :  { %4260 = vmatmul.mubr.bf16.gmra.mrb[56].mxu1 %v4024_v18  ;;  %5014 = vmatprep.mubr.bf16.mxu0 %v4024_v18 }
 0x574   :  { %4269 = vmatprep.mubr.bf16.mxu1 %v5423_v32  ;;  %v3997_v26 = vsel %vm3989_vm3, %v5212_v21, %v5217_v20  ;;  %v3996_v31 = vsel %vm3989_vm3, %v5211_v29, %v5216_v13 }
 0x575   :  { %v5220_v22 = vpop.permute.xlu1 %5219  ;;  %v5225_v37 = vpop.permute.xlu0 %5224 }
 0x576   :  { %v5222_v27 = vunpack.i.h.bf16 %v5220_v22  ;;  %v5221_v24 = vunpack.i.l.bf16 %v5220_v22  ;;  %v5227_v46 = vunpack.i.h.bf16 %v5225_v37  ;;  %v5226_v40 = vunpack.i.l.bf16 %v5225_v37 }
 0x578   :  { %v4012_v23 = vsel %vm275_vm0, %v3996_v31, %v5221_v24  ;;  %v4013_v36 = vsel %vm275_vm0, %v3997_v26, %v5222_v27  ;;  %v4065_v24 = vshrl.u32 %v556_v28, 7  ;;  %v4418_v28 = vld [vmem:[%s7218_s0 + $0x8] sm:$0xff] }
 0x579   :  { %v5230_v34 = vpop.permute.xlu1 %5229  ;;  %v4025_v33 = vpack.c.bf16 %v4013_v36, %v4012_v23 }
 0x57a   :  { %v5232_v38 = vunpack.i.h.bf16 %v5230_v34  ;;  %v5231_v39 = vunpack.i.l.bf16 %v5230_v34  ;;  %v4066_v26 = vsub.s32 0, %v4065_v24  ;;  %v4070_v31 = vsub.s32 1, %v4065_v24  ;;  %v4417_v34 = vld [vmem:[%s7218_s0] sm:$0xff] }
 0x57b   :  { %4270 = vmatmul.mubr.bf16.gmra.mrb[60].mxu1 %v4025_v33  ;;  %5015 = vmatmul.mubr.bf16.gmra.mrb[68].mxu0 %v4025_v33 }
 0x57c   :  { %4279 = vmatprep.mubr.bf16.mxu1 %v5423_v32  ;;  %v3998_v55 = vsel %vm3989_vm3, %v5226_v40, %v5231_v39  ;;  %v3999_v42 = vsel %vm3989_vm3, %v5227_v46, %v5232_v38  ;;  %v4074_v39 = vsub.s32 2, %v4065_v24 }
 0x57d   :  { %v5235_v52 = vpop.permute.xlu0 %5234  ;;  %v5240_v47 = vpop.permute.xlu1 %5239 }
 0x57e   :  { %v5237_v30 = vunpack.i.h.bf16 %v5235_v52  ;;  %v5236_v57 = vunpack.i.l.bf16 %v5235_v52  ;;  %v5242_v59 = vunpack.i.h.bf16 %v5240_v47  ;;  %v5241_v50 = vunpack.i.l.bf16 %v5240_v47  ;;  %v4420_v52 = vld [vmem:[%s7218_s0 + $0x18] sm:$0xff] }
 0x580   :  { %v4014_v44 = vsel %vm275_vm0, %v3998_v55, %v5236_v57  ;;  %v4015_v41 = vsel %vm275_vm0, %v3999_v42, %v5237_v30  ;;  %v4421_v42 = vld [vmem:[%s7218_s0 + $0x20] sm:$0xff] }
 0x581   :  { %v5245_v48 = vpop.permute.xlu0 %5244  ;;  %v4026_v63 = vpack.c.bf16 %v4015_v41, %v4014_v44 }
 0x582   :  { %v5247_v49 = vunpack.i.h.bf16 %v5245_v48  ;;  %v5246_v11 = vunpack.i.l.bf16 %v5245_v48 }
 0x583   :  { %4280 = vmatmul.mubr.bf16.gmra.mrb[64].mxu1 %v4026_v63  ;;  %5018 = vmatprep.mubr.bf16.mxu0 %v4026_v63 }
 0x584   :  { %4289 = vmatprep.mubr.bf16.mxu1 %v5423_v32  ;;  %v4001_v0 = vsel %vm3989_vm3, %v5242_v59, %v5247_v49  ;;  %v4000_v8 = vsel %vm3989_vm3, %v5241_v50, %v5246_v11 }
 0x585   :  { %v5250_v54 = vpop.permute.xlu1 %5249  ;;  %v5255_v62 = vpop.permute.xlu0 %5254 }
 0x586   :  { %v5252_v56 = vunpack.i.h.bf16 %v5250_v54  ;;  %v5251_v10 = vunpack.i.l.bf16 %v5250_v54  ;;  %v5257_v4 = vunpack.i.h.bf16 %v5255_v62  ;;  %v5256_v60 = vunpack.i.l.bf16 %v5255_v62  ;;  %v4424_v62 = vld [vmem:[%s7218_s0 + $0x38] sm:$0xff] }
 0x588   :  { %v4016_v61 = vsel %vm275_vm0, %v4000_v8, %v5251_v10  ;;  %v4017_v53 = vsel %vm275_vm0, %v4001_v0, %v5252_v56  ;;  %v4423_v56 = vld [vmem:[%s7218_s0 + $0x30] sm:$0xff]  ;;  %v4425_v0 = vld [vmem:[%s7218_s0 + $0x40] sm:$0xff] }
 0x589   :  { %v5260_v1 = vpop.permute.xlu1 %5259  ;;  %v4027_v2 = vpack.c.bf16 %v4017_v53, %v4016_v61 }
 0x58a   :  { %v5262_v3 = vunpack.i.h.bf16 %v5260_v1  ;;  %v5261_v25 = vunpack.i.l.bf16 %v5260_v1 }
 0x58b   :  { %4290 = vmatmul.mubr.bf16.gmra.mrb[68].mxu1 %v4027_v2  ;;  %5019 = vmatmul.mubr.bf16.gmra.mrb[72].mxu0 %v4027_v2  ;;  %v4419_v2 = vld [vmem:[%s7218_s0 + $0x10] sm:$0xff] }
 0x58c   :  { %4299 = vmatprep.mubr.bf16.mxu1 %v5423_v32  ;;  %v4002_v6 = vsel %vm3989_vm3, %v5256_v60, %v5261_v25  ;;  %v4003_v7 = vsel %vm3989_vm3, %v5257_v4, %v5262_v3  ;;  %v4426_v60 = vld [vmem:[%s7218_s0 + $0x48] sm:$0xff] }
 0x58d   :  { %v5265_v19 = vpop.permute.xlu0 %5264  ;;  %v5270_v9 = vpop.permute.xlu1 %5269 }
 0x58e   :  { %v5267_v43 = vunpack.i.h.bf16 %v5265_v19  ;;  %v5266_v5 = vunpack.i.l.bf16 %v5265_v19  ;;  %v5272_v15 = vunpack.i.h.bf16 %v5270_v9  ;;  %v5271_v16 = vunpack.i.l.bf16 %v5270_v9  ;;  %v4427_v9 = vld [vmem:[%s7218_s0 + $0x50] sm:$0xff] }
 0x590   :  { %v4018_v45 = vsel %vm275_vm0, %v4002_v6, %v5266_v5  ;;  %v4019_v58 = vsel %vm275_vm0, %v4003_v7, %v5267_v43  ;;  %v4428_v43 = vld [vmem:[%s7218_s0 + $0x58] sm:$0xff] }
 0x591   :  { %v5275_v12 = vpop.permute.xlu0 %5274  ;;  %v4028_v51 = vpack.c.bf16 %v4019_v58, %v4018_v45 }
 0x592   :  { %v5277_v14 = vunpack.i.h.bf16 %v5275_v12  ;;  %v5276_v35 = vunpack.i.l.bf16 %v5275_v12 }
 0x593   :  { %4300 = vmatmul.mubr.bf16.gmra.mrb[72].mxu1 %v4028_v51  ;;  %5022 = vmatprep.mubr.bf16.mxu0 %v4028_v51  ;;  %v4422_v51 = vld [vmem:[%s7218_s0 + $0x28] sm:$0xff] }
 0x594   :  { %4309 = vmatprep.mubr.bf16.mxu1 %v5423_v32  ;;  %v4005_v13 = vsel %vm3989_vm3, %v5272_v15, %v5277_v14  ;;  %v4004_v21 = vsel %vm3989_vm3, %v5271_v16, %v5276_v35  ;;  %v4062_v32 = vld [vmem:[%s7229_s11] sm:$0x7] }
 0x595   :  { %v5280_v17 = vpop.permute.xlu1 %5279  ;;  %v6992_v23 = vrot.slane %v4062_v32, %v4066_v26  ;;  %v6994_v36 = vrot.slane %v4062_v32, %v4070_v31  ;;  %v7012_v63 = vrot.slane %v4062_v32, %v4074_v39 }
 0x596   :  { %v5282_v18 = vunpack.i.h.bf16 %v5280_v17  ;;  %v5281_v20 = vunpack.i.l.bf16 %v5280_v17 }
 0x598   :  { %v4020_v29 = vsel %vm275_vm0, %v4004_v21, %v5281_v20  ;;  %v4021_v22 = vsel %vm275_vm0, %v4005_v13, %v5282_v18 }
 0x599   :  { %v4029_v27 = vpack.c.bf16 %v4021_v22, %v4020_v29 }
 0x59b   :  { %4310 = vmatmul.mubr.bf16.gmra.mrb[76].mxu1 %v4029_v27  ;;  %5023 = vmatmul.mubr.bf16.gmra.mrb[76].mxu0 %v4029_v27 }
 0x636   :  { %v4241_v37 = vpop.f32.mrb[48].mxu1 }
 0x637   :  { %v4242_v33 = vadd.f32 %v4241_v37, %v6992_v23  ;;  %v4243_v38 = vpop.f32.mrb[49].mxu1 }
 0x638   :  { %v4244_v46 = vadd.f32 %v4243_v38, %v6994_v36  ;;  %v4245_v40 = vpop.f32.mrb[50].mxu1 }
 0x639   :  { %v4465_v30 = vadd.f32 %v4417_v34, %v4242_v33  ;;  %v4246_v57 = vadd.f32 %v4245_v40, %v6992_v23  ;;  %v4247_v55 = vpop.f32.mrb[51].mxu1  ;;  %v4429_v34 = vld [vmem:[%s7218_s0 + $0x60] sm:$0xff]  ;;  %v4432_v40 = vld [vmem:[%s7218_s0 + $0x78] sm:$0xff] }
 0x63a   :  { %v4466_v44 = vadd.f32 %v4418_v28, %v4244_v46  ;;  %v4248_v41 = vadd.f32 %v4247_v55, %v6994_v36  ;;  %v4430_v28 = vld [vmem:[%s7218_s0 + $0x68] sm:$0xff]  ;;  %v4433_v55 = vld [vmem:[%s7218_s0 + $0x80] sm:$0xff] }
 0x63b   :  { %v4513_v47 = vmax.f32 %v4465_v30, 0.0  ;;  %v4468_v48 = vadd.f32 %v4420_v52, %v4246_v57 }
 0x63c   :  { %v4514_v49 = vmax.f32 %v4466_v44, 0.0  ;;  %v4469_v11 = vadd.f32 %v4421_v42, %v4248_v41 }
 0x63d   :  { %4561 = vst [vmem:[#allocation4] sm:$0xff] %v4513_v47  ;;  %v4516_v59 = vmax.f32 %v4468_v48, 0.0 }
 0x63e   :  { %4562 = vst [vmem:[#allocation4 + $0x8] sm:$0xff] %v4514_v49  ;;  %v4517_v50 = vmax.f32 %v4469_v11, 0.0  ;;  %v4251_v54 = vpop.f32.mrb[52].mxu1  ;;  %v5012_v10 = vpop.f32.mrb[64].mxu0 }
 0x63f   :  { %4564 = vst [vmem:[#allocation4 + $0x18] sm:$0xff] %v4516_v59  ;;  %v4252_v8 = vadd.f32 %v4251_v54, %v6992_v23  ;;  %v4363_v61 = vadd.f32 %v5012_v10, %v7012_v63  ;;  %v4253_v53 = vpop.f32.mrb[53].mxu1  ;;  %v4354_v1 = vpop.f32.mrb[65].mxu0  ;;  %v4435_v54 = vld [vmem:[%s7218_s0 + $0x90] sm:$0xff]  ;;  %v4437_v10 = vld [vmem:[%s7218_s0 + $0xa0] sm:$0xff] }
 0x640   :  { %4565 = vst [vmem:[#allocation4 + $0x20] sm:$0xff] %v4517_v50  ;;  %v4254_v3 = vadd.f32 %v4253_v53, %v6994_v36  ;;  %v4355_v25 = vadd.f32 %v4354_v1, %v7012_v63  ;;  %v4255_v4 = vpop.f32.mrb[54].mxu1  ;;  %v5013_v19 = vpop.f32.mrb[66].mxu0  ;;  %v4436_v53 = vld [vmem:[%s7218_s0 + $0x98] sm:$0xff]  ;;  %v4431_v1 = vld [vmem:[%s7218_s0 + $0x70] sm:$0xff] }
 0x641   :  { %v4471_v5 = vadd.f32 %v4423_v56, %v4252_v8  ;;  %v4473_v6 = vadd.f32 %v4425_v0, %v4363_v61  ;;  %v4256_v7 = vadd.f32 %v4255_v4, %v6992_v23  ;;  %v4366_v45 = vadd.f32 %v5013_v19, %v7012_v63  ;;  %v4257_v58 = vpop.f32.mrb[55].mxu1  ;;  %v4357_v12 = vpop.f32.mrb[67].mxu0  ;;  %v4438_v4 = vld [vmem:[%s7218_s0 + $0xa8] sm:$0xff]  ;;  %v4440_v19 = vld [vmem:[%s7218_s0 + $0xb8] sm:$0xff] }
 0x642   :  { %v4472_v14 = vadd.f32 %v4424_v62, %v4254_v3  ;;  %v4467_v35 = vadd.f32 %v4419_v2, %v4355_v25  ;;  %v4258_v15 = vadd.f32 %v4257_v58, %v6994_v36  ;;  %v4358_v16 = vadd.f32 %v4357_v12, %v7012_v63  ;;  %v4439_v58 = vld [vmem:[%s7218_s0 + $0xb0] sm:$0xff]  ;;  %v4434_v12 = vld [vmem:[%s7218_s0 + $0x88] sm:$0xff] }
 0x643   :  { %v4519_v17 = vmax.f32 %v4471_v5, 0.0  ;;  %v4521_v18 = vmax.f32 %v4473_v6, 0.0  ;;  %v4474_v20 = vadd.f32 %v4426_v60, %v4256_v7  ;;  %v4476_v13 = vadd.f32 %v4428_v43, %v4366_v45 }
 0x644   :  { %v4520_v21 = vmax.f32 %v4472_v14, 0.0  ;;  %v4515_v29 = vmax.f32 %v4467_v35, 0.0  ;;  %v4475_v22 = vadd.f32 %v4427_v9, %v4258_v15  ;;  %v4470_v27 = vadd.f32 %v4422_v51, %v4358_v16 }
 0x645   :  { %4567 = vst [vmem:[#allocation4 + $0x30] sm:$0xff] %v4519_v17  ;;  %4569 = vst.msk [vmem:[#allocation4 + $0x40] sm:$0xff] %vm275_vm0, %v4521_v18  ;;  %v4522_v24 = vmax.f32 %v4474_v20, 0.0  ;;  %v4524_v26 = vmax.f32 %v4476_v13, 0.0 }
 0x646   :  { %4568 = vst [vmem:[#allocation4 + $0x38] sm:$0xff] %v4520_v21  ;;  %4563 = vst.msk [vmem:[#allocation4 + $0x10] sm:$0xff] %vm275_vm0, %v4515_v29  ;;  %v4523_v32 = vmax.f32 %v4475_v22, 0.0  ;;  %v4518_v31 = vmax.f32 %v4470_v27, 0.0  ;;  %v4261_v37 = vpop.f32.mrb[56].mxu1 }
 0x647   :  { %4570 = vst [vmem:[#allocation4 + $0x48] sm:$0xff] %v4522_v24  ;;  %4572 = vst.msk [vmem:[#allocation4 + $0x58] sm:$0xff] %vm275_vm0, %v4524_v26  ;;  %v4262_v33 = vadd.f32 %v4261_v37, %v6992_v23  ;;  %v4263_v38 = vpop.f32.mrb[57].mxu1  ;;  %v4441_v37 = vld [vmem:[%s7218_s0 + $0xc0] sm:$0xff] }
 0x648   :  { %4571 = vst [vmem:[#allocation4 + $0x50] sm:$0xff] %v4523_v32  ;;  %4566 = vst.msk [vmem:[#allocation4 + $0x28] sm:$0xff] %vm275_vm0, %v4518_v31  ;;  %v4264_v39 = vadd.f32 %v4263_v38, %v6994_v36  ;;  %v4265_v46 = vpop.f32.mrb[58].mxu1  ;;  %v4442_v38 = vld [vmem:[%s7218_s0 + $0xc8] sm:$0xff] }
 0x649   :  { %v4477_v52 = vadd.f32 %v4429_v34, %v4262_v33  ;;  %v4266_v30 = vadd.f32 %v4265_v46, %v6992_v23  ;;  %v4267_v57 = vpop.f32.mrb[59].mxu1  ;;  %v4444_v46 = vld [vmem:[%s7218_s0 + $0xd8] sm:$0xff] }
 0x64a   :  { %v4478_v42 = vadd.f32 %v4430_v28, %v4264_v39  ;;  %v4268_v44 = vadd.f32 %v4267_v57, %v6994_v36  ;;  %v4445_v57 = vld [vmem:[%s7218_s0 + $0xe0] sm:$0xff] }
 0x64b   :  { %v4525_v41 = vmax.f32 %v4477_v52, 0.0  ;;  %v4480_v47 = vadd.f32 %v4432_v40, %v4266_v30 }
 0x64c   :  { %v4526_v48 = vmax.f32 %v4478_v42, 0.0  ;;  %v4481_v49 = vadd.f32 %v4433_v55, %v4268_v44 }
 0x64d   :  { %4573 = vst [vmem:[#allocation4 + $0x60] sm:$0xff] %v4525_v41  ;;  %v4528_v11 = vmax.f32 %v4480_v47, 0.0 }
 0x64e   :  { %4574 = vst [vmem:[#allocation4 + $0x68] sm:$0xff] %v4526_v48  ;;  %v4529_v59 = vmax.f32 %v4481_v49, 0.0  ;;  %v4271_v50 = vpop.f32.mrb[60].mxu1  ;;  %v5016_v56 = vpop.f32.mrb[68].mxu0 }
 0x64f   :  { %4576 = vst [vmem:[#allocation4 + $0x78] sm:$0xff] %v4528_v11  ;;  %v4272_v0 = vadd.f32 %v4271_v50, %v6992_v23  ;;  %v4379_v8 = vadd.f32 %v5016_v56, %v7012_v63  ;;  %v4273_v61 = vpop.f32.mrb[61].mxu1  ;;  %v4370_v62 = vpop.f32.mrb[69].mxu0  ;;  %v4447_v50 = vld [vmem:[%s7218_s0 + $0xf0] sm:$0xff]  ;;  %v4449_v56 = vld [vmem:[%s7218_s0 + $0x100] sm:$0xff] }
 0x650   :  { %4577 = vst [vmem:[#allocation4 + $0x80] sm:$0xff] %v4529_v59  ;;  %v4274_v2 = vadd.f32 %v4273_v61, %v6994_v36  ;;  %v4371_v3 = vadd.f32 %v4370_v62, %v7012_v63  ;;  %v4275_v25 = vpop.f32.mrb[62].mxu1  ;;  %v5017_v60 = vpop.f32.mrb[70].mxu0  ;;  %v4448_v61 = vld [vmem:[%s7218_s0 + $0xf8] sm:$0xff]  ;;  %v4443_v62 = vld [vmem:[%s7218_s0 + $0xd0] sm:$0xff] }
 0x651   :  { %v4483_v43 = vadd.f32 %v4435_v54, %v4272_v0  ;;  %v4485_v5 = vadd.f32 %v4437_v10, %v4379_v8  ;;  %v4276_v6 = vadd.f32 %v4275_v25, %v6992_v23  ;;  %v4382_v7 = vadd.f32 %v5017_v60, %v7012_v63  ;;  %v4277_v45 = vpop.f32.mrb[63].mxu1  ;;  %v4373_v9 = vpop.f32.mrb[71].mxu0  ;;  %v4450_v25 = vld [vmem:[%s7218_s0 + $0x108] sm:$0xff]  ;;  %v4452_v60 = vld [vmem:[%s7218_s0 + $0x118] sm:$0xff] }
 0x652   :  { %v4484_v51 = vadd.f32 %v4436_v53, %v4274_v2  ;;  %v4479_v14 = vadd.f32 %v4431_v1, %v4371_v3  ;;  %v4278_v35 = vadd.f32 %v4277_v45, %v6994_v36  ;;  %v4374_v15 = vadd.f32 %v4373_v9, %v7012_v63  ;;  %v4451_v45 = vld [vmem:[%s7218_s0 + $0x110] sm:$0xff]  ;;  %v4446_v9 = vld [vmem:[%s7218_s0 + $0xe8] sm:$0xff] }
 0x653   :  { %v4531_v16 = vmax.f32 %v4483_v43, 0.0  ;;  %v4533_v17 = vmax.f32 %v4485_v5, 0.0  ;;  %v4486_v18 = vadd.f32 %v4438_v4, %v4276_v6  ;;  %v4488_v20 = vadd.f32 %v4440_v19, %v4382_v7 }
 0x654   :  { %v4532_v13 = vmax.f32 %v4484_v51, 0.0  ;;  %v4527_v21 = vmax.f32 %v4479_v14, 0.0  ;;  %v4487_v29 = vadd.f32 %v4439_v58, %v4278_v35  ;;  %v4482_v22 = vadd.f32 %v4434_v12, %v4374_v15 }
 0x655   :  { %4579 = vst [vmem:[#allocation4 + $0x90] sm:$0xff] %v4531_v16  ;;  %4581 = vst.msk [vmem:[#allocation4 + $0xa0] sm:$0xff] %vm275_vm0, %v4533_v17  ;;  %v4534_v27 = vmax.f32 %v4486_v18, 0.0  ;;  %v4536_v24 = vmax.f32 %v4488_v20, 0.0 }
 0x656   :  { %4580 = vst [vmem:[#allocation4 + $0x98] sm:$0xff] %v4532_v13  ;;  %4575 = vst.msk [vmem:[#allocation4 + $0x70] sm:$0xff] %vm275_vm0, %v4527_v21  ;;  %v4535_v26 = vmax.f32 %v4487_v29, 0.0  ;;  %v4530_v32 = vmax.f32 %v4482_v22, 0.0  ;;  %v4281_v31 = vpop.f32.mrb[64].mxu1 }
 0x657   :  { %4582 = vst [vmem:[#allocation4 + $0xa8] sm:$0xff] %v4534_v27  ;;  %4584 = vst.msk [vmem:[#allocation4 + $0xb8] sm:$0xff] %vm275_vm0, %v4536_v24  ;;  %v4282_v34 = vadd.f32 %v4281_v31, %v6992_v23  ;;  %v4283_v33 = vpop.f32.mrb[65].mxu1  ;;  %v4453_v31 = vld [vmem:[%s7218_s0 + $0x120] sm:$0xff] }
 0x658   :  { %4583 = vst [vmem:[#allocation4 + $0xb0] sm:$0xff] %v4535_v26  ;;  %4578 = vst.msk [vmem:[#allocation4 + $0x88] sm:$0xff] %vm275_vm0, %v4530_v32  ;;  %v4284_v28 = vadd.f32 %v4283_v33, %v6994_v36  ;;  %v4285_v39 = vpop.f32.mrb[66].mxu1  ;;  %v4454_v33 = vld [vmem:[%s7218_s0 + $0x128] sm:$0xff] }
 0x659   :  { %v4489_v40 = vadd.f32 %v4441_v37, %v4282_v34  ;;  %v4286_v52 = vadd.f32 %v4285_v39, %v6992_v23  ;;  %v4287_v30 = vpop.f32.mrb[67].mxu1  ;;  %v4456_v39 = vld [vmem:[%s7218_s0 + $0x138] sm:$0xff] }
 0x65a   :  { %v4490_v55 = vadd.f32 %v4442_v38, %v4284_v28  ;;  %v4288_v42 = vadd.f32 %v4287_v30, %v6994_v36  ;;  %v4457_v30 = vld [vmem:[%s7218_s0 + $0x140] sm:$0xff] }
 0x65b   :  { %v4537_v44 = vmax.f32 %v4489_v40, 0.0  ;;  %v4492_v41 = vadd.f32 %v4444_v46, %v4286_v52 }
 0x65c   :  { %v4538_v47 = vmax.f32 %v4490_v55, 0.0  ;;  %v4493_v48 = vadd.f32 %v4445_v57, %v4288_v42 }
 0x65d   :  { %4585 = vst [vmem:[#allocation4 + $0xc0] sm:$0xff] %v4537_v44  ;;  %v4540_v49 = vmax.f32 %v4492_v41, 0.0 }
 0x65e   :  { %4586 = vst [vmem:[#allocation4 + $0xc8] sm:$0xff] %v4538_v47  ;;  %v4541_v11 = vmax.f32 %v4493_v48, 0.0  ;;  %v4291_v59 = vpop.f32.mrb[68].mxu1  ;;  %v5020_v54 = vpop.f32.mrb[72].mxu0 }
 0x65f   :  { %4588 = vst [vmem:[#allocation4 + $0xd8] sm:$0xff] %v4540_v49  ;;  %v4292_v10 = vadd.f32 %v4291_v59, %v6992_v23  ;;  %v4395_v0 = vadd.f32 %v5020_v54, %v7012_v63  ;;  %v4293_v8 = vpop.f32.mrb[69].mxu1  ;;  %v4386_v53 = vpop.f32.mrb[73].mxu0  ;;  %v4459_v59 = vld [vmem:[%s7218_s0 + $0x150] sm:$0xff]  ;;  %v4461_v54 = vld [vmem:[%s7218_s0 + $0x160] sm:$0xff] }
 0x660   :  { %4589 = vst [vmem:[#allocation4 + $0xe0] sm:$0xff] %v4541_v11  ;;  %v4294_v1 = vadd.f32 %v4293_v8, %v6994_v36  ;;  %v4387_v2 = vadd.f32 %v4386_v53, %v7012_v63  ;;  %v4295_v3 = vpop.f32.mrb[70].mxu1  ;;  %v5021_v4 = vpop.f32.mrb[74].mxu0  ;;  %v4460_v8 = vld [vmem:[%s7218_s0 + $0x158] sm:$0xff]  ;;  %v4455_v53 = vld [vmem:[%s7218_s0 + $0x130] sm:$0xff] }
 0x661   :  { %v4495_v19 = vadd.f32 %v4447_v50, %v4292_v10  ;;  %v4497_v43 = vadd.f32 %v4449_v56, %v4395_v0  ;;  %v4296_v5 = vadd.f32 %v4295_v3, %v6992_v23  ;;  %v4398_v6 = vadd.f32 %v5021_v4, %v7012_v63  ;;  %v4297_v7 = vpop.f32.mrb[71].mxu1  ;;  %v4389_v58 = vpop.f32.mrb[75].mxu0  ;;  %v4462_v3 = vld [vmem:[%s7218_s0 + $0x168] sm:$0xff]  ;;  %v4464_v4 = vld [vmem:[%s7218_s0 + $0x178] sm:$0xff] }
 0x662   :  { %v4496_v12 = vadd.f32 %v4448_v61, %v4294_v1  ;;  %v4491_v51 = vadd.f32 %v4443_v62, %v4387_v2  ;;  %v4298_v14 = vadd.f32 %v4297_v7, %v6994_v36  ;;  %v4390_v35 = vadd.f32 %v4389_v58, %v7012_v63  ;;  %v4463_v7 = vld [vmem:[%s7218_s0 + $0x170] sm:$0xff]  ;;  %v4458_v58 = vld [vmem:[%s7218_s0 + $0x148] sm:$0xff]  ;;  %s5398_s0 = scalar_lea.vmem %s4615_s28, 6144 }
 0x663   :  { %v4543_v15 = vmax.f32 %v4495_v19, 0.0  ;;  %v4545_v16 = vmax.f32 %v4497_v43, 0.0  ;;  %v4498_v17 = vadd.f32 %v4450_v25, %v4296_v5  ;;  %v4500_v18 = vadd.f32 %v4452_v60, %v4398_v6  ;;  %p5399_p0 = scmp.ne.s32.totalorder %s4615_s28, %s5398_s0  ;;  %p5404_p2 = scmp.lt.s32.totalorder %s5398_s0, %s5398_s0 }
 0x664   :  { %v4544_v20 = vmax.f32 %v4496_v12, 0.0  ;;  %v4539_v13 = vmax.f32 %v4491_v51, 0.0  ;;  %v4499_v21 = vadd.f32 %v4451_v45, %v4298_v14  ;;  %v4494_v29 = vadd.f32 %v4446_v9, %v4390_v35 }
 0x665   :  { %4591 = vst [vmem:[#allocation4 + $0xf0] sm:$0xff] %v4543_v15  ;;  %4593 = vst.msk [vmem:[#allocation4 + $0x100] sm:$0xff] %vm275_vm0, %v4545_v16  ;;  %v4546_v22 = vmax.f32 %v4498_v17, 0.0  ;;  %v4548_v27 = vmax.f32 %v4500_v18, 0.0  ;;  %p5405_p3 = por %p5404_p2, %p5403_p1 }
 0x666   :  { %4592 = vst [vmem:[#allocation4 + $0xf8] sm:$0xff] %v4544_v20  ;;  %4587 = vst.msk [vmem:[#allocation4 + $0xd0] sm:$0xff] %vm275_vm0, %v4539_v13  ;;  %v4547_v24 = vmax.f32 %v4499_v21, 0.0  ;;  %v4542_v26 = vmax.f32 %v4494_v29, 0.0  ;;  %v4301_v32 = vpop.f32.mrb[72].mxu1 }
 0x667   :  { %4594 = vst [vmem:[#allocation4 + $0x108] sm:$0xff] %v4546_v22  ;;  %4596 = vst.msk [vmem:[#allocation4 + $0x118] sm:$0xff] %vm275_vm0, %v4548_v27  ;;  %v4302_v37 = vadd.f32 %v4301_v32, %v6992_v23  ;;  %v4303_v34 = vpop.f32.mrb[73].mxu1  ;;  %p5406_p4 = pnand %p5405_p3, %p5399_p0 }
 0x668   :  { %4595 = vst [vmem:[#allocation4 + $0x110] sm:$0xff] %v4547_v24  ;;  %4590 = vst.msk [vmem:[#allocation4 + $0xe8] sm:$0xff] %vm275_vm0, %v4542_v26  ;;  %v4304_v38 = vadd.f32 %v4303_v34, %v6994_v36  ;;  %v4305_v28 = vpop.f32.mrb[74].mxu1 }
 0x669   :  { %v4501_v46 = vadd.f32 %v4453_v31, %v4302_v37  ;;  %v4306_v40 = vadd.f32 %v4305_v28, %v6992_v23  ;;  %v4307_v52 = vpop.f32.mrb[75].mxu1 }
 0x66a   :  { %v4502_v57 = vadd.f32 %v4454_v33, %v4304_v38  ;;  %v4308_v55 = vadd.f32 %v4307_v52, %v6994_v36 }
 0x66b   :  { %v4549_v42 = vmax.f32 %v4501_v46, 0.0  ;;  %v4504_v44 = vadd.f32 %v4456_v39, %v4306_v40 }
 0x66c   :  { %v4550_v41 = vmax.f32 %v4502_v57, 0.0  ;;  %v4505_v47 = vadd.f32 %v4457_v30, %v4308_v55 }
 0x66d   :  { %4597 = vst [vmem:[#allocation4 + $0x120] sm:$0xff] %v4549_v42  ;;  %v4552_v48 = vmax.f32 %v4504_v44, 0.0 }
 0x66e   :  { %4598 = vst [vmem:[#allocation4 + $0x128] sm:$0xff] %v4550_v41  ;;  %v4553_v49 = vmax.f32 %v4505_v47, 0.0  ;;  %v4311_v11 = vpop.f32.mrb[76].mxu1  ;;  %v5024_v50 = vpop.f32.mrb[76].mxu0 }
 0x66f   :  { %4600 = vst [vmem:[#allocation4 + $0x138] sm:$0xff] %v4552_v48  ;;  %v4312_v56 = vadd.f32 %v4311_v11, %v6992_v23  ;;  %v4411_v10 = vadd.f32 %v5024_v50, %v7012_v63  ;;  %v4313_v0 = vpop.f32.mrb[77].mxu1  ;;  %v4402_v61 = vpop.f32.mrb[77].mxu0 }
 0x670   :  { %4601 = vst [vmem:[#allocation4 + $0x140] sm:$0xff] %v4553_v49  ;;  %v4314_v62 = vadd.f32 %v4313_v0, %v6994_v36  ;;  %v4403_v1 = vadd.f32 %v4402_v61, %v7012_v63  ;;  %v4315_v2 = vpop.f32.mrb[78].mxu1  ;;  %v5025_v25 = vpop.f32.mrb[78].mxu0 }
 0x671   :  { %v4507_v60 = vadd.f32 %v4459_v59, %v4312_v56  ;;  %v4509_v19 = vadd.f32 %v4461_v54, %v4411_v10  ;;  %v4316_v43 = vadd.f32 %v4315_v2, %v6992_v23  ;;  %v4414_v5 = vadd.f32 %v5025_v25, %v7012_v63  ;;  %v4317_v6 = vpop.f32.mrb[79].mxu1  ;;  %v4405_v45 = vpop.f32.mrb[79].mxu0 }
 0x672   :  { %v4508_v9 = vadd.f32 %v4460_v8, %v4314_v62  ;;  %v4503_v12 = vadd.f32 %v4455_v53, %v4403_v1  ;;  %v4318_v51 = vadd.f32 %v4317_v6, %v6994_v36  ;;  %v4406_v14 = vadd.f32 %v4405_v45, %v7012_v63 }
 0x673   :  { %v4555_v35 = vmax.f32 %v4507_v60, 0.0  ;;  %v4557_v23 = vmax.f32 %v4509_v19, 0.0  ;;  %v4510_v15 = vadd.f32 %v4462_v3, %v4316_v43  ;;  %v4512_v16 = vadd.f32 %v4464_v4, %v4414_v5 }
 0x674   :  { %v4556_v17 = vmax.f32 %v4508_v9, 0.0  ;;  %v4551_v18 = vmax.f32 %v4503_v12, 0.0  ;;  %v4511_v20 = vadd.f32 %v4463_v7, %v4318_v51  ;;  %v4506_v13 = vadd.f32 %v4458_v58, %v4406_v14 }
 0x675   :  { %4603 = vst [vmem:[#allocation4 + $0x150] sm:$0xff] %v4555_v35  ;;  %4605 = vst.msk [vmem:[#allocation4 + $0x160] sm:$0xff] %vm275_vm0, %v4557_v23  ;;  %v4558_v21 = vmax.f32 %v4510_v15, 0.0  ;;  %v4560_v29 = vmax.f32 %v4512_v16, 0.0 }
 0x676   :  { %4604 = vst [vmem:[#allocation4 + $0x158] sm:$0xff] %v4556_v17  ;;  %4599 = vst.msk [vmem:[#allocation4 + $0x130] sm:$0xff] %vm275_vm0, %v4551_v18  ;;  %v4559_v36 = vmax.f32 %v4511_v20, 0.0  ;;  %v4554_v63 = vmax.f32 %v4506_v13, 0.0 }
 0x677   :  { %4606 = vst [vmem:[#allocation4 + $0x168] sm:$0xff] %v4558_v21  ;;  %4608 = vst.msk [vmem:[#allocation4 + $0x178] sm:$0xff] %vm275_vm0, %v4560_v29 }
 0x678   :  { %4607 = vst [vmem:[#allocation4 + $0x170] sm:$0xff] %v4559_v36  ;;  %4602 = vst.msk [vmem:[#allocation4 + $0x148] sm:$0xff] %vm275_vm0, %v4554_v63 }
 0x679   :  { %5409 = shalt.err (!%p5406_p4)
}
 0x67a   :  { %s5410_s1 = scalar_lea.hbm %s7230_s12, 6144 }
 0x67b   :  { %p5411_p5 = scmp.ne.s32.totalorder %s7230_s12, %s5410_s1  ;;  %p5414_p6 = scmp.lt.u32.totalorder %s5410_s1, %s7230_s12 }
 0x67d   :  { %p5416_p7 = pnand %p5414_p6, %p5411_p5 }
 0x67f   :  { %5419 = shalt.err (!%p5416_p7)
}
 0x680   :  { %s5429_s16 = smov 384   ;;  %s5430_s17 = smov 24  }
 0x681   :  { %4620 = dma.vmem_to_hbm [thread:$0]  %s4615_s28, 6144, %s7230_s12, [#allocation5], %s5429_s16, %s5429_s16, %s5430_s17  }
 0x682   :  { %5420 = dma.done.wait [#allocation5], 6144  }
 0x683   :  { %5421 = vsyncadd [#allocation5], 4294961152 }
 0x684   :  { %4624 = vsyncpa [#allocation5], 1 }

</bundles_post_ra>
